<compile_context>
chip_gen: v7x
topology: tpu7x:2x2x1
jax: 0.10.0
libtpu: 0.0.40
codegen_flags: <defaults>
</compile_context>

<pallas_src>
import math

import jax
import jax.numpy as jnp
from jax.experimental import pallas as pl
from jax.experimental.pallas import tpu as pltpu


# ---------------------------------------------------------------------------
# Fused encoder kernel
# ---------------------------------------------------------------------------
def _encoder2_kernel(p1_ref, w1_ref, b1_ref, w2_ref, b2_ref, w3_ref, b3_ref,
                     w4_ref, b4_ref, o_ref, h1_ref, h2_ref, f_ref):
    TB = o_ref.shape[0]                       # batch tile (multiple of 8)
    cdt = jnp.bfloat16                        # MXU operand dtype (f32 accumulation)

    # ---- conv1: one (49*TB, 16C) @ (16C, 32) matmul, one dense store ----------
    p1 = p1_ref[...].reshape(49 * TB, p1_ref.shape[3]).astype(cdt)
    y1 = jnp.dot(p1, w1_ref[...], preferred_element_type=jnp.float32)
    h1_ref[...] = jnp.maximum(y1 + b1_ref[...], 0.0).reshape(7, 7, TB, 32)

    # ---- conv2: 3x3, 9 per-tap (25*TB, 32) @ (32, 64) matmuls -----------------
    acc2 = None
    for kh in range(3):
        for kw in range(3):
            lhs = h1_ref[kh:kh + 5, kw:kw + 5, :, :].reshape(25 * TB, 32).astype(cdt)
            term = jnp.dot(lhs, w2_ref[kh * 3 + kw, :, :],
                           preferred_element_type=jnp.float32)
            acc2 = term if acc2 is None else acc2 + term
    h2_ref[...] = jnp.maximum(acc2 + b2_ref[...], 0.0).reshape(5, 5, TB, 64)

    # ---- conv3: 3x3, 9 per-tap (9*TB, 64) @ (64, 64) matmuls ------------------
    acc3 = None
    for kh in range(3):
        for kw in range(3):
            lhs = h2_ref[kh:kh + 3, kw:kw + 3, :, :].reshape(9 * TB, 64).astype(cdt)
            term = jnp.dot(lhs, w3_ref[kh * 3 + kw, :, :],
                           preferred_element_type=jnp.float32)
            acc3 = term if acc3 is None else acc3 + term
    y3 = jnp.maximum(acc3 + b3_ref[...], 0.0)          # (9*TB, 64), rows = (pos, b)

    # ---- flatten (feature order (oh, ow, c)) + single K=576 Linear matmul -----
    for pos in range(9):
        f_ref[:, pos * 64:(pos + 1) * 64] = y3[pos * TB:(pos + 1) * TB, :]
    out = jnp.dot(f_ref[...].astype(cdt), w4_ref[...],
                  preferred_element_type=jnp.float32)
    o_ref[...] = jnp.maximum(out + b4_ref[...], 0.0)


# ---------------------------------------------------------------------------
# Input-side layout conversion (only XLA glue in the forward; fuses to ~1 op).
# Produces patches ordered (oh, ow, b, (kh, kw, c)) so the kernel's single
# conv1 matmul result lands directly in the (7, 7, TB, 32) scratch layout.
# ---------------------------------------------------------------------------
def _im2col_conv1(x):
    """x: (B, C, 16, 16) NCHW -> (7, 7, B, 16*C)."""
    B, C, H, W = x.shape
    assert H == 16 and W == 16, "Encoder2 requires 16x16 input (Linear(in=576))"
    cols = [x[:, :, kh:kh + 14:2, kw:kw + 14:2]            # (B, C, 7, 7) each
            for kh in range(4) for kw in range(4)]
    p = jnp.stack(cols, axis=0)                            # (16, B, C, 7, 7); axis0 = kh*4+kw
    p = p.transpose(3, 4, 1, 0, 2)                         # (7, 7, B, 16, C)
    return p.reshape(7, 7, B, 16 * C)


def _batch_tiling(B):
    """Batch tile (multiple of 8) and padded batch; >= 2 grid steps when B > 8."""
    ceil8 = lambda n: -(-n // 8) * 8
    Bp = ceil8(B)
    if Bp <= 8:
        return Bp, Bp
    TB = ceil8(-(-Bp // 2)) if Bp <= 256 else 128
    Bp = -(-Bp // TB) * TB
    return TB, Bp


# ---------------------------------------------------------------------------
# Forward
# ---------------------------------------------------------------------------
def encoder2_forward(kparams, x):
    B, C = x.shape[0], x.shape[1]
    out_dim = kparams["b4"].shape[-1]

    TB, Bp = _batch_tiling(B)
    if Bp != B:                                   # pad the small NCHW input (not the
        x = jnp.pad(x, ((0, Bp - B), (0, 0), (0, 0), (0, 0)))   # 4x-expanded patches)
    patches = _im2col_conv1(x)                    # (7, 7, Bp, 16C), f32

    out = pl.pallas_call(
        _encoder2_kernel,
        out_shape=jax.ShapeDtypeStruct((Bp, out_dim), jnp.float32),
        grid=(Bp // TB,),
        in_specs=[
            pl.BlockSpec((7, 7, TB, 16 * C), lambda i: (0, 0, i, 0)),   # conv1 patches
            pl.BlockSpec((16 * C, 32), lambda i: (0, 0)),               # w1
            pl.BlockSpec((1, 32), lambda i: (0, 0)),                    # b1
            pl.BlockSpec((9, 32, 64), lambda i: (0, 0, 0)),             # w2 (tap-major)
            pl.BlockSpec((1, 64), lambda i: (0, 0)),                    # b2
            pl.BlockSpec((9, 64, 64), lambda i: (0, 0, 0)),             # w3 (tap-major)
            pl.BlockSpec((1, 64), lambda i: (0, 0)),                    # b3
            pl.BlockSpec((576, out_dim), lambda i: (0, 0)),             # w4 (576, out)
            pl.BlockSpec((1, out_dim), lambda i: (0, 0)),               # b4
        ],
        out_specs=pl.BlockSpec((TB, out_dim), lambda i: (i, 0)),
        scratch_shapes=[
            pltpu.VMEM((7, 7, TB, 32), jnp.float32),   # conv1 activations
            pltpu.VMEM((5, 5, TB, 64), jnp.float32),   # conv2 activations
            pltpu.VMEM((TB, 576), jnp.float32),        # flattened conv3 features
        ],
        compiler_params=pltpu.CompilerParams(dimension_semantics=("parallel",)),
    )(patches, kparams["w1"], kparams["b1"], kparams["w2"], kparams["b2"],
      kparams["w3"], kparams["b3"], kparams["w4"], kparams["b4"])

    return out[:B] if Bp != B else out


# ---------------------------------------------------------------------------
# Parameter init (PyTorch layout, orthogonal gain=sqrt(2), zero bias) and the
# one-time re-layout to the kernel's tap-major / channels-last / bf16 layout.
# ---------------------------------------------------------------------------
def _orthogonal(key, rows, cols, gain=math.sqrt(2.0)):
    a = jax.random.normal(key, (max(rows, cols), min(rows, cols)), jnp.float32)
    q, r = jnp.linalg.qr(a)
    q = q * jnp.sign(jnp.diagonal(r))
    if rows < cols:
        q = q.T
    return (gain * q).astype(jnp.float32)


def init_encoder2_params(key, in_channels, encoder_out_dim):
    k1, k2, k3, k4 = jax.random.split(key, 4)
    return {
        "w1": _orthogonal(k1, 32, in_channels * 16).reshape(32, in_channels, 4, 4),
        "b1": jnp.zeros((32,), jnp.float32),
        "w2": _orthogonal(k2, 64, 32 * 9).reshape(64, 32, 3, 3),
        "b2": jnp.zeros((64,), jnp.float32),
        "w3": _orthogonal(k3, 64, 64 * 9).reshape(64, 64, 3, 3),
        "b3": jnp.zeros((64,), jnp.float32),
        "w4": _orthogonal(k4, encoder_out_dim, 576),          # (out, 576), PyTorch layout
        "b4": jnp.zeros((encoder_out_dim,), jnp.float32),
    }


def prepare_encoder2_params(p):
    """One-time (outside jit) re-layout from PyTorch weight layout to kernel layout."""
    C = p["w1"].shape[1]
    out_dim = p["w4"].shape[0]
    wdt = jnp.bfloat16                                       # MXU-native weight dtype
    return {
        "w1": p["w1"].transpose(2, 3, 1, 0).reshape(16 * C, 32).astype(wdt),
        "b1": p["b1"].reshape(1, 32).astype(jnp.float32),
        "w2": p["w2"].transpose(2, 3, 1, 0).reshape(9, 32, 64).astype(wdt),
        "b2": p["b2"].reshape(1, 64).astype(jnp.float32),
        "w3": p["w3"].transpose(2, 3, 1, 0).reshape(9, 64, 64).astype(wdt),
        "b3": p["b3"].reshape(1, 64).astype(jnp.float32),
        # PyTorch flatten order is (c, h, w); kernel packs features as (oh, ow, c):
        "w4": p["w4"].reshape(out_dim, 64, 3, 3)
                     .transpose(2, 3, 1, 0).reshape(576, out_dim).astype(wdt),
        "b4": p["b4"].reshape(1, out_dim).astype(jnp.float32),
    }


# ---------------------------------------------------------------------------
# Pure-JAX reference (PyTorch semantics) for a structural self-check
# ---------------------------------------------------------------------------
def encoder2_reference(p, x):
    dn = ("NCHW", "OIHW", "NCHW")
    hp = jax.lax.Precision.HIGHEST
    h = jax.lax.conv_general_dilated(x, p["w1"], (2, 2), "VALID",
                                     dimension_numbers=dn, precision=hp)
    h = jnp.maximum(h + p["b1"][None, :, None, None], 0.0)
    h = jax.lax.conv_general_dilated(h, p["w2"], (1, 1), "VALID",
                                     dimension_numbers=dn, precision=hp)
    h = jnp.maximum(h + p["b2"][None, :, None, None], 0.0)
    h = jax.lax.conv_general_dilated(h, p["w3"], (1, 1), "VALID",
                                     dimension_numbers=dn, precision=hp)
    h = jnp.maximum(h + p["b3"][None, :, None, None], 0.0)
    flat = h.reshape(h.shape[0], -1)                       # torch .view(B, -1): (c,h,w)
    out = flat @ p["w4"].T + p["b4"]
    return jnp.maximum(out, 0.0)


if __name__ == "__main__":
    in_channels = 4
    encoder_out_dim = 32
    key = jax.random.PRNGKey(0)
    kx, kp = jax.random.split(key)

    x = jax.random.normal(kx, (2, in_channels, 16, 16), jnp.float32)
    torch_params = init_encoder2_params(kp, in_channels, encoder_out_dim)
    kparams = prepare_encoder2_params(torch_params)        # once, outside jit

    fwd = jax.jit(encoder2_forward)
    out = fwd(kparams, x)
    jax.block_until_ready(out)

    ref = encoder2_reference(torch_params, x)
    assert out.shape == (2, encoder_out_dim)
    assert bool(jnp.all(out >= 0.0))                       # final ReLU
    # Tolerance accounts for bf16 MXU operands (f32 accumulation) vs f32 reference.
    assert bool(jnp.allclose(out, ref, atol=1e-1, rtol=5e-2)), \
        f"max|diff|={float(jnp.max(jnp.abs(out - ref)))}"
    print("KERNEL_OK")
</pallas_src>

<mosaic_0001>
module attributes {stable_mosaic.version = 11 : i64} {
  func.func @_encoder2_kernel(%arg0: i32, %arg1: memref<7x7x8x64xf32, #tpu.memory_space<vmem>>, %arg2: memref<64x32xbf16, #tpu.memory_space<vmem>>, %arg3: memref<1x32xf32, #tpu.memory_space<vmem>>, %arg4: memref<9x32x64xbf16, #tpu.memory_space<vmem>>, %arg5: memref<1x64xf32, #tpu.memory_space<vmem>>, %arg6: memref<9x64x64xbf16, #tpu.memory_space<vmem>>, %arg7: memref<1x64xf32, #tpu.memory_space<vmem>>, %arg8: memref<576x32xbf16, #tpu.memory_space<vmem>>, %arg9: memref<1x32xf32, #tpu.memory_space<vmem>>, %arg10: memref<8x32xf32, #tpu.memory_space<vmem>>, %arg11: memref<7x7x8x32xf32, #tpu.memory_space<vmem>>, %arg12: memref<5x5x8x64xf32, #tpu.memory_space<vmem>>, %arg13: memref<8x576xf32, #tpu.memory_space<vmem>>) attributes {dimension_semantics = [#tpu.dimension_semantics<parallel>], iteration_bounds = array<i64: 1>, scalar_prefetch = 0 : i64, scratch_operands = 3 : i64, tpu.core_type = #tpu.core_type<tc>, window_params = [{transform_indices = @transform_0, window_bounds = array<i64: 7, 7, 8, 64>}, {pipeline_mode = #tpu.pipeline_mode<synchronous>, transform_indices = @transform_1, window_bounds = array<i64: 64, 32>}, {pipeline_mode = #tpu.pipeline_mode<synchronous>, transform_indices = @transform_2, window_bounds = array<i64: 1, 32>}, {pipeline_mode = #tpu.pipeline_mode<synchronous>, transform_indices = @transform_3, window_bounds = array<i64: 9, 32, 64>}, {pipeline_mode = #tpu.pipeline_mode<synchronous>, transform_indices = @transform_4, window_bounds = array<i64: 1, 64>}, {pipeline_mode = #tpu.pipeline_mode<synchronous>, transform_indices = @transform_5, window_bounds = array<i64: 9, 64, 64>}, {pipeline_mode = #tpu.pipeline_mode<synchronous>, transform_indices = @transform_6, window_bounds = array<i64: 1, 64>}, {pipeline_mode = #tpu.pipeline_mode<synchronous>, transform_indices = @transform_7, window_bounds = array<i64: 576, 32>}, {pipeline_mode = #tpu.pipeline_mode<synchronous>, transform_indices = @transform_8, window_bounds = array<i64: 1, 32>}, {transform_indices = @transform_9, window_bounds = array<i64: 8, 32>}]} {
    %c0 = arith.constant 0 : index
    %c0_0 = arith.constant 0 : index
    %c0_1 = arith.constant 0 : index
    %c0_2 = arith.constant 0 : index
    %0 = vector.load %arg1[%c0, %c0_0, %c0_1, %c0_2] : memref<7x7x8x64xf32, #tpu.memory_space<vmem>>, vector<7x7x8x64xf32>
    %1 = vector.shape_cast %0 : vector<7x7x8x64xf32> to vector<392x64xf32>
    %2 = arith.truncf %1 : vector<392x64xf32> to vector<392x64xbf16>
    %c0_3 = arith.constant 0 : index
    %c0_4 = arith.constant 0 : index
    %3 = vector.load %arg2[%c0_3, %c0_4] : memref<64x32xbf16, #tpu.memory_space<vmem>>, vector<64x32xbf16>
    %cst = arith.constant dense<0.000000e+00> : vector<392x32xf32>
    %4 = tpu.matmul %2, %3, %cst {dimension_numbers = #tpu.dot_dimension_numbers<[1], [0], [0], [1], [0, 0, 1, 1], [], []>} : vector<392x64xbf16>, vector<64x32xbf16>, vector<392x32xf32> -> vector<392x32xf32>
    %c0_5 = arith.constant 0 : index
    %c0_6 = arith.constant 0 : index
    %5 = vector.load %arg3[%c0_5, %c0_6] : memref<1x32xf32, #tpu.memory_space<vmem>>, vector<1x32xf32>
    %6 = vector.broadcast %5 : vector<1x32xf32> to vector<392x32xf32>
    %7 = arith.addf %4, %6 : vector<392x32xf32>
    %cst_7 = arith.constant 0.000000e+00 : f32
    %8 = vector.broadcast %cst_7 : f32 to vector<392x32xf32>
    %9 = arith.maximumf %7, %8 : vector<392x32xf32>
    %10 = vector.shape_cast %9 : vector<392x32xf32> to vector<7x7x8x32xf32>
    %c0_8 = arith.constant 0 : index
    %c0_9 = arith.constant 0 : index
    %c0_10 = arith.constant 0 : index
    %c0_11 = arith.constant 0 : index
    %11 = vector.load %arg11[%c0_8, %c0_9, %c0_10, %c0_11] : memref<7x7x8x32xf32, #tpu.memory_space<vmem>>, vector<7x7x8x32xf32>
    tpu.vector_store %arg11[%c0_8, %c0_9, %c0_10, %c0_11], %10 {strides = array<i32>} : memref<7x7x8x32xf32, #tpu.memory_space<vmem>>, vector<7x7x8x32xf32>,
    %c0_12 = arith.constant 0 : index
    %c0_13 = arith.constant 0 : index
    %c0_14 = arith.constant 0 : index
    %c0_15 = arith.constant 0 : index
    %12 = vector.load %arg11[%c0_12, %c0_13, %c0_14, %c0_15] : memref<7x7x8x32xf32, #tpu.memory_space<vmem>>, vector<5x5x8x32xf32>
    %13 = vector.shape_cast %12 : vector<5x5x8x32xf32> to vector<200x32xf32>
    %14 = arith.truncf %13 : vector<200x32xf32> to vector<200x32xbf16>
    %c0_16 = arith.constant 0 : index
    %c0_17 = arith.constant 0 : index
    %c0_18 = arith.constant 0 : index
    %15 = vector.load %arg4[%c0_16, %c0_17, %c0_18] : memref<9x32x64xbf16, #tpu.memory_space<vmem>>, vector<1x32x64xbf16>
    %16 = vector.shape_cast %15 : vector<1x32x64xbf16> to vector<32x64xbf16>
    %cst_19 = arith.constant dense<0.000000e+00> : vector<200x64xf32>
    %17 = tpu.matmul %14, %16, %cst_19 {dimension_numbers = #tpu.dot_dimension_numbers<[1], [0], [0], [1], [0, 0, 1, 1], [], []>} : vector<200x32xbf16>, vector<32x64xbf16>, vector<200x64xf32> -> vector<200x64xf32>
    %c0_20 = arith.constant 0 : index
    %c1 = arith.constant 1 : index
    %c0_21 = arith.constant 0 : index
    %c0_22 = arith.constant 0 : index
    %18 = vector.load %arg11[%c0_20, %c1, %c0_21, %c0_22] : memref<7x7x8x32xf32, #tpu.memory_space<vmem>>, vector<5x5x8x32xf32>
    %19 = vector.shape_cast %18 : vector<5x5x8x32xf32> to vector<200x32xf32>
    %20 = arith.truncf %19 : vector<200x32xf32> to vector<200x32xbf16>
    %c1_23 = arith.constant 1 : index
    %c0_24 = arith.constant 0 : index
    %c0_25 = arith.constant 0 : index
    %21 = vector.load %arg4[%c1_23, %c0_24, %c0_25] : memref<9x32x64xbf16, #tpu.memory_space<vmem>>, vector<1x32x64xbf16>
    %22 = vector.shape_cast %21 : vector<1x32x64xbf16> to vector<32x64xbf16>
    %cst_26 = arith.constant dense<0.000000e+00> : vector<200x64xf32>
    %23 = tpu.matmul %20, %22, %cst_26 {dimension_numbers = #tpu.dot_dimension_numbers<[1], [0], [0], [1], [0, 0, 1, 1], [], []>} : vector<200x32xbf16>, vector<32x64xbf16>, vector<200x64xf32> -> vector<200x64xf32>
    %24 = arith.addf %17, %23 : vector<200x64xf32>
    %c0_27 = arith.constant 0 : index
    %c2 = arith.constant 2 : index
    %c0_28 = arith.constant 0 : index
    %c0_29 = arith.constant 0 : index
    %25 = vector.load %arg11[%c0_27, %c2, %c0_28, %c0_29] : memref<7x7x8x32xf32, #tpu.memory_space<vmem>>, vector<5x5x8x32xf32>
    %26 = vector.shape_cast %25 : vector<5x5x8x32xf32> to vector<200x32xf32>
    %27 = arith.truncf %26 : vector<200x32xf32> to vector<200x32xbf16>
    %c2_30 = arith.constant 2 : index
    %c0_31 = arith.constant 0 : index
    %c0_32 = arith.constant 0 : index
    %28 = vector.load %arg4[%c2_30, %c0_31, %c0_32] : memref<9x32x64xbf16, #tpu.memory_space<vmem>>, vector<1x32x64xbf16>
    %29 = vector.shape_cast %28 : vector<1x32x64xbf16> to vector<32x64xbf16>
    %cst_33 = arith.constant dense<0.000000e+00> : vector<200x64xf32>
    %30 = tpu.matmul %27, %29, %cst_33 {dimension_numbers = #tpu.dot_dimension_numbers<[1], [0], [0], [1], [0, 0, 1, 1], [], []>} : vector<200x32xbf16>, vector<32x64xbf16>, vector<200x64xf32> -> vector<200x64xf32>
    %31 = arith.addf %24, %30 : vector<200x64xf32>
    %c1_34 = arith.constant 1 : index
    %c0_35 = arith.constant 0 : index
    %c0_36 = arith.constant 0 : index
    %c0_37 = arith.constant 0 : index
    %32 = vector.load %arg11[%c1_34, %c0_35, %c0_36, %c0_37] : memref<7x7x8x32xf32, #tpu.memory_space<vmem>>, vector<5x5x8x32xf32>
    %33 = vector.shape_cast %32 : vector<5x5x8x32xf32> to vector<200x32xf32>
    %34 = arith.truncf %33 : vector<200x32xf32> to vector<200x32xbf16>
    %c3 = arith.constant 3 : index
    %c0_38 = arith.constant 0 : index
    %c0_39 = arith.constant 0 : index
    %35 = vector.load %arg4[%c3, %c0_38, %c0_39] : memref<9x32x64xbf16, #tpu.memory_space<vmem>>, vector<1x32x64xbf16>
    %36 = vector.shape_cast %35 : vector<1x32x64xbf16> to vector<32x64xbf16>
    %cst_40 = arith.constant dense<0.000000e+00> : vector<200x64xf32>
    %37 = tpu.matmul %34, %36, %cst_40 {dimension_numbers = #tpu.dot_dimension_numbers<[1], [0], [0], [1], [0, 0, 1, 1], [], []>} : vector<200x32xbf16>, vector<32x64xbf16>, vector<200x64xf32> -> vector<200x64xf32>
    %38 = arith.addf %31, %37 : vector<200x64xf32>
    %c1_41 = arith.constant 1 : index
    %c1_42 = arith.constant 1 : index
    %c0_43 = arith.constant 0 : index
    %c0_44 = arith.constant 0 : index
    %39 = vector.load %arg11[%c1_41, %c1_42, %c0_43, %c0_44] : memref<7x7x8x32xf32, #tpu.memory_space<vmem>>, vector<5x5x8x32xf32>
    %40 = vector.shape_cast %39 : vector<5x5x8x32xf32> to vector<200x32xf32>
    %41 = arith.truncf %40 : vector<200x32xf32> to vector<200x32xbf16>
    %c4 = arith.constant 4 : index
    %c0_45 = arith.constant 0 : index
    %c0_46 = arith.constant 0 : index
    %42 = vector.load %arg4[%c4, %c0_45, %c0_46] : memref<9x32x64xbf16, #tpu.memory_space<vmem>>, vector<1x32x64xbf16>
    %43 = vector.shape_cast %42 : vector<1x32x64xbf16> to vector<32x64xbf16>
    %cst_47 = arith.constant dense<0.000000e+00> : vector<200x64xf32>
    %44 = tpu.matmul %41, %43, %cst_47 {dimension_numbers = #tpu.dot_dimension_numbers<[1], [0], [0], [1], [0, 0, 1, 1], [], []>} : vector<200x32xbf16>, vector<32x64xbf16>, vector<200x64xf32> -> vector<200x64xf32>
    %45 = arith.addf %38, %44 : vector<200x64xf32>
    %c1_48 = arith.constant 1 : index
    %c2_49 = arith.constant 2 : index
    %c0_50 = arith.constant 0 : index
    %c0_51 = arith.constant 0 : index
    %46 = vector.load %arg11[%c1_48, %c2_49, %c0_50, %c0_51] : memref<7x7x8x32xf32, #tpu.memory_space<vmem>>, vector<5x5x8x32xf32>
    %47 = vector.shape_cast %46 : vector<5x5x8x32xf32> to vector<200x32xf32>
    %48 = arith.truncf %47 : vector<200x32xf32> to vector<200x32xbf16>
    %c5 = arith.constant 5 : index
    %c0_52 = arith.constant 0 : index
    %c0_53 = arith.constant 0 : index
    %49 = vector.load %arg4[%c5, %c0_52, %c0_53] : memref<9x32x64xbf16, #tpu.memory_space<vmem>>, vector<1x32x64xbf16>
    %50 = vector.shape_cast %49 : vector<1x32x64xbf16> to vector<32x64xbf16>
    %cst_54 = arith.constant dense<0.000000e+00> : vector<200x64xf32>
    %51 = tpu.matmul %48, %50, %cst_54 {dimension_numbers = #tpu.dot_dimension_numbers<[1], [0], [0], [1], [0, 0, 1, 1], [], []>} : vector<200x32xbf16>, vector<32x64xbf16>, vector<200x64xf32> -> vector<200x64xf32>
    %52 = arith.addf %45, %51 : vector<200x64xf32>
    %c2_55 = arith.constant 2 : index
    %c0_56 = arith.constant 0 : index
    %c0_57 = arith.constant 0 : index
    %c0_58 = arith.constant 0 : index
    %53 = vector.load %arg11[%c2_55, %c0_56, %c0_57, %c0_58] : memref<7x7x8x32xf32, #tpu.memory_space<vmem>>, vector<5x5x8x32xf32>
    %54 = vector.shape_cast %53 : vector<5x5x8x32xf32> to vector<200x32xf32>
    %55 = arith.truncf %54 : vector<200x32xf32> to vector<200x32xbf16>
    %c6 = arith.constant 6 : index
    %c0_59 = arith.constant 0 : index
    %c0_60 = arith.constant 0 : index
    %56 = vector.load %arg4[%c6, %c0_59, %c0_60] : memref<9x32x64xbf16, #tpu.memory_space<vmem>>, vector<1x32x64xbf16>
    %57 = vector.shape_cast %56 : vector<1x32x64xbf16> to vector<32x64xbf16>
    %cst_61 = arith.constant dense<0.000000e+00> : vector<200x64xf32>
    %58 = tpu.matmul %55, %57, %cst_61 {dimension_numbers = #tpu.dot_dimension_numbers<[1], [0], [0], [1], [0, 0, 1, 1], [], []>} : vector<200x32xbf16>, vector<32x64xbf16>, vector<200x64xf32> -> vector<200x64xf32>
    %59 = arith.addf %52, %58 : vector<200x64xf32>
    %c2_62 = arith.constant 2 : index
    %c1_63 = arith.constant 1 : index
    %c0_64 = arith.constant 0 : index
    %c0_65 = arith.constant 0 : index
    %60 = vector.load %arg11[%c2_62, %c1_63, %c0_64, %c0_65] : memref<7x7x8x32xf32, #tpu.memory_space<vmem>>, vector<5x5x8x32xf32>
    %61 = vector.shape_cast %60 : vector<5x5x8x32xf32> to vector<200x32xf32>
    %62 = arith.truncf %61 : vector<200x32xf32> to vector<200x32xbf16>
    %c7 = arith.constant 7 : index
    %c0_66 = arith.constant 0 : index
    %c0_67 = arith.constant 0 : index
    %63 = vector.load %arg4[%c7, %c0_66, %c0_67] : memref<9x32x64xbf16, #tpu.memory_space<vmem>>, vector<1x32x64xbf16>
    %64 = vector.shape_cast %63 : vector<1x32x64xbf16> to vector<32x64xbf16>
    %cst_68 = arith.constant dense<0.000000e+00> : vector<200x64xf32>
    %65 = tpu.matmul %62, %64, %cst_68 {dimension_numbers = #tpu.dot_dimension_numbers<[1], [0], [0], [1], [0, 0, 1, 1], [], []>} : vector<200x32xbf16>, vector<32x64xbf16>, vector<200x64xf32> -> vector<200x64xf32>
    %66 = arith.addf %59, %65 : vector<200x64xf32>
    %c2_69 = arith.constant 2 : index
    %c2_70 = arith.constant 2 : index
    %c0_71 = arith.constant 0 : index
    %c0_72 = arith.constant 0 : index
    %67 = vector.load %arg11[%c2_69, %c2_70, %c0_71, %c0_72] : memref<7x7x8x32xf32, #tpu.memory_space<vmem>>, vector<5x5x8x32xf32>
    %68 = vector.shape_cast %67 : vector<5x5x8x32xf32> to vector<200x32xf32>
    %69 = arith.truncf %68 : vector<200x32xf32> to vector<200x32xbf16>
    %c8 = arith.constant 8 : index
    %c0_73 = arith.constant 0 : index
    %c0_74 = arith.constant 0 : index
    %70 = vector.load %arg4[%c8, %c0_73, %c0_74] : memref<9x32x64xbf16, #tpu.memory_space<vmem>>, vector<1x32x64xbf16>
    %71 = vector.shape_cast %70 : vector<1x32x64xbf16> to vector<32x64xbf16>
    %cst_75 = arith.constant dense<0.000000e+00> : vector<200x64xf32>
    %72 = tpu.matmul %69, %71, %cst_75 {dimension_numbers = #tpu.dot_dimension_numbers<[1], [0], [0], [1], [0, 0, 1, 1], [], []>} : vector<200x32xbf16>, vector<32x64xbf16>, vector<200x64xf32> -> vector<200x64xf32>
    %73 = arith.addf %66, %72 : vector<200x64xf32>
    %c0_76 = arith.constant 0 : index
    %c0_77 = arith.constant 0 : index
    %74 = vector.load %arg5[%c0_76, %c0_77] : memref<1x64xf32, #tpu.memory_space<vmem>>, vector<1x64xf32>
    %75 = vector.broadcast %74 : vector<1x64xf32> to vector<200x64xf32>
    %76 = arith.addf %73, %75 : vector<200x64xf32>
    %cst_78 = arith.constant 0.000000e+00 : f32
    %77 = vector.broadcast %cst_78 : f32 to vector<200x64xf32>
    %78 = arith.maximumf %76, %77 : vector<200x64xf32>
    %79 = vector.shape_cast %78 : vector<200x64xf32> to vector<5x5x8x64xf32>
    %c0_79 = arith.constant 0 : index
    %c0_80 = arith.constant 0 : index
    %c0_81 = arith.constant 0 : index
    %c0_82 = arith.constant 0 : index
    %80 = vector.load %arg12[%c0_79, %c0_80, %c0_81, %c0_82] : memref<5x5x8x64xf32, #tpu.memory_space<vmem>>, vector<5x5x8x64xf32>
    tpu.vector_store %arg12[%c0_79, %c0_80, %c0_81, %c0_82], %79 {strides = array<i32>} : memref<5x5x8x64xf32, #tpu.memory_space<vmem>>, vector<5x5x8x64xf32>,
    %c0_83 = arith.constant 0 : index
    %c0_84 = arith.constant 0 : index
    %c0_85 = arith.constant 0 : index
    %c0_86 = arith.constant 0 : index
    %81 = vector.load %arg12[%c0_83, %c0_84, %c0_85, %c0_86] : memref<5x5x8x64xf32, #tpu.memory_space<vmem>>, vector<3x3x8x64xf32>
    %82 = vector.shape_cast %81 : vector<3x3x8x64xf32> to vector<72x64xf32>
    %83 = arith.truncf %82 : vector<72x64xf32> to vector<72x64xbf16>
    %c0_87 = arith.constant 0 : index
    %c0_88 = arith.constant 0 : index
    %c0_89 = arith.constant 0 : index
    %84 = vector.load %arg6[%c0_87, %c0_88, %c0_89] : memref<9x64x64xbf16, #tpu.memory_space<vmem>>, vector<1x64x64xbf16>
    %85 = vector.shape_cast %84 : vector<1x64x64xbf16> to vector<64x64xbf16>
    %cst_90 = arith.constant dense<0.000000e+00> : vector<72x64xf32>
    %86 = tpu.matmul %83, %85, %cst_90 {dimension_numbers = #tpu.dot_dimension_numbers<[1], [0], [0], [1], [0, 0, 1, 1], [], []>} : vector<72x64xbf16>, vector<64x64xbf16>, vector<72x64xf32> -> vector<72x64xf32>
    %c0_91 = arith.constant 0 : index
    %c1_92 = arith.constant 1 : index
    %c0_93 = arith.constant 0 : index
    %c0_94 = arith.constant 0 : index
    %87 = vector.load %arg12[%c0_91, %c1_92, %c0_93, %c0_94] : memref<5x5x8x64xf32, #tpu.memory_space<vmem>>, vector<3x3x8x64xf32>
    %88 = vector.shape_cast %87 : vector<3x3x8x64xf32> to vector<72x64xf32>
    %89 = arith.truncf %88 : vector<72x64xf32> to vector<72x64xbf16>
    %c1_95 = arith.constant 1 : index
    %c0_96 = arith.constant 0 : index
    %c0_97 = arith.constant 0 : index
    %90 = vector.load %arg6[%c1_95, %c0_96, %c0_97] : memref<9x64x64xbf16, #tpu.memory_space<vmem>>, vector<1x64x64xbf16>
    %91 = vector.shape_cast %90 : vector<1x64x64xbf16> to vector<64x64xbf16>
    %cst_98 = arith.constant dense<0.000000e+00> : vector<72x64xf32>
    %92 = tpu.matmul %89, %91, %cst_98 {dimension_numbers = #tpu.dot_dimension_numbers<[1], [0], [0], [1], [0, 0, 1, 1], [], []>} : vector<72x64xbf16>, vector<64x64xbf16>, vector<72x64xf32> -> vector<72x64xf32>
    %93 = arith.addf %86, %92 : vector<72x64xf32>
    %c0_99 = arith.constant 0 : index
    %c2_100 = arith.constant 2 : index
    %c0_101 = arith.constant 0 : index
    %c0_102 = arith.constant 0 : index
    %94 = vector.load %arg12[%c0_99, %c2_100, %c0_101, %c0_102] : memref<5x5x8x64xf32, #tpu.memory_space<vmem>>, vector<3x3x8x64xf32>
    %95 = vector.shape_cast %94 : vector<3x3x8x64xf32> to vector<72x64xf32>
    %96 = arith.truncf %95 : vector<72x64xf32> to vector<72x64xbf16>
    %c2_103 = arith.constant 2 : index
    %c0_104 = arith.constant 0 : index
    %c0_105 = arith.constant 0 : index
    %97 = vector.load %arg6[%c2_103, %c0_104, %c0_105] : memref<9x64x64xbf16, #tpu.memory_space<vmem>>, vector<1x64x64xbf16>
    %98 = vector.shape_cast %97 : vector<1x64x64xbf16> to vector<64x64xbf16>
    %cst_106 = arith.constant dense<0.000000e+00> : vector<72x64xf32>
    %99 = tpu.matmul %96, %98, %cst_106 {dimension_numbers = #tpu.dot_dimension_numbers<[1], [0], [0], [1], [0, 0, 1, 1], [], []>} : vector<72x64xbf16>, vector<64x64xbf16>, vector<72x64xf32> -> vector<72x64xf32>
    %100 = arith.addf %93, %99 : vector<72x64xf32>
    %c1_107 = arith.constant 1 : index
    %c0_108 = arith.constant 0 : index
    %c0_109 = arith.constant 0 : index
    %c0_110 = arith.constant 0 : index
    %101 = vector.load %arg12[%c1_107, %c0_108, %c0_109, %c0_110] : memref<5x5x8x64xf32, #tpu.memory_space<vmem>>, vector<3x3x8x64xf32>
    %102 = vector.shape_cast %101 : vector<3x3x8x64xf32> to vector<72x64xf32>
    %103 = arith.truncf %102 : vector<72x64xf32> to vector<72x64xbf16>
    %c3_111 = arith.constant 3 : index
    %c0_112 = arith.constant 0 : index
    %c0_113 = arith.constant 0 : index
    %104 = vector.load %arg6[%c3_111, %c0_112, %c0_113] : memref<9x64x64xbf16, #tpu.memory_space<vmem>>, vector<1x64x64xbf16>
    %105 = vector.shape_cast %104 : vector<1x64x64xbf16> to vector<64x64xbf16>
    %cst_114 = arith.constant dense<0.000000e+00> : vector<72x64xf32>
    %106 = tpu.matmul %103, %105, %cst_114 {dimension_numbers = #tpu.dot_dimension_numbers<[1], [0], [0], [1], [0, 0, 1, 1], [], []>} : vector<72x64xbf16>, vector<64x64xbf16>, vector<72x64xf32> -> vector<72x64xf32>
    %107 = arith.addf %100, %106 : vector<72x64xf32>
    %c1_115 = arith.constant 1 : index
    %c1_116 = arith.constant 1 : index
    %c0_117 = arith.constant 0 : index
    %c0_118 = arith.constant 0 : index
    %108 = vector.load %arg12[%c1_115, %c1_116, %c0_117, %c0_118] : memref<5x5x8x64xf32, #tpu.memory_space<vmem>>, vector<3x3x8x64xf32>
    %109 = vector.shape_cast %108 : vector<3x3x8x64xf32> to vector<72x64xf32>
    %110 = arith.truncf %109 : vector<72x64xf32> to vector<72x64xbf16>
    %c4_119 = arith.constant 4 : index
    %c0_120 = arith.constant 0 : index
    %c0_121 = arith.constant 0 : index
    %111 = vector.load %arg6[%c4_119, %c0_120, %c0_121] : memref<9x64x64xbf16, #tpu.memory_space<vmem>>, vector<1x64x64xbf16>
    %112 = vector.shape_cast %111 : vector<1x64x64xbf16> to vector<64x64xbf16>
    %cst_122 = arith.constant dense<0.000000e+00> : vector<72x64xf32>
    %113 = tpu.matmul %110, %112, %cst_122 {dimension_numbers = #tpu.dot_dimension_numbers<[1], [0], [0], [1], [0, 0, 1, 1], [], []>} : vector<72x64xbf16>, vector<64x64xbf16>, vector<72x64xf32> -> vector<72x64xf32>
    %114 = arith.addf %107, %113 : vector<72x64xf32>
    %c1_123 = arith.constant 1 : index
    %c2_124 = arith.constant 2 : index
    %c0_125 = arith.constant 0 : index
    %c0_126 = arith.constant 0 : index
    %115 = vector.load %arg12[%c1_123, %c2_124, %c0_125, %c0_126] : memref<5x5x8x64xf32, #tpu.memory_space<vmem>>, vector<3x3x8x64xf32>
    %116 = vector.shape_cast %115 : vector<3x3x8x64xf32> to vector<72x64xf32>
    %117 = arith.truncf %116 : vector<72x64xf32> to vector<72x64xbf16>
    %c5_127 = arith.constant 5 : index
    %c0_128 = arith.constant 0 : index
    %c0_129 = arith.constant 0 : index
    %118 = vector.load %arg6[%c5_127, %c0_128, %c0_129] : memref<9x64x64xbf16, #tpu.memory_space<vmem>>, vector<1x64x64xbf16>
    %119 = vector.shape_cast %118 : vector<1x64x64xbf16> to vector<64x64xbf16>
    %cst_130 = arith.constant dense<0.000000e+00> : vector<72x64xf32>
    %120 = tpu.matmul %117, %119, %cst_130 {dimension_numbers = #tpu.dot_dimension_numbers<[1], [0], [0], [1], [0, 0, 1, 1], [], []>} : vector<72x64xbf16>, vector<64x64xbf16>, vector<72x64xf32> -> vector<72x64xf32>
    %121 = arith.addf %114, %120 : vector<72x64xf32>
    %c2_131 = arith.constant 2 : index
    %c0_132 = arith.constant 0 : index
    %c0_133 = arith.constant 0 : index
    %c0_134 = arith.constant 0 : index
    %122 = vector.load %arg12[%c2_131, %c0_132, %c0_133, %c0_134] : memref<5x5x8x64xf32, #tpu.memory_space<vmem>>, vector<3x3x8x64xf32>
    %123 = vector.shape_cast %122 : vector<3x3x8x64xf32> to vector<72x64xf32>
    %124 = arith.truncf %123 : vector<72x64xf32> to vector<72x64xbf16>
    %c6_135 = arith.constant 6 : index
    %c0_136 = arith.constant 0 : index
    %c0_137 = arith.constant 0 : index
    %125 = vector.load %arg6[%c6_135, %c0_136, %c0_137] : memref<9x64x64xbf16, #tpu.memory_space<vmem>>, vector<1x64x64xbf16>
    %126 = vector.shape_cast %125 : vector<1x64x64xbf16> to vector<64x64xbf16>
    %cst_138 = arith.constant dense<0.000000e+00> : vector<72x64xf32>
    %127 = tpu.matmul %124, %126, %cst_138 {dimension_numbers = #tpu.dot_dimension_numbers<[1], [0], [0], [1], [0, 0, 1, 1], [], []>} : vector<72x64xbf16>, vector<64x64xbf16>, vector<72x64xf32> -> vector<72x64xf32>
    %128 = arith.addf %121, %127 : vector<72x64xf32>
    %c2_139 = arith.constant 2 : index
    %c1_140 = arith.constant 1 : index
    %c0_141 = arith.constant 0 : index
    %c0_142 = arith.constant 0 : index
    %129 = vector.load %arg12[%c2_139, %c1_140, %c0_141, %c0_142] : memref<5x5x8x64xf32, #tpu.memory_space<vmem>>, vector<3x3x8x64xf32>
    %130 = vector.shape_cast %129 : vector<3x3x8x64xf32> to vector<72x64xf32>
    %131 = arith.truncf %130 : vector<72x64xf32> to vector<72x64xbf16>
    %c7_143 = arith.constant 7 : index
    %c0_144 = arith.constant 0 : index
    %c0_145 = arith.constant 0 : index
    %132 = vector.load %arg6[%c7_143, %c0_144, %c0_145] : memref<9x64x64xbf16, #tpu.memory_space<vmem>>, vector<1x64x64xbf16>
    %133 = vector.shape_cast %132 : vector<1x64x64xbf16> to vector<64x64xbf16>
    %cst_146 = arith.constant dense<0.000000e+00> : vector<72x64xf32>
    %134 = tpu.matmul %131, %133, %cst_146 {dimension_numbers = #tpu.dot_dimension_numbers<[1], [0], [0], [1], [0, 0, 1, 1], [], []>} : vector<72x64xbf16>, vector<64x64xbf16>, vector<72x64xf32> -> vector<72x64xf32>
    %135 = arith.addf %128, %134 : vector<72x64xf32>
    %c2_147 = arith.constant 2 : index
    %c2_148 = arith.constant 2 : index
    %c0_149 = arith.constant 0 : index
    %c0_150 = arith.constant 0 : index
    %136 = vector.load %arg12[%c2_147, %c2_148, %c0_149, %c0_150] : memref<5x5x8x64xf32, #tpu.memory_space<vmem>>, vector<3x3x8x64xf32>
    %137 = vector.shape_cast %136 : vector<3x3x8x64xf32> to vector<72x64xf32>
    %138 = arith.truncf %137 : vector<72x64xf32> to vector<72x64xbf16>
    %c8_151 = arith.constant 8 : index
    %c0_152 = arith.constant 0 : index
    %c0_153 = arith.constant 0 : index
    %139 = vector.load %arg6[%c8_151, %c0_152, %c0_153] : memref<9x64x64xbf16, #tpu.memory_space<vmem>>, vector<1x64x64xbf16>
    %140 = vector.shape_cast %139 : vector<1x64x64xbf16> to vector<64x64xbf16>
    %cst_154 = arith.constant dense<0.000000e+00> : vector<72x64xf32>
    %141 = tpu.matmul %138, %140, %cst_154 {dimension_numbers = #tpu.dot_dimension_numbers<[1], [0], [0], [1], [0, 0, 1, 1], [], []>} : vector<72x64xbf16>, vector<64x64xbf16>, vector<72x64xf32> -> vector<72x64xf32>
    %142 = arith.addf %135, %141 : vector<72x64xf32>
    %c0_155 = arith.constant 0 : index
    %c0_156 = arith.constant 0 : index
    %143 = vector.load %arg7[%c0_155, %c0_156] : memref<1x64xf32, #tpu.memory_space<vmem>>, vector<1x64xf32>
    %144 = vector.broadcast %143 : vector<1x64xf32> to vector<72x64xf32>
    %145 = arith.addf %142, %144 : vector<72x64xf32>
    %cst_157 = arith.constant 0.000000e+00 : f32
    %146 = vector.broadcast %cst_157 : f32 to vector<72x64xf32>
    %147 = arith.maximumf %145, %146 : vector<72x64xf32>
    %148 = vector.extract_strided_slice %147 {offsets = [0, 0], sizes = [8, 64], strides = [1, 1]} : vector<72x64xf32> to vector<8x64xf32>
    %c0_158 = arith.constant 0 : index
    %c0_159 = arith.constant 0 : index
    %149 = vector.load %arg13[%c0_158, %c0_159] : memref<8x576xf32, #tpu.memory_space<vmem>>, vector<8x64xf32>
    tpu.vector_store %arg13[%c0_158, %c0_159], %148 {strides = array<i32>} : memref<8x576xf32, #tpu.memory_space<vmem>>, vector<8x64xf32>,
    %150 = vector.extract_strided_slice %147 {offsets = [8, 0], sizes = [8, 64], strides = [1, 1]} : vector<72x64xf32> to vector<8x64xf32>
    %c0_160 = arith.constant 0 : index
    %c64 = arith.constant 64 : index
    %151 = vector.load %arg13[%c0_160, %c64] : memref<8x576xf32, #tpu.memory_space<vmem>>, vector<8x64xf32>
    tpu.vector_store %arg13[%c0_160, %c64], %150 {strides = array<i32>} : memref<8x576xf32, #tpu.memory_space<vmem>>, vector<8x64xf32>,
    %152 = vector.extract_strided_slice %147 {offsets = [16, 0], sizes = [8, 64], strides = [1, 1]} : vector<72x64xf32> to vector<8x64xf32>
    %c0_161 = arith.constant 0 : index
    %c128 = arith.constant 128 : index
    %153 = vector.load %arg13[%c0_161, %c128] : memref<8x576xf32, #tpu.memory_space<vmem>>, vector<8x64xf32>
    tpu.vector_store %arg13[%c0_161, %c128], %152 {strides = array<i32>} : memref<8x576xf32, #tpu.memory_space<vmem>>, vector<8x64xf32>,
    %154 = vector.extract_strided_slice %147 {offsets = [24, 0], sizes = [8, 64], strides = [1, 1]} : vector<72x64xf32> to vector<8x64xf32>
    %c0_162 = arith.constant 0 : index
    %c192 = arith.constant 192 : index
    %155 = vector.load %arg13[%c0_162, %c192] : memref<8x576xf32, #tpu.memory_space<vmem>>, vector<8x64xf32>
    tpu.vector_store %arg13[%c0_162, %c192], %154 {strides = array<i32>} : memref<8x576xf32, #tpu.memory_space<vmem>>, vector<8x64xf32>,
    %156 = vector.extract_strided_slice %147 {offsets = [32, 0], sizes = [8, 64], strides = [1, 1]} : vector<72x64xf32> to vector<8x64xf32>
    %c0_163 = arith.constant 0 : index
    %c256 = arith.constant 256 : index
    %157 = vector.load %arg13[%c0_163, %c256] : memref<8x576xf32, #tpu.memory_space<vmem>>, vector<8x64xf32>
    tpu.vector_store %arg13[%c0_163, %c256], %156 {strides = array<i32>} : memref<8x576xf32, #tpu.memory_space<vmem>>, vector<8x64xf32>,
    %158 = vector.extract_strided_slice %147 {offsets = [40, 0], sizes = [8, 64], strides = [1, 1]} : vector<72x64xf32> to vector<8x64xf32>
    %c0_164 = arith.constant 0 : index
    %c320 = arith.constant 320 : index
    %159 = vector.load %arg13[%c0_164, %c320] : memref<8x576xf32, #tpu.memory_space<vmem>>, vector<8x64xf32>
    tpu.vector_store %arg13[%c0_164, %c320], %158 {strides = array<i32>} : memref<8x576xf32, #tpu.memory_space<vmem>>, vector<8x64xf32>,
    %160 = vector.extract_strided_slice %147 {offsets = [48, 0], sizes = [8, 64], strides = [1, 1]} : vector<72x64xf32> to vector<8x64xf32>
    %c0_165 = arith.constant 0 : index
    %c384 = arith.constant 384 : index
    %161 = vector.load %arg13[%c0_165, %c384] : memref<8x576xf32, #tpu.memory_space<vmem>>, vector<8x64xf32>
    tpu.vector_store %arg13[%c0_165, %c384], %160 {strides = array<i32>} : memref<8x576xf32, #tpu.memory_space<vmem>>, vector<8x64xf32>,
    %162 = vector.extract_strided_slice %147 {offsets = [56, 0], sizes = [8, 64], strides = [1, 1]} : vector<72x64xf32> to vector<8x64xf32>
    %c0_166 = arith.constant 0 : index
    %c448 = arith.constant 448 : index
    %163 = vector.load %arg13[%c0_166, %c448] : memref<8x576xf32, #tpu.memory_space<vmem>>, vector<8x64xf32>
    tpu.vector_store %arg13[%c0_166, %c448], %162 {strides = array<i32>} : memref<8x576xf32, #tpu.memory_space<vmem>>, vector<8x64xf32>,
    %164 = vector.extract_strided_slice %147 {offsets = [64, 0], sizes = [8, 64], strides = [1, 1]} : vector<72x64xf32> to vector<8x64xf32>
    %c0_167 = arith.constant 0 : index
    %c512 = arith.constant 512 : index
    %165 = vector.load %arg13[%c0_167, %c512] : memref<8x576xf32, #tpu.memory_space<vmem>>, vector<8x64xf32>
    tpu.vector_store %arg13[%c0_167, %c512], %164 {strides = array<i32>} : memref<8x576xf32, #tpu.memory_space<vmem>>, vector<8x64xf32>,
    %c0_168 = arith.constant 0 : index
    %c0_169 = arith.constant 0 : index
    %166 = vector.load %arg13[%c0_168, %c0_169] : memref<8x576xf32, #tpu.memory_space<vmem>>, vector<8x576xf32>
    %167 = arith.truncf %166 : vector<8x576xf32> to vector<8x576xbf16>
    %c0_170 = arith.constant 0 : index
    %c0_171 = arith.constant 0 : index
    %168 = vector.load %arg8[%c0_170, %c0_171] : memref<576x32xbf16, #tpu.memory_space<vmem>>, vector<576x32xbf16>
    %cst_172 = arith.constant dense<0.000000e+00> : vector<8x32xf32>
    %169 = tpu.matmul %167, %168, %cst_172 {dimension_numbers = #tpu.dot_dimension_numbers<[1], [0], [0], [1], [0, 0, 1, 1], [], []>} : vector<8x576xbf16>, vector<576x32xbf16>, vector<8x32xf32> -> vector<8x32xf32>
    %c0_173 = arith.constant 0 : index
    %c0_174 = arith.constant 0 : index
    %170 = vector.load %arg9[%c0_173, %c0_174] : memref<1x32xf32, #tpu.memory_space<vmem>>, vector<1x32xf32>
    %171 = vector.broadcast %170 : vector<1x32xf32> to vector<8x32xf32>
    %172 = arith.addf %169, %171 : vector<8x32xf32>
    %cst_175 = arith.constant 0.000000e+00 : f32
    %173 = vector.broadcast %cst_175 : f32 to vector<8x32xf32>
    %174 = arith.maximumf %172, %173 : vector<8x32xf32>
    %c0_176 = arith.constant 0 : index
    %c0_177 = arith.constant 0 : index
    %175 = vector.load %arg10[%c0_176, %c0_177] : memref<8x32xf32, #tpu.memory_space<vmem>>, vector<8x32xf32>
    tpu.vector_store %arg10[%c0_176, %c0_177], %174 {strides = array<i32>} : memref<8x32xf32, #tpu.memory_space<vmem>>, vector<8x32xf32>,
    return
  }
  func.func @transform_0(%arg0: i32) -> (i32, i32, i32, i32) {
    %c0_i32 = arith.constant 0 : i32
    %c0_i32_0 = arith.constant 0 : i32
    %c0_i32_1 = arith.constant 0 : i32
    %c0_i32_2 = arith.constant 0 : i32
    return %c0_i32, %c0_i32_0, %arg0, %c0_i32_1 : i32, i32, i32, i32
  }
  func.func @transform_1(%arg0: i32) -> (i32, i32) {
    %c0_i32 = arith.constant 0 : i32
    %c0_i32_0 = arith.constant 0 : i32
    %c0_i32_1 = arith.constant 0 : i32
    return %c0_i32, %c0_i32_0 : i32, i32
  }
  func.func @transform_2(%arg0: i32) -> (i32, i32) {
    %c0_i32 = arith.constant 0 : i32
    %c0_i32_0 = arith.constant 0 : i32
    %c0_i32_1 = arith.constant 0 : i32
    return %c0_i32, %c0_i32_0 : i32, i32
  }
  func.func @transform_3(%arg0: i32) -> (i32, i32, i32) {
    %c0_i32 = arith.constant 0 : i32
    %c0_i32_0 = arith.constant 0 : i32
    %c0_i32_1 = arith.constant 0 : i32
    %c0_i32_2 = arith.constant 0 : i32
    return %c0_i32, %c0_i32_0, %c0_i32_1 : i32, i32, i32
  }
  func.func @transform_4(%arg0: i32) -> (i32, i32) {
    %c0_i32 = arith.constant 0 : i32
    %c0_i32_0 = arith.constant 0 : i32
    %c0_i32_1 = arith.constant 0 : i32
    return %c0_i32, %c0_i32_0 : i32, i32
  }
  func.func @transform_5(%arg0: i32) -> (i32, i32, i32) {
    %c0_i32 = arith.constant 0 : i32
    %c0_i32_0 = arith.constant 0 : i32
    %c0_i32_1 = arith.constant 0 : i32
    %c0_i32_2 = arith.constant 0 : i32
    return %c0_i32, %c0_i32_0, %c0_i32_1 : i32, i32, i32
  }
  func.func @transform_6(%arg0: i32) -> (i32, i32) {
    %c0_i32 = arith.constant 0 : i32
    %c0_i32_0 = arith.constant 0 : i32
    %c0_i32_1 = arith.constant 0 : i32
    return %c0_i32, %c0_i32_0 : i32, i32
  }
  func.func @transform_7(%arg0: i32) -> (i32, i32) {
    %c0_i32 = arith.constant 0 : i32
    %c0_i32_0 = arith.constant 0 : i32
    %c0_i32_1 = arith.constant 0 : i32
    return %c0_i32, %c0_i32_0 : i32, i32
  }
  func.func @transform_8(%arg0: i32) -> (i32, i32) {
    %c0_i32 = arith.constant 0 : i32
    %c0_i32_0 = arith.constant 0 : i32
    %c0_i32_1 = arith.constant 0 : i32
    return %c0_i32, %c0_i32_0 : i32, i32
  }
  func.func @transform_9(%arg0: i32) -> (i32, i32) {
    %c0_i32 = arith.constant 0 : i32
    %c0_i32_0 = arith.constant 0 : i32
    return %arg0, %c0_i32 : i32, i32
  }
}

</mosaic_0001>

<bundles_post_ra>
// kernel: encoder2_forward.1
= control target key start
LH: loop header
LB: loop body
LE: loop exit
PB: predicated region body
PF: predicated region fallthrough
CT: control target
= control target key end

     0   :  { %v8774_v0 = vmov 0.0   ;;  %vm6298_vm0 = vmmov 0   ;;  %vm146_vm1 = vcmask 523264   ;;  %vm503_vm2 = vcmask 261120   ;;  %s6299_s14 = smov 64   ;;  %s8758_s1 = inlined_call_operand.vmem [shape: bf16[64,32], index: 1, kind: input, shape index: {}]   ;;  %s8759_s0 = inlined_call_operand.vmem [shape: f32[7,7,8,64], index: 0, kind: input, shape index: {}]   ;;  %s8760_s3 = inlined_call_operand.vmem [shape: bf16[9,32,64], index: 3, kind: input, shape index: {}]   ;;  %s8761_s2 = inlined_call_operand.vmem [shape: f32[1,32], index: 2, kind: input, shape index: {}]   ;;  %s8762_s5 = inlined_call_operand.vmem [shape: bf16[9,64,64], index: 5, kind: input, shape index: {}]   ;;  %s8763_s4 = inlined_call_operand.vmem [shape: f32[1,64], index: 4, kind: input, shape index: {}]   ;;  %s8764_s7 = inlined_call_operand.vmem [shape: bf16[576,32], index: 7, kind: input, shape index: {}]   ;;  %s8765_s6 = inlined_call_operand.vmem [shape: f32[1,64], index: 6, kind: input, shape index: {}]   ;;  %s8766_s8 = inlined_call_operand.vmem [shape: f32[1,32], index: 8, kind: input, shape index: {}]   ;;  %s8767_s9 = inlined_call_operand.vmem [shape: f32[8,32], index: 9, kind: output, shape index: {}]  }
   0x1   :  { %5324 = vmatprep.subr.bf16.mxu0 %v8774_v0  ;;  %v6203_v1 = vld [vmem:[%s8758_s1] sm:$0xff]   ;;  %5332 = vmatprep.mubr.msk.bf16.mxu0 %vm6298_vm0, %v8774_v0  ;;  %v6204_v2 = vld [vmem:[%s8758_s1 + $0x8] sm:$0xff]   ;;  %v6205_v3 = vld [vmem:[%s8758_s1 + $0x10] sm:$0xff]   ;;  %vm4193_vm3 = vcmask 1048064  }
   0x2   :  { %5432 = vmatprep.subr.bf16.mxu1 %v8774_v0  ;;  %5436 = vmatprep.mubr.msk.bf16.mxu1 %vm6298_vm0, %v8774_v0  ;;  %v6206_v4 = vld [vmem:[%s8758_s1 + $0x18] sm:$0xff]   ;;  %v33_v5 = vld [vmem:[%s8759_s0] sm:$0xff]  ;;  %v34_v6 = vld [vmem:[%s8759_s0 + $0x8] sm:$0xff] }
   0x3   :  { %5325 = vmatpush3.bf16.msra.mxu0 %v6203_v1  ;;  %v82_v7 = vpack.c.bf16 %v34_v6, %v33_v5  ;;  %v35_v8 = vld [vmem:[%s8759_s0 + $0x10] sm:$0xff]  ;;  %v36_v9 = vld [vmem:[%s8759_s0 + $0x18] sm:$0xff]  ;;  %v37_v11 = vld [vmem:[%s8759_s0 + $0x20] sm:$0xff] }
   0x4   :  { %5326 = vmatprep.subr.bf16.mxu0 %v8774_v0  ;;  %v83_v10 = vpack.c.bf16 %v36_v9, %v35_v8  ;;  %v38_v12 = vld [vmem:[%s8759_s0 + $0x28] sm:$0xff]  ;;  %v39_v14 = vld [vmem:[%s8759_s0 + $0x30] sm:$0xff]  ;;  %v40_v15 = vld [vmem:[%s8759_s0 + $0x38] sm:$0xff] }
   0x5   :  { %v84_v13 = vpack.c.bf16 %v38_v12, %v37_v11  ;;  %v6207_v16 = vld [vmem:[%s8760_s3 + $0x20] sm:$0xff]   ;;  %v85_v17 = vpack.c.bf16 %v40_v15, %v39_v14  ;;  %v42_v19 = vld [vmem:[%s8759_s0 + $0x48] sm:$0xff]  ;;  %v43_v21 = vld [vmem:[%s8759_s0 + $0x50] sm:$0xff] }
   0x6   :  { %v41_v18 = vld [vmem:[%s8759_s0 + $0x40] sm:$0xff]  ;;  %v44_v22 = vld [vmem:[%s8759_s0 + $0x58] sm:$0xff]  ;;  %v46_v25 = vld [vmem:[%s8759_s0 + $0x68] sm:$0xff] }
   0x7   :  { %5327 = vmatpush3.bf16.msra.mxu0 %v6204_v2  ;;  %v86_v20 = vpack.c.bf16 %v42_v19, %v41_v18  ;;  %v87_v23 = vpack.c.bf16 %v44_v22, %v43_v21  ;;  %v45_v24 = vld [vmem:[%s8759_s0 + $0x60] sm:$0xff]  ;;  %v47_v27 = vld [vmem:[%s8759_s0 + $0x70] sm:$0xff]  ;;  %v48_v28 = vld [vmem:[%s8759_s0 + $0x78] sm:$0xff] }
   0x8   :  { %5328 = vmatprep.subr.bf16.mxu0 %v8774_v0  ;;  %v88_v26 = vpack.c.bf16 %v46_v25, %v45_v24  ;;  %v89_v29 = vpack.c.bf16 %v48_v28, %v47_v27  ;;  %v49_v30 = vld [vmem:[%s8759_s0 + $0x80] sm:$0xff]  ;;  %v50_v31 = vld [vmem:[%s8759_s0 + $0x88] sm:$0xff]  ;;  %v51_v33 = vld [vmem:[%s8759_s0 + $0x90] sm:$0xff] }
   0x9   :  { %v90_v32 = vpack.c.bf16 %v50_v31, %v49_v30  ;;  %v52_v34 = vld [vmem:[%s8759_s0 + $0x98] sm:$0xff]  ;;  %v53_v36 = vld [vmem:[%s8759_s0 + $0xa0] sm:$0xff]  ;;  %v54_v37 = vld [vmem:[%s8759_s0 + $0xa8] sm:$0xff] }
   0xa   :  { %v91_v35 = vpack.c.bf16 %v52_v34, %v51_v33  ;;  %v92_v38 = vpack.c.bf16 %v54_v37, %v53_v36  ;;  %v55_v39 = vld [vmem:[%s8759_s0 + $0xb0] sm:$0xff]  ;;  %v56_v40 = vld [vmem:[%s8759_s0 + $0xb8] sm:$0xff]  ;;  %v57_v42 = vld [vmem:[%s8759_s0 + $0xc0] sm:$0xff] }
   0xb   :  { %5329 = vmatpush3.bf16.msra.mxu0 %v6205_v3  ;;  %v93_v41 = vpack.c.bf16 %v56_v40, %v55_v39  ;;  %v58_v43 = vld [vmem:[%s8759_s0 + $0xc8] sm:$0xff]  ;;  %v59_v45 = vld [vmem:[%s8759_s0 + $0xd0] sm:$0xff]  ;;  %v60_v46 = vld [vmem:[%s8759_s0 + $0xd8] sm:$0xff] }
   0xc   :  { %5330 = vmatprep.subr.bf16.mxu0 %v8774_v0  ;;  %v94_v44 = vpack.c.bf16 %v58_v43, %v57_v42  ;;  %v6208_v47 = vld [vmem:[%s8760_s3 + $0x10] sm:$0xff]   ;;  %v95_v48 = vpack.c.bf16 %v60_v46, %v59_v45  ;;  %v6209_v49 = vld [vmem:[%s8760_s3 + $0x18] sm:$0xff]   ;;  %v6210_v50 = vld [vmem:[%s8760_s3 + $0x28] sm:$0xff]  }
   0xd   :  { %5433 = vmatpush3.bf16.msra.mxu1 %v6208_v47  ;;  %v61_v51 = vld [vmem:[%s8759_s0 + $0xe0] sm:$0xff]  ;;  %v62_v52 = vld [vmem:[%s8759_s0 + $0xe8] sm:$0xff]  ;;  %v63_v54 = vld [vmem:[%s8759_s0 + $0xf0] sm:$0xff] }
   0xe   :  { %5434 = vmatprep.subr.bf16.mxu1 %v8774_v0  ;;  %v96_v53 = vpack.c.bf16 %v62_v52, %v61_v51  ;;  %v64_v55 = vld [vmem:[%s8759_s0 + $0xf8] sm:$0xff]  ;;  %v65_v57 = vld [vmem:[%s8759_s0 + $0x100] sm:$0xff]  ;;  %v66_v58 = vld [vmem:[%s8759_s0 + $0x108] sm:$0xff] }
   0xf   :  { %5331 = vmatpush3.bf16.msra.mxu0 %v6206_v4  ;;  %v97_v56 = vpack.c.bf16 %v64_v55, %v63_v54  ;;  %v98_v59 = vpack.c.bf16 %v66_v58, %v65_v57  ;;  %v67_v60 = vld [vmem:[%s8759_s0 + $0x110] sm:$0xff]  ;;  %v68_v61 = vld [vmem:[%s8759_s0 + $0x118] sm:$0xff]  ;;  %v69_v63 = vld [vmem:[%s8759_s0 + $0x120] sm:$0xff] }
  0x10   :  { %5544 = vmatprep.subr.bf16.mxu0 %v8774_v0  ;;  %v99_v62 = vpack.c.bf16 %v68_v61, %v67_v60  ;;  %v70_v1 = vld [vmem:[%s8759_s0 + $0x128] sm:$0xff]  ;;  %v71_v3 = vld [vmem:[%s8759_s0 + $0x130] sm:$0xff]  ;;  %v72_v4 = vld [vmem:[%s8759_s0 + $0x138] sm:$0xff] }
  0x11   :  { %5435 = vmatpush3.bf16.msra.mxu1 %v6209_v49  ;;  %v100_v2 = vpack.c.bf16 %v70_v1, %v69_v63  ;;  %v101_v5 = vpack.c.bf16 %v72_v4, %v71_v3  ;;  %v73_v6 = vld [vmem:[%s8759_s0 + $0x140] sm:$0xff]  ;;  %v75_v9 = vld [vmem:[%s8759_s0 + $0x150] sm:$0xff]  ;;  %v6212_v52 = vld [vmem:[%s8760_s3 + $0x8] sm:$0xff]  }
  0x12   :  { %5333 = vmatmul.mubr.msk.bf16.vlgmr.msra.gmra.mrb[0].mxu0 %vm146_vm1, %v82_v7  ;;  %5488 = vmatprep.subr.bf16.mxu1 %v8774_v0  ;;  %v74_v7 = vld [vmem:[%s8759_s0 + $0x148] sm:$0xff]  ;;  %v77_v12 = vld [vmem:[%s8759_s0 + $0x160] sm:$0xff]  ;;  %v79_v15 = vld [vmem:[%s8759_s0 + $0x170] sm:$0xff] }
  0x13   :  { %5336 = vmatprep.mubr.msk.bf16.mxu0 %vm6298_vm0, %v8774_v0  ;;  %5545 = vmatpush3.bf16.msra.mxu0 %v6207_v16  ;;  %v102_v8 = vpack.c.bf16 %v74_v7, %v73_v6  ;;  %v80_v16 = vld [vmem:[%s8759_s0 + $0x178] sm:$0xff]  ;;  %v81_v18 = vld [vmem:[%s8759_s0 + $0x180] sm:$0xff]  ;;  %v6214_v57 = vld [vmem:[%s8760_s3 + $0x48] sm:$0xff]  }
  0x14   :  { %5546 = vmatprep.subr.bf16.mxu0 %v8774_v0  ;;  %v106_v19 = vpack.c.bf16 %v81_v18, %v81_v18  ;;  %v6211_v46 = vld [vmem:[%s8760_s3] sm:$0xff]  }
  0x17   :  { %5547 = vmatpush3.bf16.msra.mxu0 %v6210_v50 }
  0x18   :  { %5656 = vmatprep.subr.bf16.mxu0 %v8774_v0 }
  0x1a   :  { %5337 = vmatmul.mubr.msk.bf16.gmra.mrb[4].mxu0 %vm146_vm1, %v83_v10  ;;  %v76_v10 = vld [vmem:[%s8759_s0 + $0x158] sm:$0xff] }
  0x1b   :  { %5340 = vmatprep.mubr.msk.bf16.mxu0 %vm6298_vm0, %v8774_v0  ;;  %v103_v11 = vpack.c.bf16 %v76_v10, %v75_v9 }
  0x22   :  { %5341 = vmatmul.mubr.msk.bf16.gmra.mrb[8].mxu0 %vm146_vm1, %v84_v13  ;;  %v78_v13 = vld [vmem:[%s8759_s0 + $0x168] sm:$0xff] }
  0x23   :  { %5344 = vmatprep.mubr.msk.bf16.mxu0 %vm6298_vm0, %v8774_v0  ;;  %v104_v14 = vpack.c.bf16 %v78_v13, %v77_v12 }
  0x2a   :  { %5345 = vmatmul.mubr.msk.bf16.gmra.mrb[12].mxu0 %vm146_vm1, %v85_v17  ;;  %v105_v17 = vpack.c.bf16 %v80_v16, %v79_v15 }
  0x2b   :  { %5348 = vmatprep.mubr.msk.bf16.mxu0 %vm6298_vm0, %v8774_v0 }
  0x32   :  { %5349 = vmatmul.mubr.msk.bf16.gmra.mrb[16].mxu0 %vm146_vm1, %v86_v20  ;;  %v6613_v20 = vld [vmem:[%s8761_s2] ss:$0 sm:$0xff] }
  0x33   :  { %5352 = vmatprep.mubr.msk.bf16.mxu0 %vm6298_vm0, %v8774_v0 }
  0x3a   :  { %5353 = vmatmul.mubr.msk.bf16.gmra.mrb[20].mxu0 %vm146_vm1, %v87_v23 }
  0x3b   :  { %5356 = vmatprep.mubr.msk.bf16.mxu0 %vm6298_vm0, %v8774_v0 }
  0x42   :  { %5357 = vmatmul.mubr.msk.bf16.gmra.mrb[24].mxu0 %vm146_vm1, %v88_v26 }
  0x43   :  { %5360 = vmatprep.mubr.msk.bf16.mxu0 %vm6298_vm0, %v8774_v0 }
  0x4a   :  { %5361 = vmatmul.mubr.msk.bf16.gmra.mrb[28].mxu0 %vm146_vm1, %v89_v29 }
  0x4b   :  { %5364 = vmatprep.mubr.msk.bf16.mxu0 %vm6298_vm0, %v8774_v0 }
  0x52   :  { %5365 = vmatmul.mubr.msk.bf16.gmra.mrb[32].mxu0 %vm146_vm1, %v90_v32 }
  0x53   :  { %5368 = vmatprep.mubr.msk.bf16.mxu0 %vm6298_vm0, %v8774_v0 }
  0x5a   :  { %5369 = vmatmul.mubr.msk.bf16.gmra.mrb[36].mxu0 %vm146_vm1, %v91_v35 }
  0x5b   :  { %5372 = vmatprep.mubr.msk.bf16.mxu0 %vm6298_vm0, %v8774_v0 }
  0x62   :  { %5373 = vmatmul.mubr.msk.bf16.gmra.mrb[40].mxu0 %vm146_vm1, %v92_v38 }
  0x63   :  { %5376 = vmatprep.mubr.msk.bf16.mxu0 %vm6298_vm0, %v8774_v0 }
  0x6a   :  { %5377 = vmatmul.mubr.msk.bf16.gmra.mrb[44].mxu0 %vm146_vm1, %v93_v41 }
  0x6b   :  { %5380 = vmatprep.mubr.msk.bf16.mxu0 %vm6298_vm0, %v8774_v0 }
  0x72   :  { %5381 = vmatmul.mubr.msk.bf16.gmra.mrb[48].mxu0 %vm146_vm1, %v94_v44 }
  0x73   :  { %5384 = vmatprep.mubr.msk.bf16.mxu0 %vm6298_vm0, %v8774_v0 }
  0x7a   :  { %5385 = vmatmul.mubr.msk.bf16.gmra.mrb[52].mxu0 %vm146_vm1, %v95_v48 }
  0x7b   :  { %5388 = vmatprep.mubr.msk.bf16.mxu0 %vm6298_vm0, %v8774_v0 }
  0x82   :  { %5389 = vmatmul.mubr.msk.bf16.gmra.mrb[56].mxu0 %vm146_vm1, %v96_v53  ;;  %v6213_v53 = vld [vmem:[%s8760_s3 + $0x40] sm:$0xff]  }
  0x83   :  { %5392 = vmatprep.mubr.msk.bf16.mxu0 %vm6298_vm0, %v8774_v0 }
  0x8a   :  { %5393 = vmatmul.mubr.msk.bf16.gmra.mrb[60].mxu0 %vm146_vm1, %v97_v56 }
  0x8b   :  { %5396 = vmatprep.mubr.msk.bf16.mxu0 %vm6298_vm0, %v8774_v0 }
  0x92   :  { %5397 = vmatmul.mubr.msk.bf16.gmra.mrb[64].mxu0 %vm146_vm1, %v98_v59 }
  0x93   :  { %5400 = vmatprep.mubr.msk.bf16.mxu0 %vm6298_vm0, %v8774_v0 }
  0x9a   :  { %5401 = vmatmul.mubr.msk.bf16.gmra.mrb[68].mxu0 %vm146_vm1, %v99_v62 }
  0x9b   :  { %5404 = vmatprep.mubr.msk.bf16.mxu0 %vm6298_vm0, %v8774_v0 }
  0xa2   :  { %5405 = vmatmul.mubr.msk.bf16.gmra.mrb[72].mxu0 %vm146_vm1, %v100_v2 }
  0xa3   :  { %5408 = vmatprep.mubr.msk.bf16.mxu0 %vm6298_vm0, %v8774_v0 }
  0xaa   :  { %5409 = vmatmul.mubr.msk.bf16.gmra.mrb[76].mxu0 %vm146_vm1, %v101_v5 }
  0xab   :  { %5412 = vmatprep.mubr.msk.bf16.mxu0 %vm6298_vm0, %v8774_v0 }
  0xb2   :  { %5413 = vmatmul.mubr.msk.bf16.gmra.mrb[80].mxu0 %vm146_vm1, %v102_v8 }
  0xb3   :  { %5416 = vmatprep.mubr.msk.bf16.mxu0 %vm6298_vm0, %v8774_v0 }
  0xba   :  { %5417 = vmatmul.mubr.msk.bf16.gmra.mrb[84].mxu0 %vm146_vm1, %v103_v11 }
  0xbb   :  { %5420 = vmatprep.mubr.msk.bf16.mxu0 %vm6298_vm0, %v8774_v0 }
  0xc2   :  { %5421 = vmatmul.mubr.msk.bf16.gmra.mrb[88].mxu0 %vm146_vm1, %v104_v14 }
  0xc3   :  { %5424 = vmatprep.mubr.msk.bf16.mxu0 %vm6298_vm0, %v8774_v0 }
  0xca   :  { %5425 = vmatmul.mubr.msk.bf16.gmra.mrb[92].mxu0 %vm146_vm1, %v105_v17 }
  0xcb   :  { %5428 = vmatprep.mubr.msk.bf16.mxu0 %vm6298_vm0, %v8774_v0 }
  0xd2   :  { %5429 = vmatmul.mubr.msk.bf16.gmra.mrb[96].mxu0 %vm146_vm1, %v106_v19 }
  0xd3   :  { %5548 = vmatprep.mubr.msk.bf16.mxu0 %vm6298_vm0, %v8774_v0 }
  0xe5   :  { %v256_v21 = vpop.f32.mrb[0].mxu0 }
  0xe6   :  { %v257_v22 = vadd.f32 %v6613_v20, %v256_v21  ;;  %v5334_v23 = vpop.f32.mrb[1].mxu0 }
  0xe7   :  { %v259_v24 = vpop.f32.mrb[2].mxu0 }
  0xe8   :  { %v454_v25 = vmax.f32 %v257_v22, 0.0  ;;  %v260_v26 = vadd.f32 %v6613_v20, %v259_v24  ;;  %v5335_v27 = vpop.f32.mrb[3].mxu0 }
  0xea   :  { %504 = vst.msk [vmem:[#allocation2] sm:$0xff] %vm503_vm2, %v454_v25  ;;  %v455_v28 = vmax.f32 %v260_v26, 0.0 }
  0xec   :  { %505 = vst.msk [vmem:[#allocation2 + $0x8] sm:$0xff] %vm503_vm2, %v455_v28 }
  0xed   :  { %v264_v29 = vpop.f32.mrb[4].mxu0 }
  0xee   :  { %v265_v30 = vadd.f32 %v6613_v20, %v264_v29  ;;  %v5338_v31 = vpop.f32.mrb[5].mxu0 }
  0xef   :  { %v267_v32 = vpop.f32.mrb[6].mxu0 }
  0xf0   :  { %v456_v33 = vmax.f32 %v265_v30, 0.0  ;;  %v268_v34 = vadd.f32 %v6613_v20, %v267_v32  ;;  %v5339_v35 = vpop.f32.mrb[7].mxu0 }
  0xf2   :  { %506 = vst.msk [vmem:[#allocation2 + $0x10] sm:$0xff] %vm503_vm2, %v456_v33  ;;  %v457_v36 = vmax.f32 %v268_v34, 0.0 }
  0xf3   :  { %v6625_v44 = vld [vmem:[#allocation2 + $0x8] sm:$0xff] }
  0xf4   :  { %507 = vst.msk [vmem:[#allocation2 + $0x18] sm:$0xff] %vm503_vm2, %v457_v36 }
  0xf5   :  { %v272_v37 = vpop.f32.mrb[8].mxu0 }
  0xf6   :  { %v273_v38 = vadd.f32 %v6613_v20, %v272_v37  ;;  %v5342_v39 = vpop.f32.mrb[9].mxu0 }
  0xf7   :  { %v275_v40 = vpop.f32.mrb[10].mxu0 }
  0xf8   :  { %v458_v41 = vmax.f32 %v273_v38, 0.0  ;;  %v276_v42 = vadd.f32 %v6613_v20, %v275_v40  ;;  %v5343_v43 = vpop.f32.mrb[11].mxu0 }
  0xf9   :  { %v597_v45 = vld [vmem:[#allocation2 + $0x10] sm:$0xff] }
  0xfa   :  { %508 = vst.msk [vmem:[#allocation2 + $0x20] sm:$0xff] %vm503_vm2, %v458_v41  ;;  %v459_v47 = vmax.f32 %v276_v42, 0.0  ;;  %v621_v48 = vpack.c.bf16 %v597_v45, %v6625_v44 }
  0xfb   :  { %v1015_v49 = vld [vmem:[#allocation2 + $0x18] sm:$0xff] }
  0xfc   :  { %509 = vst.msk [vmem:[#allocation2 + $0x28] sm:$0xff] %vm503_vm2, %v459_v47  ;;  %5437 = vmatmul.mubr.msk.bf16.vlgmr.msra.gmra.mrb[0].mxu1 %vm503_vm2, %v621_v48  ;;  %v6634_v50 = vpack.c.bf16 %v1015_v49, %v597_v45 }
  0xfd   :  { %v280_v51 = vpop.f32.mrb[12].mxu0  ;;  %5440 = vmatprep.mubr.msk.bf16.mxu1 %vm6298_vm0, %v8774_v0  ;;  %5489 = vmatpush3.bf16.msra.mxu1 %v6211_v46 }
  0xfe   :  { %v281_v54 = vadd.f32 %v6613_v20, %v280_v51  ;;  %v5346_v55 = vpop.f32.mrb[13].mxu0  ;;  %5549 = vmatmul.mubr.msk.bf16.vlgmr.msra.gmra.mrb[100].mxu0 %vm503_vm2, %v6634_v50  ;;  %5490 = vmatprep.subr.bf16.mxu1 %v8774_v0 }
  0xff   :  { %v283_v56 = vpop.f32.mrb[14].mxu0  ;;  %5552 = vmatprep.mubr.msk.bf16.mxu0 %vm6298_vm0, %v8774_v0  ;;  %5657 = vmatpush3.bf16.msra.mxu0 %v6213_v53 }
 0x100   :  { %v460_v58 = vmax.f32 %v281_v54, 0.0  ;;  %v284_v59 = vadd.f32 %v6613_v20, %v283_v56  ;;  %v5347_v60 = vpop.f32.mrb[15].mxu0  ;;  %5658 = vmatprep.subr.bf16.mxu0 %v8774_v0 }
 0x101   :  { %v6655_v61 = vld [vmem:[#allocation2 + $0x20] sm:$0xff]  ;;  %5491 = vmatpush3.bf16.msra.mxu1 %v6212_v52 }
 0x102   :  { %510 = vst.msk [vmem:[#allocation2 + $0x30] sm:$0xff] %vm503_vm2, %v460_v58  ;;  %v461_v62 = vmax.f32 %v284_v59, 0.0  ;;  %v622_v63 = vpack.c.bf16 %v6655_v61, %v1015_v49  ;;  %5600 = vmatprep.subr.bf16.mxu1 %v8774_v0 }
 0x103   :  { %v1017_v1 = vld [vmem:[#allocation2 + $0x28] sm:$0xff]  ;;  %5659 = vmatpush3.bf16.msra.mxu0 %v6214_v57 }
 0x104   :  { %511 = vst.msk [vmem:[#allocation2 + $0x38] sm:$0xff] %vm503_vm2, %v461_v62  ;;  %5441 = vmatmul.mubr.msk.bf16.gmra.mrb[4].mxu1 %vm503_vm2, %v622_v63  ;;  %v1040_v2 = vpack.c.bf16 %v1017_v1, %v6655_v61  ;;  %5768 = vmatprep.subr.bf16.mxu0 %v8774_v0 }
 0x105   :  { %v288_v3 = vpop.f32.mrb[16].mxu0  ;;  %5444 = vmatprep.mubr.msk.bf16.mxu1 %vm6298_vm0, %v8774_v0 }
 0x106   :  { %v289_v4 = vadd.f32 %v6613_v20, %v288_v3  ;;  %v5350_v5 = vpop.f32.mrb[17].mxu0  ;;  %5553 = vmatmul.mubr.msk.bf16.gmra.mrb[104].mxu0 %vm503_vm2, %v1040_v2 }
 0x107   :  { %v291_v6 = vpop.f32.mrb[18].mxu0  ;;  %5556 = vmatprep.mubr.msk.bf16.mxu0 %vm6298_vm0, %v8774_v0 }
 0x108   :  { %v462_v7 = vmax.f32 %v289_v4, 0.0  ;;  %v292_v8 = vadd.f32 %v6613_v20, %v291_v6  ;;  %v5351_v9 = vpop.f32.mrb[19].mxu0 }
 0x109   :  { %v1018_v24 = vld [vmem:[#allocation2 + $0x30] sm:$0xff] }
 0x10a   :  { %512 = vst.msk [vmem:[#allocation2 + $0x40] sm:$0xff] %vm503_vm2, %v462_v7  ;;  %v463_v10 = vmax.f32 %v292_v8, 0.0 }
 0x10b   :  { %v6677_v19 = vld [vmem:[#allocation2 + $0x38] sm:$0xff] }
 0x10c   :  { %513 = vst.msk [vmem:[#allocation2 + $0x48] sm:$0xff] %vm503_vm2, %v463_v10 }
 0x10d   :  { %v296_v11 = vpop.f32.mrb[20].mxu0 }
 0x10e   :  { %v297_v12 = vadd.f32 %v6613_v20, %v296_v11  ;;  %v5354_v13 = vpop.f32.mrb[21].mxu0 }
 0x10f   :  { %v299_v14 = vpop.f32.mrb[22].mxu0 }
 0x110   :  { %v464_v15 = vmax.f32 %v297_v12, 0.0  ;;  %v300_v16 = vadd.f32 %v6613_v20, %v299_v14  ;;  %v5355_v17 = vpop.f32.mrb[23].mxu0 }
 0x111   :  { %v6675_v18 = vld [vmem:[#allocation2 + $0x40] sm:$0xff] }
 0x112   :  { %514 = vst.msk [vmem:[#allocation2 + $0x50] sm:$0xff] %vm503_vm2, %v464_v15  ;;  %v465_v21 = vmax.f32 %v300_v16, 0.0  ;;  %v623_v22 = vpack.c.bf16 %v6675_v18, %v1017_v1  ;;  %v1295_v23 = vpack.c.bf16 %v6675_v18, %v6677_v19 }
 0x113   :  { %v1019_v25 = vld [vmem:[#allocation2 + $0x48] sm:$0xff] }
 0x114   :  { %515 = vst.msk [vmem:[#allocation2 + $0x58] sm:$0xff] %vm503_vm2, %v465_v21  ;;  %5445 = vmatmul.mubr.msk.bf16.gmra.mrb[8].mxu1 %vm503_vm2, %v623_v22  ;;  %v1041_v26 = vpack.c.bf16 %v1019_v25, %v1018_v24  ;;  %v6686_v27 = vpack.c.bf16 %v1019_v25, %v6675_v18  ;;  %v6222_v18 = vld [vmem:[%s8760_s3 + $0x88] sm:$0xff]  }
 0x115   :  { %v304_v28 = vpop.f32.mrb[24].mxu0  ;;  %5448 = vmatprep.mubr.msk.bf16.mxu1 %vm6298_vm0, %v8774_v0 }
 0x116   :  { %v305_v29 = vadd.f32 %v6613_v20, %v304_v28  ;;  %v5358_v30 = vpop.f32.mrb[25].mxu0  ;;  %5557 = vmatmul.mubr.msk.bf16.gmra.mrb[108].mxu0 %vm503_vm2, %v1041_v26 }
 0x117   :  { %v307_v31 = vpop.f32.mrb[26].mxu0  ;;  %5560 = vmatprep.mubr.msk.bf16.mxu0 %vm6298_vm0, %v8774_v0 }
 0x118   :  { %v466_v32 = vmax.f32 %v305_v29, 0.0  ;;  %v308_v33 = vadd.f32 %v6613_v20, %v307_v31  ;;  %v5359_v34 = vpop.f32.mrb[27].mxu0 }
 0x119   :  { %v603_v35 = vld [vmem:[#allocation2 + $0x50] sm:$0xff] }
 0x11a   :  { %516 = vst.msk [vmem:[#allocation2 + $0x60] sm:$0xff] %vm503_vm2, %v466_v32  ;;  %v467_v36 = vmax.f32 %v308_v33, 0.0  ;;  %v6696_v37 = vpack.c.bf16 %v603_v35, %v1019_v25 }
 0x11b   :  { %v6698_v38 = vld [vmem:[#allocation2 + $0x58] sm:$0xff] }
 0x11c   :  { %517 = vst.msk [vmem:[#allocation2 + $0x68] sm:$0xff] %vm503_vm2, %v467_v36  ;;  %5449 = vmatmul.mubr.msk.bf16.gmra.mrb[12].mxu1 %vm503_vm2, %v6696_v37  ;;  %v6704_v39 = vpack.c.bf16 %v6698_v38, %v603_v35 }
 0x11d   :  { %v312_v40 = vpop.f32.mrb[28].mxu0  ;;  %5452 = vmatprep.mubr.msk.bf16.mxu1 %vm6298_vm0, %v8774_v0 }
 0x11e   :  { %v313_v41 = vadd.f32 %v6613_v20, %v312_v40  ;;  %v5362_v42 = vpop.f32.mrb[29].mxu0  ;;  %5561 = vmatmul.mubr.msk.bf16.gmra.mrb[112].mxu0 %vm503_vm2, %v6704_v39 }
 0x11f   :  { %v315_v43 = vpop.f32.mrb[30].mxu0  ;;  %5564 = vmatprep.mubr.msk.bf16.mxu0 %vm6298_vm0, %v8774_v0 }
 0x120   :  { %v468_v45 = vmax.f32 %v313_v41, 0.0  ;;  %v316_v46 = vadd.f32 %v6613_v20, %v315_v43  ;;  %v5363_v47 = vpop.f32.mrb[31].mxu0 }
 0x121   :  { %v6714_v48 = vld [vmem:[#allocation2 + $0x60] sm:$0xff] }
 0x122   :  { %518 = vst.msk [vmem:[#allocation2 + $0x70] sm:$0xff] %vm503_vm2, %v468_v45  ;;  %v469_v49 = vmax.f32 %v316_v46, 0.0  ;;  %v625_v51 = vpack.c.bf16 %v6714_v48, %v6698_v38 }
 0x123   :  { %v1023_v52 = vld [vmem:[#allocation2 + $0x68] sm:$0xff] }
 0x124   :  { %519 = vst.msk [vmem:[#allocation2 + $0x78] sm:$0xff] %vm503_vm2, %v469_v49  ;;  %5453 = vmatmul.mubr.msk.bf16.gmra.mrb[16].mxu1 %vm503_vm2, %v625_v51  ;;  %v1043_v53 = vpack.c.bf16 %v1023_v52, %v6714_v48 }
 0x125   :  { %v320_v54 = vpop.f32.mrb[32].mxu0  ;;  %5456 = vmatprep.mubr.msk.bf16.mxu1 %vm6298_vm0, %v8774_v0 }
 0x126   :  { %v321_v55 = vadd.f32 %v6613_v20, %v320_v54  ;;  %v5366_v56 = vpop.f32.mrb[33].mxu0  ;;  %5565 = vmatmul.mubr.msk.bf16.gmra.mrb[116].mxu0 %vm503_vm2, %v1043_v53 }
 0x127   :  { %v323_v57 = vpop.f32.mrb[34].mxu0  ;;  %5568 = vmatprep.mubr.msk.bf16.mxu0 %vm6298_vm0, %v8774_v0 }
 0x128   :  { %v470_v58 = vmax.f32 %v321_v55, 0.0  ;;  %v324_v59 = vadd.f32 %v6613_v20, %v323_v57  ;;  %v5367_v60 = vpop.f32.mrb[35].mxu0 }
 0x129   :  { %v6729_v62 = vld [vmem:[#allocation2 + $0x70] sm:$0xff] }
 0x12a   :  { %520 = vst.msk [vmem:[#allocation2 + $0x80] sm:$0xff] %vm503_vm2, %v470_v58  ;;  %v471_v63 = vmax.f32 %v324_v59, 0.0  ;;  %v1297_v1 = vpack.c.bf16 %v6729_v62, %v6698_v38 }
 0x12b   :  { %v6734_v2 = vld [vmem:[#allocation2 + $0x78] sm:$0xff] }
 0x12c   :  { %521 = vst.msk [vmem:[#allocation2 + $0x88] sm:$0xff] %vm503_vm2, %v471_v63  ;;  %v1553_v3 = vpack.c.bf16 %v6734_v2, %v6714_v48 }
 0x12d   :  { %v328_v4 = vpop.f32.mrb[36].mxu0 }
 0x12e   :  { %v329_v5 = vadd.f32 %v6613_v20, %v328_v4  ;;  %v5370_v6 = vpop.f32.mrb[37].mxu0 }
 0x12f   :  { %v331_v7 = vpop.f32.mrb[38].mxu0 }
 0x130   :  { %v472_v8 = vmax.f32 %v329_v5, 0.0  ;;  %v332_v9 = vadd.f32 %v6613_v20, %v331_v7  ;;  %v5371_v10 = vpop.f32.mrb[39].mxu0 }
 0x131   :  { %v2550_v11 = vld [vmem:[#allocation2 + $0x80] sm:$0xff] }
 0x132   :  { %522 = vst.msk [vmem:[#allocation2 + $0x90] sm:$0xff] %vm503_vm2, %v472_v8  ;;  %v473_v12 = vmax.f32 %v332_v9, 0.0  ;;  %v6743_v13 = vpack.c.bf16 %v2550_v11, %v6734_v2 }
 0x133   :  { %v2551_v14 = vld [vmem:[#allocation2 + $0x88] sm:$0xff] }
 0x134   :  { %v6745_v15 = vpack.c.bf16 %v2551_v14, %v2550_v11  ;;  %523 = vst.msk [vmem:[#allocation2 + $0x98] sm:$0xff] %vm503_vm2, %v473_v12  ;;  %5457 = vmatmul.mubr.msk.bf16.gmra.mrb[20].mxu1 %vm503_vm2, %v6743_v13 }
 0x135   :  { %v336_v16 = vpop.f32.mrb[40].mxu0  ;;  %5460 = vmatprep.mubr.msk.bf16.mxu1 %vm6298_vm0, %v8774_v0 }
 0x136   :  { %v337_v17 = vadd.f32 %v6613_v20, %v336_v16  ;;  %v5374_v21 = vpop.f32.mrb[41].mxu0  ;;  %5569 = vmatmul.mubr.msk.bf16.gmra.mrb[120].mxu0 %vm503_vm2, %v6745_v15 }
 0x137   :  { %v339_v22 = vpop.f32.mrb[42].mxu0  ;;  %5572 = vmatprep.mubr.msk.bf16.mxu0 %vm6298_vm0, %v8774_v0 }
 0x138   :  { %v474_v24 = vmax.f32 %v337_v17, 0.0  ;;  %v340_v25 = vadd.f32 %v6613_v20, %v339_v22  ;;  %v5375_v26 = vpop.f32.mrb[43].mxu0 }
 0x139   :  { %v6758_v28 = vld [vmem:[#allocation2 + $0x90] sm:$0xff] }
 0x13a   :  { %524 = vst.msk [vmem:[#allocation2 + $0xa0] sm:$0xff] %vm503_vm2, %v474_v24  ;;  %v475_v29 = vmax.f32 %v340_v25, 0.0  ;;  %v6762_v30 = vpack.c.bf16 %v6758_v28, %v2551_v14 }
 0x13b   :  { %v1027_v31 = vld [vmem:[#allocation2 + $0x98] sm:$0xff] }
 0x13c   :  { %525 = vst.msk [vmem:[#allocation2 + $0xa8] sm:$0xff] %vm503_vm2, %v475_v29  ;;  %5461 = vmatmul.mubr.msk.bf16.gmra.mrb[24].mxu1 %vm503_vm2, %v6762_v30  ;;  %v6768_v32 = vpack.c.bf16 %v1027_v31, %v6758_v28 }
 0x13d   :  { %v344_v33 = vpop.f32.mrb[44].mxu0  ;;  %5464 = vmatprep.mubr.msk.bf16.mxu1 %vm6298_vm0, %v8774_v0 }
 0x13e   :  { %v345_v34 = vadd.f32 %v6613_v20, %v344_v33  ;;  %v5378_v35 = vpop.f32.mrb[45].mxu0  ;;  %5573 = vmatmul.mubr.msk.bf16.gmra.mrb[124].mxu0 %vm503_vm2, %v6768_v32 }
 0x13f   :  { %v347_v36 = vpop.f32.mrb[46].mxu0  ;;  %5576 = vmatprep.mubr.msk.bf16.mxu0 %vm6298_vm0, %v8774_v0 }
 0x140   :  { %v476_v40 = vmax.f32 %v345_v34, 0.0  ;;  %v348_v41 = vadd.f32 %v6613_v20, %v347_v36  ;;  %v5379_v42 = vpop.f32.mrb[47].mxu0 }
 0x141   :  { %v1028_v59 = vld [vmem:[#allocation2 + $0xa0] sm:$0xff] }
 0x142   :  { %526 = vst.msk [vmem:[#allocation2 + $0xb0] sm:$0xff] %vm503_vm2, %v476_v40  ;;  %v477_v43 = vmax.f32 %v348_v41, 0.0 }
 0x143   :  { %v6784_v55 = vld [vmem:[#allocation2 + $0xa8] sm:$0xff] }
 0x144   :  { %527 = vst.msk [vmem:[#allocation2 + $0xb8] sm:$0xff] %vm503_vm2, %v477_v43 }
 0x145   :  { %v352_v45 = vpop.f32.mrb[48].mxu0 }
 0x146   :  { %v353_v46 = vadd.f32 %v6613_v20, %v352_v45  ;;  %v5382_v47 = vpop.f32.mrb[49].mxu0 }
 0x147   :  { %v355_v49 = vpop.f32.mrb[50].mxu0 }
 0x148   :  { %v478_v51 = vmax.f32 %v353_v46, 0.0  ;;  %v356_v52 = vadd.f32 %v6613_v20, %v355_v49  ;;  %v5383_v53 = vpop.f32.mrb[51].mxu0 }
 0x149   :  { %v6782_v54 = vld [vmem:[#allocation2 + $0xb0] sm:$0xff] }
 0x14a   :  { %528 = vst.msk [vmem:[#allocation2 + $0xc0] sm:$0xff] %vm503_vm2, %v478_v51  ;;  %v479_v56 = vmax.f32 %v356_v52, 0.0  ;;  %v628_v57 = vpack.c.bf16 %v6782_v54, %v1027_v31  ;;  %v1300_v58 = vpack.c.bf16 %v6782_v54, %v6784_v55 }
 0x14b   :  { %v1029_v60 = vld [vmem:[#allocation2 + $0xb8] sm:$0xff] }
 0x14c   :  { %529 = vst.msk [vmem:[#allocation2 + $0xc8] sm:$0xff] %vm503_vm2, %v479_v56  ;;  %5465 = vmatmul.mubr.msk.bf16.gmra.mrb[28].mxu1 %vm503_vm2, %v628_v57  ;;  %v1046_v63 = vpack.c.bf16 %v1029_v60, %v1028_v59  ;;  %v6793_v4 = vpack.c.bf16 %v1029_v60, %v6782_v54 }
 0x14d   :  { %v360_v5 = vpop.f32.mrb[52].mxu0  ;;  %5468 = vmatprep.mubr.msk.bf16.mxu1 %vm6298_vm0, %v8774_v0 }
 0x14e   :  { %v361_v6 = vadd.f32 %v6613_v20, %v360_v5  ;;  %v5386_v7 = vpop.f32.mrb[53].mxu0  ;;  %5577 = vmatmul.mubr.msk.bf16.gmra.mrb[128].mxu0 %vm503_vm2, %v1046_v63 }
 0x14f   :  { %v363_v8 = vpop.f32.mrb[54].mxu0  ;;  %5580 = vmatprep.mubr.msk.bf16.mxu0 %vm6298_vm0, %v8774_v0 }
 0x150   :  { %v480_v9 = vmax.f32 %v361_v6, 0.0  ;;  %v364_v10 = vadd.f32 %v6613_v20, %v363_v8  ;;  %v5387_v11 = vpop.f32.mrb[55].mxu0 }
 0x151   :  { %v613_v12 = vld [vmem:[#allocation2 + $0xc0] sm:$0xff] }
 0x152   :  { %530 = vst.msk [vmem:[#allocation2 + $0xd0] sm:$0xff] %vm503_vm2, %v480_v9  ;;  %v481_v14 = vmax.f32 %v364_v10, 0.0  ;;  %v6803_v16 = vpack.c.bf16 %v613_v12, %v1029_v60 }
 0x153   :  { %v6805_v17 = vld [vmem:[#allocation2 + $0xc8] sm:$0xff] }
 0x154   :  { %531 = vst.msk [vmem:[#allocation2 + $0xd8] sm:$0xff] %vm503_vm2, %v481_v14  ;;  %5469 = vmatmul.mubr.msk.bf16.gmra.mrb[32].mxu1 %vm503_vm2, %v6803_v16  ;;  %v6811_v21 = vpack.c.bf16 %v6805_v17, %v613_v12 }
 0x155   :  { %v368_v22 = vpop.f32.mrb[56].mxu0  ;;  %5472 = vmatprep.mubr.msk.bf16.mxu1 %vm6298_vm0, %v8774_v0 }
 0x156   :  { %v369_v24 = vadd.f32 %v6613_v20, %v368_v22  ;;  %v5390_v25 = vpop.f32.mrb[57].mxu0  ;;  %5581 = vmatmul.mubr.msk.bf16.gmra.mrb[132].mxu0 %vm503_vm2, %v6811_v21 }
 0x157   :  { %v371_v26 = vpop.f32.mrb[58].mxu0  ;;  %5584 = vmatprep.mubr.msk.bf16.mxu0 %vm6298_vm0, %v8774_v0 }
 0x158   :  { %v482_v29 = vmax.f32 %v369_v24, 0.0  ;;  %v372_v31 = vadd.f32 %v6613_v20, %v371_v26  ;;  %v5391_v33 = vpop.f32.mrb[59].mxu0 }
 0x159   :  { %v6821_v34 = vld [vmem:[#allocation2 + $0xd0] sm:$0xff] }
 0x15a   :  { %532 = vst.msk [vmem:[#allocation2 + $0xe0] sm:$0xff] %vm503_vm2, %v482_v29  ;;  %v483_v35 = vmax.f32 %v372_v31, 0.0  ;;  %v630_v36 = vpack.c.bf16 %v6821_v34, %v6805_v17 }
 0x15b   :  { %v1033_v40 = vld [vmem:[#allocation2 + $0xd8] sm:$0xff] }
 0x15c   :  { %533 = vst.msk [vmem:[#allocation2 + $0xe8] sm:$0xff] %vm503_vm2, %v483_v35  ;;  %5473 = vmatmul.mubr.msk.bf16.gmra.mrb[36].mxu1 %vm503_vm2, %v630_v36  ;;  %v1048_v41 = vpack.c.bf16 %v1033_v40, %v6821_v34 }
 0x15d   :  { %v376_v42 = vpop.f32.mrb[60].mxu0  ;;  %5476 = vmatprep.mubr.msk.bf16.mxu1 %vm6298_vm0, %v8774_v0 }
 0x15e   :  { %v377_v43 = vadd.f32 %v6613_v20, %v376_v42  ;;  %v5394_v45 = vpop.f32.mrb[61].mxu0  ;;  %5585 = vmatmul.mubr.msk.bf16.gmra.mrb[136].mxu0 %vm503_vm2, %v1048_v41 }
 0x15f   :  { %v379_v46 = vpop.f32.mrb[62].mxu0  ;;  %5588 = vmatprep.mubr.msk.bf16.mxu0 %vm6298_vm0, %v8774_v0 }
 0x160   :  { %v484_v47 = vmax.f32 %v377_v43, 0.0  ;;  %v380_v49 = vadd.f32 %v6613_v20, %v379_v46  ;;  %v5395_v51 = vpop.f32.mrb[63].mxu0 }
 0x161   :  { %v6836_v52 = vld [vmem:[#allocation2 + $0xe0] sm:$0xff] }
 0x162   :  { %534 = vst.msk [vmem:[#allocation2 + $0xf0] sm:$0xff] %vm503_vm2, %v484_v47  ;;  %v485_v53 = vmax.f32 %v380_v49, 0.0  ;;  %v1302_v56 = vpack.c.bf16 %v6836_v52, %v6805_v17 }
 0x163   :  { %v6841_v57 = vld [vmem:[#allocation2 + $0xe8] sm:$0xff] }
 0x164   :  { %535 = vst.msk [vmem:[#allocation2 + $0xf8] sm:$0xff] %vm503_vm2, %v485_v53  ;;  %v1558_v59 = vpack.c.bf16 %v6841_v57, %v6821_v34 }
 0x165   :  { %v384_v60 = vpop.f32.mrb[64].mxu0 }
 0x166   :  { %v385_v63 = vadd.f32 %v6613_v20, %v384_v60  ;;  %v5398_v5 = vpop.f32.mrb[65].mxu0 }
 0x167   :  { %v387_v6 = vpop.f32.mrb[66].mxu0 }
 0x168   :  { %v486_v7 = vmax.f32 %v385_v63, 0.0  ;;  %v388_v8 = vadd.f32 %v6613_v20, %v387_v6  ;;  %v5399_v9 = vpop.f32.mrb[67].mxu0 }
 0x169   :  { %v617_v10 = vld [vmem:[#allocation2 + $0xf0] sm:$0xff] }
 0x16a   :  { %536 = vst.msk [vmem:[#allocation2 + $0x100] sm:$0xff] %vm503_vm2, %v486_v7  ;;  %v487_v11 = vmax.f32 %v388_v8, 0.0  ;;  %v6850_v12 = vpack.c.bf16 %v617_v10, %v6841_v57 }
 0x16b   :  { %v1035_v14 = vld [vmem:[#allocation2 + $0xf8] sm:$0xff] }
 0x16c   :  { %537 = vst.msk [vmem:[#allocation2 + $0x108] sm:$0xff] %vm503_vm2, %v487_v11  ;;  %5477 = vmatmul.mubr.msk.bf16.gmra.mrb[40].mxu1 %vm503_vm2, %v6850_v12  ;;  %v6855_v22 = vpack.c.bf16 %v1035_v14, %v617_v10 }
 0x16d   :  { %v392_v24 = vpop.f32.mrb[68].mxu0  ;;  %5480 = vmatprep.mubr.msk.bf16.mxu1 %vm6298_vm0, %v8774_v0 }
 0x16e   :  { %v393_v25 = vadd.f32 %v6613_v20, %v392_v24  ;;  %v5402_v26 = vpop.f32.mrb[69].mxu0  ;;  %5589 = vmatmul.mubr.msk.bf16.gmra.mrb[140].mxu0 %vm503_vm2, %v6855_v22 }
 0x16f   :  { %v395_v29 = vpop.f32.mrb[70].mxu0  ;;  %5592 = vmatprep.mubr.msk.bf16.mxu0 %vm6298_vm0, %v8774_v0  ;;  %v553_v26 = vld [vmem:[#allocation2] sm:$0xff] }
 0x170   :  { %v488_v31 = vmax.f32 %v393_v25, 0.0  ;;  %v396_v33 = vadd.f32 %v6613_v20, %v395_v29  ;;  %v5403_v35 = vpop.f32.mrb[71].mxu0  ;;  %v6215_v29 = vld [vmem:[%s8760_s3 + $0x30] sm:$0xff]  }
 0x171   :  { %v6865_v36 = vld [vmem:[#allocation2 + $0x100] sm:$0xff] }
 0x172   :  { %538 = vst.msk [vmem:[#allocation2 + $0x110] sm:$0xff] %vm503_vm2, %v488_v31  ;;  %v489_v40 = vmax.f32 %v396_v33, 0.0  ;;  %v6869_v41 = vpack.c.bf16 %v6865_v36, %v1035_v14  ;;  %v578_v31 = vpack.c.bf16 %v6625_v44, %v553_v26  ;;  %v6217_v35 = vld [vmem:[%s8760_s3 + $0x60] sm:$0xff]  }
 0x173   :  { %v1037_v42 = vld [vmem:[#allocation2 + $0x108] sm:$0xff] }
 0x174   :  { %539 = vst.msk [vmem:[#allocation2 + $0x118] sm:$0xff] %vm503_vm2, %v489_v40  ;;  %5481 = vmatmul.mubr.msk.bf16.gmra.mrb[44].mxu1 %vm503_vm2, %v6869_v41  ;;  %v6875_v43 = vpack.c.bf16 %v1037_v42, %v6865_v36  ;;  %v633_v5 = vpack.c.bf16 %v1037_v42, %v1037_v42  ;;  %v6216_v40 = vld [vmem:[%s8760_s3 + $0x38] sm:$0xff]  }
 0x175   :  { %v400_v45 = vpop.f32.mrb[72].mxu0  ;;  %5484 = vmatprep.mubr.msk.bf16.mxu1 %vm6298_vm0, %v8774_v0 }
 0x176   :  { %v401_v46 = vadd.f32 %v6613_v20, %v400_v45  ;;  %5593 = vmatmul.mubr.msk.bf16.gmra.mrb[144].mxu0 %vm503_vm2, %v6875_v43  ;;  %v5406_v47 = vpop.f32.mrb[73].mxu0 }
 0x177   :  { %5596 = vmatprep.mubr.msk.bf16.mxu0 %vm6298_vm0, %v8774_v0  ;;  %v403_v49 = vpop.f32.mrb[74].mxu0  ;;  %v6218_v47 = vld [vmem:[%s8760_s3 + $0x68] sm:$0xff]  }
 0x178   :  { %v490_v51 = vmax.f32 %v401_v46, 0.0  ;;  %v404_v53 = vadd.f32 %v6613_v20, %v403_v49  ;;  %v5407_v60 = vpop.f32.mrb[75].mxu0 }
 0x179   :  { %v1038_v63 = vld [vmem:[#allocation2 + $0x110] sm:$0xff] }
 0x17a   :  { %540 = vst.msk [vmem:[#allocation2 + $0x120] sm:$0xff] %vm503_vm2, %v490_v51  ;;  %v1051_v6 = vpack.c.bf16 %v1038_v63, %v1038_v63  ;;  %v491_v7 = vmax.f32 %v404_v53, 0.0 }
 0x17c   :  { %5485 = vmatmul.mubr.msk.bf16.gmra.mrb[48].mxu1 %vm503_vm2, %v633_v5  ;;  %541 = vst.msk [vmem:[#allocation2 + $0x128] sm:$0xff] %vm503_vm2, %v491_v7 }
 0x17d   :  { %5492 = vmatprep.mubr.msk.bf16.mxu1 %vm6298_vm0, %v8774_v0  ;;  %v408_v8 = vpop.f32.mrb[76].mxu0 }
 0x17e   :  { %5597 = vmatmul.mubr.msk.bf16.gmra.mrb[148].mxu0 %vm503_vm2, %v1051_v6  ;;  %v409_v9 = vadd.f32 %v6613_v20, %v408_v8  ;;  %v5410_v10 = vpop.f32.mrb[77].mxu0 }
 0x17f   :  { %5660 = vmatprep.mubr.msk.bf16.mxu0 %vm6298_vm0, %v8774_v0  ;;  %v411_v11 = vpop.f32.mrb[78].mxu0  ;;  %v580_v10 = vpack.c.bf16 %v6677_v19, %v6655_v61 }
 0x180   :  { %v492_v14 = vmax.f32 %v409_v9, 0.0  ;;  %v412_v24 = vadd.f32 %v6613_v20, %v411_v11  ;;  %v5411_v25 = vpop.f32.mrb[79].mxu0 }
 0x182   :  { %542 = vst.msk [vmem:[#allocation2 + $0x130] sm:$0xff] %vm503_vm2, %v492_v14  ;;  %v493_v33 = vmax.f32 %v412_v24, 0.0 }
 0x184   :  { %5493 = vmatmul.mubr.msk.bf16.vlgmr.msra.gmra.mrb[52].mxu1 %vm503_vm2, %v578_v31  ;;  %543 = vst.msk [vmem:[#allocation2 + $0x138] sm:$0xff] %vm503_vm2, %v493_v33 }
 0x185   :  { %5601 = vmatpush3.bf16.msra.mxu1 %v6215_v29  ;;  %5496 = vmatprep.mubr.msk.bf16.mxu1 %vm6298_vm0, %v8774_v0  ;;  %v416_v44 = vpop.f32.mrb[80].mxu0 }
 0x186   :  { %5661 = vmatmul.mubr.msk.bf16.vlgmr.msra.gmra.mrb[152].mxu0 %vm503_vm2, %v6686_v27  ;;  %5602 = vmatprep.subr.bf16.mxu1 %v8774_v0  ;;  %v417_v42 = vadd.f32 %v6613_v20, %v416_v44  ;;  %v5414_v45 = vpop.f32.mrb[81].mxu0 }
 0x187   :  { %5664 = vmatprep.mubr.msk.bf16.mxu0 %vm6298_vm0, %v8774_v0  ;;  %v419_v46 = vpop.f32.mrb[82].mxu0  ;;  %5769 = vmatpush3.bf16.msra.mxu0 %v6217_v35 }
 0x188   :  { %v494_v49 = vmax.f32 %v417_v42, 0.0  ;;  %v420_v51 = vadd.f32 %v6613_v20, %v419_v46  ;;  %v5415_v53 = vpop.f32.mrb[83].mxu0  ;;  %5770 = vmatprep.subr.bf16.mxu0 %v8774_v0 }
 0x189   :  { %5603 = vmatpush3.bf16.msra.mxu1 %v6216_v40 }
 0x18a   :  { %544 = vst.msk [vmem:[#allocation2 + $0x140] sm:$0xff] %vm503_vm2, %v494_v49  ;;  %v495_v60 = vmax.f32 %v420_v51, 0.0  ;;  %5712 = vmatprep.subr.bf16.mxu1 %v8774_v0 }
 0x18b   :  { %5771 = vmatpush3.bf16.msra.mxu0 %v6218_v47 }
 0x18c   :  { %5497 = vmatmul.mubr.msk.bf16.gmra.mrb[56].mxu1 %vm503_vm2, %v6634_v50  ;;  %545 = vst.msk [vmem:[#allocation2 + $0x148] sm:$0xff] %vm503_vm2, %v495_v60  ;;  %5880 = vmatprep.subr.bf16.mxu0 %v8774_v0 }
 0x18d   :  { %5500 = vmatprep.mubr.msk.bf16.mxu1 %vm6298_vm0, %v8774_v0  ;;  %v424_v63 = vpop.f32.mrb[84].mxu0 }
 0x18e   :  { %5665 = vmatmul.mubr.msk.bf16.gmra.mrb[156].mxu0 %vm503_vm2, %v6704_v39  ;;  %v425_v5 = vadd.f32 %v6613_v20, %v424_v63  ;;  %v5418_v6 = vpop.f32.mrb[85].mxu0 }
 0x18f   :  { %5668 = vmatprep.mubr.msk.bf16.mxu0 %vm6298_vm0, %v8774_v0  ;;  %v427_v7 = vpop.f32.mrb[86].mxu0 }
 0x190   :  { %v496_v8 = vmax.f32 %v425_v5, 0.0  ;;  %v428_v50 = vadd.f32 %v6613_v20, %v427_v7  ;;  %v5419_v9 = vpop.f32.mrb[87].mxu0  ;;  %v7007_v7 = vpack.c.bf16 %v6784_v55, %v6758_v28 }
 0x191   :  { %v6997_v5 = vld [vmem:[#allocation2 + $0x140] sm:$0xff] }
 0x192   :  { %546 = vst.msk [vmem:[#allocation2 + $0x150] sm:$0xff] %vm503_vm2, %v496_v8  ;;  %v497_v11 = vmax.f32 %v428_v50, 0.0 }
 0x194   :  { %5501 = vmatmul.mubr.msk.bf16.gmra.mrb[60].mxu1 %vm503_vm2, %v580_v10  ;;  %547 = vst.msk [vmem:[#allocation2 + $0x158] sm:$0xff] %vm503_vm2, %v497_v11  ;;  %v7049_v11 = vld [vmem:[#allocation2 + $0x120] sm:$0xff] }
 0x195   :  { %5504 = vmatprep.mubr.msk.bf16.mxu1 %vm6298_vm0, %v8774_v0  ;;  %v432_v14 = vpop.f32.mrb[88].mxu0 }
 0x196   :  { %5669 = vmatmul.mubr.msk.bf16.gmra.mrb[160].mxu0 %vm503_vm2, %v1553_v3  ;;  %v433_v24 = vadd.f32 %v6613_v20, %v432_v14  ;;  %v5422_v25 = vpop.f32.mrb[89].mxu0 }
 0x197   :  { %5672 = vmatprep.mubr.msk.bf16.mxu0 %vm6298_vm0, %v8774_v0  ;;  %v435_v61 = vpop.f32.mrb[90].mxu0 }
 0x198   :  { %v498_v26 = vmax.f32 %v433_v24, 0.0  ;;  %v436_v29 = vadd.f32 %v6613_v20, %v435_v61  ;;  %v5423_v31 = vpop.f32.mrb[91].mxu0 }
 0x19a   :  { %548 = vst.msk [vmem:[#allocation2 + $0x160] sm:$0xff] %vm503_vm2, %v498_v26  ;;  %v499_v33 = vmax.f32 %v436_v29, 0.0 }
 0x19b   :  { %v7023_v28 = vld [vmem:[#allocation2 + $0x158] sm:$0xff] }
 0x19c   :  { %5505 = vmatmul.mubr.msk.bf16.gmra.mrb[64].mxu1 %vm503_vm2, %v6686_v27  ;;  %549 = vst.msk [vmem:[#allocation2 + $0x168] sm:$0xff] %vm503_vm2, %v499_v33  ;;  %8779 = vst [vmem:[#allocation6_spill] sm:$0xff] %v7023_v28 }
 0x19d   :  { %5508 = vmatprep.mubr.msk.bf16.mxu1 %vm6298_vm0, %v8774_v0  ;;  %v440_v48 = vpop.f32.mrb[92].mxu0 }
 0x19e   :  { %5673 = vmatmul.mubr.msk.bf16.gmra.mrb[164].mxu0 %vm503_vm2, %v6745_v15  ;;  %v441_v3 = vadd.f32 %v6613_v20, %v440_v48  ;;  %v5426_v35 = vpop.f32.mrb[93].mxu0 }
 0x19f   :  { %5676 = vmatprep.mubr.msk.bf16.mxu0 %vm6298_vm0, %v8774_v0  ;;  %v443_v40 = vpop.f32.mrb[94].mxu0 }
 0x1a0   :  { %v500_v44 = vmax.f32 %v441_v3, 0.0  ;;  %v444_v42 = vadd.f32 %v6613_v20, %v443_v40  ;;  %v5427_v27 = vpop.f32.mrb[95].mxu0 }
 0x1a1   :  { %v7025_v8 = vld [vmem:[#allocation2 + $0x160] sm:$0xff] }
 0x1a2   :  { %550 = vst.msk [vmem:[#allocation2 + $0x170] sm:$0xff] %vm503_vm2, %v500_v44  ;;  %v501_v45 = vmax.f32 %v444_v42, 0.0  ;;  %8780 = vst [vmem:[#allocation7_spill] sm:$0xff] %v7025_v8 }
 0x1a4   :  { %5509 = vmatmul.mubr.msk.bf16.gmra.mrb[68].mxu1 %vm503_vm2, %v6704_v39  ;;  %551 = vst.msk [vmem:[#allocation2 + $0x178] sm:$0xff] %vm503_vm2, %v501_v45  ;;  %v6975_v39 = vpack.c.bf16 %v6734_v2, %v6729_v62  ;;  %v6995_v2 = vld [vmem:[#allocation2 + $0x138] sm:$0xff] }
 0x1a5   :  { %5512 = vmatprep.mubr.msk.bf16.mxu1 %vm6298_vm0, %v8774_v0  ;;  %v448_v46 = vpop.f32.mrb[96].mxu0  ;;  %8778 = vst [vmem:[#allocation5_spill] sm:$0xff] %v6995_v2  ;;  %v1307_v34 = vpack.c.bf16 %v6995_v2, %v6995_v2 }
 0x1a6   :  { %5677 = vmatmul.mubr.msk.bf16.gmra.mrb[168].mxu0 %vm503_vm2, %v6768_v32  ;;  %v449_v47 = vadd.f32 %v6613_v20, %v448_v46  ;;  %v5430_v49 = vpop.f32.mrb[97].mxu0  ;;  %v6982_v20 = vld [vmem:[#allocation2 + $0x128] sm:$0xff]  ;;  %v1548_v32 = vld [vmem:[#allocation2 + $0x130] sm:$0xff]  ;;  %v590_v46 = vpack.c.bf16 %v6865_v36, %v6865_v36 }
 0x1a7   :  { %5680 = vmatprep.mubr.msk.bf16.mxu0 %vm6298_vm0, %v8774_v0  ;;  %v451_v51 = vpop.f32.mrb[98].mxu0  ;;  %v6987_v63 = vpack.c.bf16 %v1548_v32, %v6982_v20  ;;  %v7061_v29 = vpack.c.bf16 %v6982_v20, %v7049_v11  ;;  %v7080_v42 = vpack.c.bf16 %v6995_v2, %v1548_v32  ;;  %v6219_v32 = vld [vmem:[%s8760_s3 + $0x50] sm:$0xff]  }
 0x1a8   :  { %v502_v53 = vmax.f32 %v449_v47, 0.0  ;;  %v5431_v60 = vpop.f32.mrb[99].mxu0  ;;  %v1563_v47 = vpack.c.bf16 %v6997_v5, %v6997_v5 }
 0x1a9   :  { %v7039_v50 = vld [vmem:[#allocation2 + $0x170] sm:$0xff] }
 0x1aa   :  { %552 = vst.msk [vmem:[#allocation2 + $0x180] sm:$0xff] %vm503_vm2, %v502_v53  ;;  %8782 = vst [vmem:[#allocation9_spill] sm:$0xff] %v7039_v50  ;;  %v2075_v6 = vpack.c.bf16 %v7039_v50, %v7039_v50 }
 0x1ac   :  { %5513 = vmatmul.mubr.msk.bf16.gmra.mrb[72].mxu1 %vm503_vm2, %v6975_v39 }
 0x1ad   :  { %5516 = vmatprep.mubr.msk.bf16.mxu1 %vm6298_vm0, %v8774_v0 }
 0x1ae   :  { %5681 = vmatmul.mubr.msk.bf16.gmra.mrb[172].mxu0 %vm503_vm2, %v6793_v4 }
 0x1af   :  { %5684 = vmatprep.mubr.msk.bf16.mxu0 %vm6298_vm0, %v8774_v0 }
 0x1b4   :  { %5517 = vmatmul.mubr.msk.bf16.gmra.mrb[76].mxu1 %vm503_vm2, %v6745_v15 }
 0x1b5   :  { %5520 = vmatprep.mubr.msk.bf16.mxu1 %vm6298_vm0, %v8774_v0 }
 0x1b6   :  { %5685 = vmatmul.mubr.msk.bf16.gmra.mrb[176].mxu0 %vm503_vm2, %v6811_v21 }
 0x1b7   :  { %5688 = vmatprep.mubr.msk.bf16.mxu0 %vm6298_vm0, %v8774_v0 }
 0x1bc   :  { %5521 = vmatmul.mubr.msk.bf16.gmra.mrb[80].mxu1 %vm503_vm2, %v7007_v7 }
 0x1bd   :  { %5524 = vmatprep.mubr.msk.bf16.mxu1 %vm6298_vm0, %v8774_v0 }
 0x1be   :  { %5689 = vmatmul.mubr.msk.bf16.gmra.mrb[180].mxu0 %vm503_vm2, %v1558_v59  ;;  %v7037_v59 = vld [vmem:[#allocation2 + $0x168] sm:$0xff] }
 0x1bf   :  { %5692 = vmatprep.mubr.msk.bf16.mxu0 %vm6298_vm0, %v8774_v0  ;;  %8781 = vst [vmem:[#allocation8_spill] sm:$0xff] %v7037_v59 }
 0x1c4   :  { %5525 = vmatmul.mubr.msk.bf16.gmra.mrb[84].mxu1 %vm503_vm2, %v6793_v4 }
 0x1c5   :  { %5528 = vmatprep.mubr.msk.bf16.mxu1 %vm6298_vm0, %v8774_v0 }
 0x1c6   :  { %5693 = vmatmul.mubr.msk.bf16.gmra.mrb[184].mxu0 %vm503_vm2, %v6855_v22 }
 0x1c7   :  { %5696 = vmatprep.mubr.msk.bf16.mxu0 %vm6298_vm0, %v8774_v0 }
 0x1cc   :  { %5529 = vmatmul.mubr.msk.bf16.gmra.mrb[88].mxu1 %vm503_vm2, %v6811_v21 }
 0x1cd   :  { %5532 = vmatprep.mubr.msk.bf16.mxu1 %vm6298_vm0, %v8774_v0 }
 0x1ce   :  { %5697 = vmatmul.mubr.msk.bf16.gmra.mrb[188].mxu0 %vm503_vm2, %v6875_v43  ;;  %v7057_v43 = vpack.c.bf16 %v6841_v57, %v6836_v52 }
 0x1cf   :  { %v7045_v10 = vpop.f32.mrb[0].mxu1  ;;  %5700 = vmatprep.mubr.msk.bf16.mxu0 %vm6298_vm0, %v8774_v0 }
 0x1d0   :  { %v5438_v14 = vpop.f32.mrb[1].mxu1 }
 0x1d1   :  { %v7051_v24 = vpop.f32.mrb[2].mxu1  ;;  %v7053_v25 = vpop.f32.mrb[100].mxu0 }
 0x1d2   :  { %v5439_v61 = vpop.f32.mrb[3].mxu1  ;;  %v5550_v26 = vpop.f32.mrb[101].mxu0 }
 0x1d3   :  { %v7063_v31 = vpop.f32.mrb[102].mxu0 }
 0x1d4   :  { %5533 = vmatmul.mubr.msk.bf16.gmra.mrb[92].mxu1 %vm503_vm2, %v7057_v43  ;;  %v5551_v33 = vpop.f32.mrb[103].mxu0 }
 0x1d5   :  { %5536 = vmatprep.mubr.msk.bf16.mxu1 %vm6298_vm0, %v8774_v0  ;;  %v6221_v33 = vld [vmem:[%s8760_s3 + $0x80] sm:$0xff]  }
 0x1d6   :  { %5701 = vmatmul.mubr.msk.bf16.gmra.mrb[192].mxu0 %vm503_vm2, %v7061_v29 }
 0x1d7   :  { %v7071_v48 = vpop.f32.mrb[4].mxu1  ;;  %5704 = vmatprep.mubr.msk.bf16.mxu0 %vm6298_vm0, %v8774_v0 }
 0x1d8   :  { %v5442_v57 = vpop.f32.mrb[5].mxu1 }
 0x1d9   :  { %v7075_v3 = vpop.f32.mrb[6].mxu1  ;;  %v7077_v35 = vpop.f32.mrb[104].mxu0 }
 0x1da   :  { %v5443_v40 = vpop.f32.mrb[7].mxu1  ;;  %v5554_v44 = vpop.f32.mrb[105].mxu0 }
 0x1db   :  { %v7082_v27 = vpop.f32.mrb[106].mxu0  ;;  %v6220_v40 = vld [vmem:[%s8760_s3 + $0x58] sm:$0xff]  }
 0x1dc   :  { %5537 = vmatmul.mubr.msk.bf16.gmra.mrb[96].mxu1 %vm503_vm2, %v6855_v22  ;;  %v5555_v45 = vpop.f32.mrb[107].mxu0 }
 0x1dd   :  { %5540 = vmatprep.mubr.msk.bf16.mxu1 %vm6298_vm0, %v8774_v0 }
 0x1de   :  { %5705 = vmatmul.mubr.msk.bf16.gmra.mrb[196].mxu0 %vm503_vm2, %v7080_v42 }
 0x1df   :  { %5708 = vmatprep.mubr.msk.bf16.mxu0 %vm6298_vm0, %v8774_v0 }
 0x1e4   :  { %5541 = vmatmul.mubr.msk.bf16.gmra.mrb[100].mxu1 %vm503_vm2, %v590_v46 }
 0x1e5   :  { %5604 = vmatprep.mubr.msk.bf16.mxu1 %vm6298_vm0, %v8774_v0 }
 0x1e6   :  { %5709 = vmatmul.mubr.msk.bf16.gmra.mrb[200].mxu0 %vm503_vm2, %v1563_v47 }
 0x1e7   :  { %v7100_v49 = vpop.f32.mrb[8].mxu1  ;;  %5772 = vmatprep.mubr.msk.bf16.mxu0 %vm6298_vm0, %v8774_v0 }
 0x1e8   :  { %v5446_v51 = vpop.f32.mrb[9].mxu1 }
 0x1e9   :  { %v7104_v53 = vpop.f32.mrb[10].mxu1  ;;  %v7106_v60 = vpop.f32.mrb[108].mxu0 }
 0x1ea   :  { %v5447_v14 = vpop.f32.mrb[11].mxu1  ;;  %v5558_v61 = vpop.f32.mrb[109].mxu0 }
 0x1eb   :  { %v7111_v26 = vpop.f32.mrb[110].mxu0 }
 0x1ec   :  { %v5559_v57 = vpop.f32.mrb[111].mxu0  ;;  %5605 = vmatmul.mubr.msk.bf16.vlgmr.msra.gmra.mrb[104].mxu1 %vm503_vm2, %v1295_v23 }
 0x1ed   :  { %5713 = vmatpush3.bf16.msra.mxu1 %v6219_v32  ;;  %5608 = vmatprep.mubr.msk.bf16.mxu1 %vm6298_vm0, %v8774_v0 }
 0x1ee   :  { %5773 = vmatmul.mubr.msk.bf16.vlgmr.msra.gmra.mrb[204].mxu0 %vm503_vm2, %v6975_v39  ;;  %5714 = vmatprep.subr.bf16.mxu1 %v8774_v0 }
 0x1ef   :  { %v7128_v44 = vpop.f32.mrb[12].mxu1  ;;  %5776 = vmatprep.mubr.msk.bf16.mxu0 %vm6298_vm0, %v8774_v0  ;;  %5881 = vmatpush3.bf16.msra.mxu0 %v6221_v33 }
 0x1f0   :  { %v5450_v19 = vpop.f32.mrb[13].mxu1  ;;  %5882 = vmatprep.subr.bf16.mxu0 %v8774_v0 }
 0x1f1   :  { %v7136_v23 = vpop.f32.mrb[14].mxu1  ;;  %v7138_v45 = vpop.f32.mrb[112].mxu0  ;;  %5715 = vmatpush3.bf16.msra.mxu1 %v6220_v40 }
 0x1f2   :  { %v5451_v39 = vpop.f32.mrb[15].mxu1  ;;  %v5562_v46 = vpop.f32.mrb[113].mxu0  ;;  %5824 = vmatprep.subr.bf16.mxu1 %v8774_v0 }
 0x1f3   :  { %v7141_v47 = vpop.f32.mrb[114].mxu0  ;;  %5883 = vmatpush3.bf16.msra.mxu0 %v6222_v18 }
 0x1f4   :  { %v5563_v51 = vpop.f32.mrb[115].mxu0  ;;  %5609 = vmatmul.mubr.msk.bf16.gmra.mrb[108].mxu1 %vm503_vm2, %v6696_v37  ;;  %6020 = vmatprep.subr.bf16.mxu0 %v8774_v0 }
 0x1f5   :  { %5612 = vmatprep.mubr.msk.bf16.mxu1 %vm6298_vm0, %v8774_v0 }
 0x1f6   :  { %5777 = vmatmul.mubr.msk.bf16.gmra.mrb[208].mxu0 %vm503_vm2, %v6745_v15 }
 0x1f7   :  { %v7150_v32 = vpop.f32.mrb[16].mxu1  ;;  %5780 = vmatprep.mubr.msk.bf16.mxu0 %vm6298_vm0, %v8774_v0 }
 0x1f8   :  { %v5454_v14 = vpop.f32.mrb[17].mxu1 }
 0x1f9   :  { %v7154_v61 = vpop.f32.mrb[18].mxu1  ;;  %v7156_v33 = vpop.f32.mrb[116].mxu0 }
 0x1fa   :  { %v5455_v57 = vpop.f32.mrb[19].mxu1  ;;  %v5566_v37 = vpop.f32.mrb[117].mxu0 }
 0x1fb   :  { %v7158_v40 = vpop.f32.mrb[118].mxu0 }
 0x1fc   :  { %v5567_v18 = vpop.f32.mrb[119].mxu0  ;;  %5613 = vmatmul.mubr.msk.bf16.gmra.mrb[112].mxu1 %vm503_vm2, %v1297_v1 }
 0x1fd   :  { %5616 = vmatprep.mubr.msk.bf16.mxu1 %vm6298_vm0, %v8774_v0 }
 0x1fe   :  { %5781 = vmatmul.mubr.msk.bf16.gmra.mrb[212].mxu0 %vm503_vm2, %v7007_v7 }
 0x1ff   :  { %5784 = vmatprep.mubr.msk.bf16.mxu0 %vm6298_vm0, %v8774_v0 }
 0x204   :  { %5617 = vmatmul.mubr.msk.bf16.gmra.mrb[116].mxu1 %vm503_vm2, %v6743_v13 }
 0x205   :  { %5620 = vmatprep.mubr.msk.bf16.mxu1 %vm6298_vm0, %v8774_v0 }
 0x206   :  { %5785 = vmatmul.mubr.msk.bf16.gmra.mrb[216].mxu0 %vm503_vm2, %v6793_v4 }
 0x207   :  { %v7176_v38 = vpop.f32.mrb[20].mxu1  ;;  %5788 = vmatprep.mubr.msk.bf16.mxu0 %vm6298_vm0, %v8774_v0 }
 0x208   :  { %v5458_v62 = vpop.f32.mrb[21].mxu1 }
 0x209   :  { %v7180_v1 = vpop.f32.mrb[22].mxu1  ;;  %v7182_v7 = vpop.f32.mrb[120].mxu0 }
 0x20a   :  { %v5459_v19 = vpop.f32.mrb[23].mxu1  ;;  %v5570_v39 = vpop.f32.mrb[121].mxu0 }
 0x20b   :  { %v7184_v46 = vpop.f32.mrb[122].mxu0 }
 0x20c   :  { %v5571_v13 = vpop.f32.mrb[123].mxu0  ;;  %5621 = vmatmul.mubr.msk.bf16.gmra.mrb[120].mxu1 %vm503_vm2, %v6762_v30 }
 0x20d   :  { %5624 = vmatprep.mubr.msk.bf16.mxu1 %vm6298_vm0, %v8774_v0 }
 0x20e   :  { %5789 = vmatmul.mubr.msk.bf16.gmra.mrb[220].mxu0 %vm503_vm2, %v6811_v21 }
 0x20f   :  { %v7192_v4 = vpop.f32.mrb[24].mxu1  ;;  %5792 = vmatprep.mubr.msk.bf16.mxu0 %vm6298_vm0, %v8774_v0 }
 0x210   :  { %v5462_v51 = vpop.f32.mrb[25].mxu1 }
 0x211   :  { %v7196_v14 = vpop.f32.mrb[26].mxu1  ;;  %v7198_v57 = vpop.f32.mrb[124].mxu0 }
 0x212   :  { %v5463_v37 = vpop.f32.mrb[27].mxu1  ;;  %v5574_v18 = vpop.f32.mrb[125].mxu0 }
 0x213   :  { %v7200_v62 = vpop.f32.mrb[126].mxu0 }
 0x214   :  { %v5575_v30 = vpop.f32.mrb[127].mxu0  ;;  %5625 = vmatmul.mubr.msk.bf16.gmra.mrb[124].mxu1 %vm503_vm2, %v1300_v58 }
 0x215   :  { %5628 = vmatprep.mubr.msk.bf16.mxu1 %vm6298_vm0, %v8774_v0 }
 0x216   :  { %5793 = vmatmul.mubr.msk.bf16.gmra.mrb[224].mxu0 %vm503_vm2, %v7057_v43  ;;  %v2053_v43 = vld [vmem:[#allocation2 + $0x118] sm:$0xff] }
 0x217   :  { %5796 = vmatprep.mubr.msk.bf16.mxu0 %vm6298_vm0, %v8774_v0 }
 0x21c   :  { %5629 = vmatmul.mubr.msk.bf16.gmra.mrb[128].mxu1 %vm503_vm2, %v6803_v16 }
 0x21d   :  { %5632 = vmatprep.mubr.msk.bf16.mxu1 %vm6298_vm0, %v8774_v0 }
 0x21e   :  { %5797 = vmatmul.mubr.msk.bf16.gmra.mrb[228].mxu0 %vm503_vm2, %v6855_v22  ;;  %v2070_v22 = vpack.c.bf16 %v2053_v43, %v6865_v36 }
 0x21f   :  { %v7218_v54 = vpop.f32.mrb[28].mxu1  ;;  %5800 = vmatprep.mubr.msk.bf16.mxu0 %vm6298_vm0, %v8774_v0 }
 0x220   :  { %v5466_v55 = vpop.f32.mrb[29].mxu1 }
 0x221   :  { %v7222_v58 = vpop.f32.mrb[30].mxu1  ;;  %v7224_v21 = vpop.f32.mrb[128].mxu0 }
 0x222   :  { %v5467_v19 = vpop.f32.mrb[31].mxu1  ;;  %v5578_v39 = vpop.f32.mrb[129].mxu0 }
 0x223   :  { %v7226_v16 = vpop.f32.mrb[130].mxu0 }
 0x224   :  { %v5579_v13 = vpop.f32.mrb[131].mxu0  ;;  %5633 = vmatmul.mubr.msk.bf16.gmra.mrb[132].mxu1 %vm503_vm2, %v1302_v56 }
 0x225   :  { %5636 = vmatprep.mubr.msk.bf16.mxu1 %vm6298_vm0, %v8774_v0 }
 0x226   :  { %5801 = vmatmul.mubr.msk.bf16.gmra.mrb[232].mxu0 %vm503_vm2, %v2070_v22 }
 0x227   :  { %v7236_v51 = vpop.f32.mrb[32].mxu1  ;;  %5804 = vmatprep.mubr.msk.bf16.mxu0 %vm6298_vm0, %v8774_v0 }
 0x228   :  { %v5470_v37 = vpop.f32.mrb[33].mxu1 }
 0x229   :  { %v7240_v18 = vpop.f32.mrb[34].mxu1  ;;  %v7242_v30 = vpop.f32.mrb[132].mxu0 }
 0x22a   :  { %v5471_v17 = vpop.f32.mrb[35].mxu1  ;;  %v5582_v52 = vpop.f32.mrb[133].mxu0 }
 0x22b   :  { %v7244_v56 = vpop.f32.mrb[134].mxu0  ;;  %v1305_v52 = vpack.c.bf16 %v7049_v11, %v2053_v43 }
 0x22c   :  { %v5583_v36 = vpop.f32.mrb[135].mxu0  ;;  %5637 = vmatmul.mubr.msk.bf16.gmra.mrb[136].mxu1 %vm503_vm2, %v6850_v12 }
 0x22d   :  { %5640 = vmatprep.mubr.msk.bf16.mxu1 %vm6298_vm0, %v8774_v0 }
 0x22e   :  { %5805 = vmatmul.mubr.msk.bf16.gmra.mrb[236].mxu0 %vm503_vm2, %v7061_v29  ;;  %v2058_v29 = vld [vmem:[#allocation2 + $0x150] sm:$0xff] }
 0x22f   :  { %v7252_v55 = vpop.f32.mrb[36].mxu1  ;;  %5808 = vmatprep.mubr.msk.bf16.mxu0 %vm6298_vm0, %v8774_v0  ;;  %v2073_v36 = vpack.c.bf16 %v7023_v28, %v2058_v29 }
 0x230   :  { %v5474_v19 = vpop.f32.mrb[37].mxu1 }
 0x231   :  { %v7256_v39 = vpop.f32.mrb[38].mxu1  ;;  %v7258_v13 = vpop.f32.mrb[136].mxu0 }
 0x232   :  { %v5475_v22 = vpop.f32.mrb[39].mxu1  ;;  %v5586_v37 = vpop.f32.mrb[137].mxu0 }
 0x233   :  { %v7260_v17 = vpop.f32.mrb[138].mxu0 }
 0x234   :  { %v5587_v12 = vpop.f32.mrb[139].mxu0  ;;  %5641 = vmatmul.mubr.msk.bf16.gmra.mrb[140].mxu1 %vm503_vm2, %v6869_v41 }
 0x235   :  { %5644 = vmatprep.mubr.msk.bf16.mxu1 %vm6298_vm0, %v8774_v0  ;;  %v7286_v12 = vpack.c.bf16 %v7037_v59, %v7025_v8 }
 0x236   :  { %5809 = vmatmul.mubr.msk.bf16.gmra.mrb[240].mxu0 %vm503_vm2, %v7080_v42 }
 0x237   :  { %5812 = vmatprep.mubr.msk.bf16.mxu0 %vm6298_vm0, %v8774_v0 }
 0x23c   :  { %5645 = vmatmul.mubr.msk.bf16.gmra.mrb[144].mxu1 %vm503_vm2, %v1305_v52 }
 0x23d   :  { %5648 = vmatprep.mubr.msk.bf16.mxu1 %vm6298_vm0, %v8774_v0 }
 0x23e   :  { %5813 = vmatmul.mubr.msk.bf16.gmra.mrb[244].mxu0 %vm503_vm2, %v2073_v36 }
 0x23f   :  { %v7276_v41 = vpop.f32.mrb[40].mxu1  ;;  %5816 = vmatprep.mubr.msk.bf16.mxu0 %vm6298_vm0, %v8774_v0 }
 0x240   :  { %v5478_v19 = vpop.f32.mrb[41].mxu1 }
 0x241   :  { %v7280_v22 = vpop.f32.mrb[42].mxu1  ;;  %v7282_v37 = vpop.f32.mrb[140].mxu0 }
 0x242   :  { %v5479_v11 = vpop.f32.mrb[43].mxu1  ;;  %v5590_v43 = vpop.f32.mrb[141].mxu0 }
 0x243   :  { %v7288_v29 = vpop.f32.mrb[142].mxu0 }
 0x244   :  { %8783 = vst [vmem:[#allocation10_spill] sm:$0xff] %v7288_v29  ;;  %v5591_v52 = vpop.f32.mrb[143].mxu0  ;;  %5649 = vmatmul.mubr.msk.bf16.gmra.mrb[148].mxu1 %vm503_vm2, %v6987_v63 }
 0x245   :  { %5652 = vmatprep.mubr.msk.bf16.mxu1 %vm6298_vm0, %v8774_v0 }
 0x246   :  { %5817 = vmatmul.mubr.msk.bf16.gmra.mrb[248].mxu0 %vm503_vm2, %v7286_v12 }
 0x247   :  { %v7296_v36 = vpop.f32.mrb[44].mxu1  ;;  %5820 = vmatprep.mubr.msk.bf16.mxu0 %vm6298_vm0, %v8774_v0 }
 0x248   :  { %8784 = vst [vmem:[#allocation11_spill] sm:$0xff] %v7296_v36  ;;  %v5482_v19 = vpop.f32.mrb[45].mxu1 }
 0x249   :  { %v7300_v11 = vpop.f32.mrb[46].mxu1  ;;  %v7302_v43 = vpop.f32.mrb[144].mxu0 }
 0x24a   :  { %8785 = vst [vmem:[#allocation12_spill] sm:$0xff] %v7300_v11  ;;  %8786 = vst [vmem:[#allocation13_spill] sm:$0xff] %v7302_v43  ;;  %v5483_v52 = vpop.f32.mrb[47].mxu1  ;;  %v5594_v9 = vpop.f32.mrb[145].mxu0  ;;  %v1782_v43 = vld [vmem:[#allocation2 + $0x48] sm:$0xff] }
 0x24b   :  { %v7308_v59 = vpop.f32.mrb[146].mxu0  ;;  %v1783_v52 = vld [vmem:[#allocation2 + $0x50] sm:$0xff] }
 0x24c   :  { %8787 = vst [vmem:[#allocation14_spill] sm:$0xff] %v7308_v59  ;;  %v5595_v28 = vpop.f32.mrb[147].mxu0  ;;  %5653 = vmatmul.mubr.msk.bf16.gmra.mrb[152].mxu1 %vm503_vm2, %v1307_v34  ;;  %v1807_v11 = vpack.c.bf16 %v1783_v52, %v1782_v43  ;;  %v1785_v43 = vld [vmem:[#allocation2 + $0x60] sm:$0xff] }
 0x24d   :  { %5716 = vmatprep.mubr.msk.bf16.mxu1 %vm6298_vm0, %v8774_v0  ;;  %v6223_v28 = vld [vmem:[%s8760_s3 + $0x70] sm:$0xff]  }
 0x24e   :  { %5821 = vmatmul.mubr.msk.bf16.gmra.mrb[252].mxu0 %vm503_vm2, %v2075_v6 }
 0x24f   :  { %v7314_v19 = vpop.f32.mrb[48].mxu1  ;;  %5884 = vmatprep.mubr.msk.bf16.mxu0 %vm6298_vm0, %v8774_v0 }
 0x250   :  { %8788 = vst [vmem:[#allocation15_spill] sm:$0xff] %v7314_v19  ;;  %v5486_v9 = vpop.f32.mrb[49].mxu1 }
 0x251   :  { %v823_v8 = vpop.f32.mrb[50].mxu1  ;;  %v7321_v59 = vpop.f32.mrb[148].mxu0 }
 0x252   :  { %8789 = vst [vmem:[#allocation16_spill] sm:$0xff] %v7321_v59  ;;  %v5487_v34 = vpop.f32.mrb[51].mxu1  ;;  %v5598_v36 = vpop.f32.mrb[149].mxu0  ;;  %v6224_v8 = vld [vmem:[%s8760_s3 + $0x78] sm:$0xff]  }
 0x253   :  { %v1241_v29 = vpop.f32.mrb[150].mxu0  ;;  %v7337_v34 = vld [vmem:[#allocation2 + $0x98] sm:$0xff] }
 0x254   :  { %5717 = vmatmul.mubr.msk.bf16.vlgmr.msra.gmra.mrb[156].mxu1 %vm503_vm2, %v1807_v11  ;;  %v5599_v6 = vpop.f32.mrb[151].mxu0 }
 0x255   :  { %5825 = vmatpush3.bf16.msra.mxu1 %v6223_v28  ;;  %5720 = vmatprep.mubr.msk.bf16.mxu1 %vm6298_vm0, %v8774_v0  ;;  %v1784_v28 = vld [vmem:[#allocation2 + $0x58] sm:$0xff] }
 0x256   :  { %5885 = vmatmul.mubr.msk.bf16.vlgmr.msra.gmra.mrb[0].mxu0 %vm503_vm2, %v6745_v15  ;;  %5826 = vmatprep.subr.bf16.mxu1 %v8774_v0  ;;  %v1808_v19 = vpack.c.bf16 %v1785_v43, %v1784_v28 }
 0x257   :  { %v911_v9 = vpop.f32.mrb[52].mxu1  ;;  %5888 = vmatprep.mubr.msk.bf16.mxu0 %vm6298_vm0, %v8774_v0 }
 0x258   :  { %v912_v29 = vadd.f32 %v911_v9, %v7045_v10  ;;  %v5494_v36 = vpop.f32.mrb[53].mxu1  ;;  %v2552_v10 = vld [vmem:[#allocation2 + $0x90] sm:$0xff] }
 0x259   :  { %v914_v11 = vpop.f32.mrb[54].mxu1  ;;  %v7335_v52 = vpop.f32.mrb[152].mxu0  ;;  %5827 = vmatpush3.bf16.msra.mxu1 %v6224_v8  ;;  %v2576_v36 = vpack.c.bf16 %v7337_v34, %v2552_v10 }
 0x25a   :  { %v915_v6 = vadd.f32 %v914_v11, %v7051_v24  ;;  %v5495_v15 = vpop.f32.mrb[55].mxu1  ;;  %v5662_v59 = vpop.f32.mrb[153].mxu0  ;;  %v7341_v50 = vadd.f32 %v7053_v25, %v912_v29  ;;  %5936 = vmatprep.subr.bf16.mxu1 %v8774_v0  ;;  %v7354_v24 = vld [vmem:[#allocation2 + $0x80] sm:$0xff]  ;;  %v1786_v11 = vld [vmem:[#allocation2 + $0x68] sm:$0xff] }
 0x25b   :  { %v7344_v2 = vpop.f32.mrb[154].mxu0 }
 0x25c   :  { %8790 = vst [vmem:[#allocation17_spill] sm:$0xff] %v7344_v2  ;;  %v5663_v9 = vpop.f32.mrb[155].mxu0  ;;  %5721 = vmatmul.mubr.msk.bf16.gmra.mrb[160].mxu1 %vm503_vm2, %v1808_v19  ;;  %v7349_v8 = vadd.f32 %v7063_v31, %v915_v6  ;;  %v7361_v31 = vld [vmem:[#allocation2 + $0xb8] sm:$0xff] }
 0x25d   :  { %5724 = vmatprep.mubr.msk.bf16.mxu1 %vm6298_vm0, %v8774_v0  ;;  %v1809_v9 = vpack.c.bf16 %v7354_v24, %v1786_v11 }
 0x25e   :  { %5889 = vmatmul.mubr.msk.bf16.gmra.mrb[4].mxu0 %vm503_vm2, %v2576_v36 }
 0x25f   :  { %v919_v59 = vpop.f32.mrb[56].mxu1  ;;  %5892 = vmatprep.mubr.msk.bf16.mxu0 %vm6298_vm0, %v8774_v0  ;;  %v2554_v0 = vld [vmem:[#allocation2 + $0xa0] sm:$0xff] }
 0x260   :  { %v920_v25 = vadd.f32 %v919_v59, %v7071_v48  ;;  %v5498_v43 = vpop.f32.mrb[57].mxu1  ;;  %v2577_v59 = vpack.c.bf16 %v7361_v31, %v2554_v0 }
 0x261   :  { %v922_v19 = vpop.f32.mrb[58].mxu1  ;;  %v7359_v29 = vpop.f32.mrb[156].mxu0 }
 0x262   :  { %8791 = vst [vmem:[#allocation18_spill] sm:$0xff] %v7359_v29  ;;  %v923_v28 = vadd.f32 %v922_v19, %v7075_v3  ;;  %v5499_v6 = vpop.f32.mrb[59].mxu1  ;;  %v5666_v15 = vpop.f32.mrb[157].mxu0  ;;  %v7366_v36 = vadd.f32 %v7077_v35, %v920_v25  ;;  %v8794_v29 = vmov 0.0  }
 0x263   :  { %v7368_v2 = vpop.f32.mrb[158].mxu0  ;;  %v1788_v6 = vld [vmem:[#allocation2 + $0x88] sm:$0xff] }
 0x264   :  { %8792 = vst [vmem:[#allocation19_spill] sm:$0xff] %v7368_v2  ;;  %v5667_v48 = vpop.f32.mrb[159].mxu0  ;;  %5725 = vmatmul.mubr.msk.bf16.gmra.mrb[164].mxu1 %vm503_vm2, %v1809_v9  ;;  %v7373_v43 = vadd.f32 %v7082_v27, %v923_v28  ;;  %v7383_v15 = vld [vmem:[#allocation2 + $0xc8] sm:$0xff] }
 0x265   :  { %5728 = vmatprep.mubr.msk.bf16.mxu1 %vm6298_vm0, %v8794_v29  ;;  %v7386_v48 = vpack.c.bf16 %v2552_v10, %v1788_v6  ;;  %v7407_v6 = vld [vmem:[#allocation2 + $0xd8] sm:$0xff] }
 0x266   :  { %8793 = vst [vmem:[#allocation20_spill] sm:$0xff] %v7373_v43  ;;  %5893 = vmatmul.mubr.msk.bf16.gmra.mrb[8].mxu0 %vm503_vm2, %v2577_v59  ;;  %v2556_v43 = vld [vmem:[#allocation2 + $0xc0] sm:$0xff] }
 0x267   :  { %v927_v3 = vpop.f32.mrb[60].mxu1  ;;  %5896 = vmatprep.mubr.msk.bf16.mxu0 %vm6298_vm0, %v8794_v29 }
 0x268   :  { %v928_v35 = vadd.f32 %v927_v3, %v7100_v49  ;;  %v5502_v25 = vpop.f32.mrb[61].mxu1  ;;  %v2578_v3 = vpack.c.bf16 %v7383_v15, %v2556_v43 }
 0x269   :  { %v930_v19 = vpop.f32.mrb[62].mxu1  ;;  %v7381_v11 = vpop.f32.mrb[160].mxu0 }
 0x26a   :  { %8795 = vst [vmem:[#allocation21_spill] sm:$0xff] %v7381_v11  ;;  %v931_v27 = vadd.f32 %v930_v19, %v7104_v53  ;;  %v5503_v28 = vpop.f32.mrb[63].mxu1  ;;  %v5670_v9 = vpop.f32.mrb[161].mxu0  ;;  %v7389_v59 = vadd.f32 %v7106_v60, %v928_v35 }
 0x26b   :  { %v7391_v2 = vpop.f32.mrb[162].mxu0  ;;  %v1811_v9 = vpack.c.bf16 %v2554_v0, %v7337_v34 }
 0x26c   :  { %8796 = vst [vmem:[#allocation22_spill] sm:$0xff] %v7391_v2  ;;  %v5671_v49 = vpop.f32.mrb[163].mxu0  ;;  %5729 = vmatmul.mubr.msk.bf16.gmra.mrb[168].mxu1 %vm503_vm2, %v7386_v48  ;;  %v7397_v25 = vadd.f32 %v7111_v26, %v931_v27  ;;  %v2558_v2 = vld [vmem:[#allocation2 + $0xd0] sm:$0xff] }
 0x26d   :  { %5732 = vmatprep.mubr.msk.bf16.mxu1 %vm6298_vm0, %v8794_v29 }
 0x26e   :  { %5897 = vmatmul.mubr.msk.bf16.gmra.mrb[12].mxu0 %vm503_vm2, %v2578_v3 }
 0x26f   :  { %v935_v53 = vpop.f32.mrb[64].mxu1  ;;  %5900 = vmatprep.mubr.msk.bf16.mxu0 %vm6298_vm0, %v8794_v29 }
 0x270   :  { %v936_v60 = vadd.f32 %v935_v53, %v7128_v44  ;;  %v5506_v10 = vpop.f32.mrb[65].mxu1  ;;  %v2579_v44 = vpack.c.bf16 %v7407_v6, %v2558_v2 }
 0x271   :  { %v938_v35 = vpop.f32.mrb[66].mxu1  ;;  %v7405_v19 = vpop.f32.mrb[164].mxu0  ;;  %v2561_v10 = vld [vmem:[#allocation2 + $0xf8] sm:$0xff] }
 0x272   :  { %v939_v26 = vadd.f32 %v938_v35, %v7136_v23  ;;  %v5507_v27 = vpop.f32.mrb[67].mxu1  ;;  %v5674_v28 = vpop.f32.mrb[165].mxu0  ;;  %v7412_v49 = vadd.f32 %v7138_v45, %v936_v60 }
 0x273   :  { %v7414_v3 = vpop.f32.mrb[166].mxu0  ;;  %v7431_v27 = vpack.c.bf16 %v2556_v43, %v7361_v31 }
 0x274   :  { %v5675_v11 = vpop.f32.mrb[167].mxu0  ;;  %5733 = vmatmul.mubr.msk.bf16.gmra.mrb[172].mxu1 %vm503_vm2, %v1811_v9  ;;  %v7419_v53 = vadd.f32 %v7141_v47, %v939_v26 }
 0x275   :  { %5736 = vmatprep.mubr.msk.bf16.mxu1 %vm6298_vm0, %v8794_v29 }
 0x276   :  { %5901 = vmatmul.mubr.msk.bf16.gmra.mrb[16].mxu0 %vm503_vm2, %v2579_v44  ;;  %v7438_v44 = vld [vmem:[#allocation2 + $0xf0] sm:$0xff] }
 0x277   :  { %v943_v0 = vpop.f32.mrb[68].mxu1  ;;  %5904 = vmatprep.mubr.msk.bf16.mxu0 %vm6298_vm0, %v8794_v29 }
 0x278   :  { %v944_v23 = vadd.f32 %v943_v0, %v7150_v32  ;;  %v5510_v45 = vpop.f32.mrb[69].mxu1  ;;  %v2580_v0 = vpack.c.bf16 %v2561_v10, %v7438_v44 }
 0x279   :  { %v946_v11 = vpop.f32.mrb[70].mxu1  ;;  %v7427_v60 = vpop.f32.mrb[168].mxu0 }
 0x27a   :  { %v947_v35 = vadd.f32 %v946_v11, %v7154_v61  ;;  %v5511_v47 = vpop.f32.mrb[71].mxu1  ;;  %v5678_v26 = vpop.f32.mrb[169].mxu0  ;;  %v7434_v28 = vadd.f32 %v7156_v33, %v944_v23  ;;  %v7454_v11 = vld [vmem:[#allocation2 + $0x108] sm:$0xff] }
 0x27b   :  { %v7436_v9 = vpop.f32.mrb[170].mxu0  ;;  %v7458_v26 = vpack.c.bf16 %v2558_v2, %v7383_v15 }
 0x27c   :  { %8797 = vst [vmem:[#allocation23_spill] sm:$0xff] %v7436_v9  ;;  %v5679_v32 = vpop.f32.mrb[171].mxu0  ;;  %5737 = vmatmul.mubr.msk.bf16.gmra.mrb[176].mxu1 %vm503_vm2, %v7431_v27  ;;  %v7444_v61 = vadd.f32 %v7158_v40, %v947_v35  ;;  %v2562_v9 = vld [vmem:[#allocation2 + $0x100] sm:$0xff] }
 0x27d   :  { %5740 = vmatprep.mubr.msk.bf16.mxu1 %vm6298_vm0, %v8794_v29 }
 0x27e   :  { %5905 = vmatmul.mubr.msk.bf16.gmra.mrb[20].mxu0 %vm503_vm2, %v2580_v0 }
 0x27f   :  { %v951_v33 = vpop.f32.mrb[72].mxu1  ;;  %5908 = vmatprep.mubr.msk.bf16.mxu0 %vm6298_vm0, %v8794_v29 }
 0x280   :  { %v952_v31 = vadd.f32 %v951_v33, %v7176_v38  ;;  %v5514_v43 = vpop.f32.mrb[73].mxu1  ;;  %v2581_v33 = vpack.c.bf16 %v7454_v11, %v2562_v9 }
 0x281   :  { %v954_v23 = vpop.f32.mrb[74].mxu1  ;;  %v7452_v45 = vpop.f32.mrb[172].mxu0 }
 0x282   :  { %v955_v40 = vadd.f32 %v954_v23, %v7180_v1  ;;  %v5515_v35 = vpop.f32.mrb[75].mxu1  ;;  %v5682_v47 = vpop.f32.mrb[173].mxu0  ;;  %v7461_v32 = vadd.f32 %v7182_v7, %v952_v31 }
 0x283   :  { %v7463_v0 = vpop.f32.mrb[174].mxu0 }
 0x284   :  { %8798 = vst [vmem:[#allocation24_spill] sm:$0xff] %v7463_v0  ;;  %v5683_v38 = vpop.f32.mrb[175].mxu0  ;;  %5741 = vmatmul.mubr.msk.bf16.gmra.mrb[180].mxu1 %vm503_vm2, %v7458_v26  ;;  %v7469_v43 = vadd.f32 %v7184_v46, %v955_v40  ;;  %v1814_v40 = vpack.c.bf16 %v7438_v44, %v7407_v6 }
 0x285   :  { %5744 = vmatprep.mubr.msk.bf16.mxu1 %vm6298_vm0, %v8794_v29 }
 0x286   :  { %5909 = vmatmul.mubr.msk.bf16.gmra.mrb[24].mxu0 %vm503_vm2, %v2581_v33  ;;  %v2564_v33 = vld [vmem:[#allocation2 + $0x110] sm:$0xff] }
 0x287   :  { %v959_v2 = vpop.f32.mrb[76].mxu1  ;;  %5912 = vmatprep.mubr.msk.bf16.mxu0 %vm6298_vm0, %v8794_v29 }
 0x288   :  { %v960_v1 = vadd.f32 %v959_v2, %v7192_v4  ;;  %v5518_v7 = vpop.f32.mrb[77].mxu1  ;;  %v2582_v4 = vpack.c.bf16 %v6982_v20, %v2564_v33 }
 0x289   :  { %v962_v15 = vpop.f32.mrb[78].mxu1  ;;  %v7477_v31 = vpop.f32.mrb[176].mxu0 }
 0x28a   :  { %v963_v23 = vadd.f32 %v962_v15, %v7196_v14  ;;  %v5519_v35 = vpop.f32.mrb[79].mxu1  ;;  %v5686_v46 = vpop.f32.mrb[177].mxu0  ;;  %v7483_v47 = vadd.f32 %v7198_v57, %v960_v1  ;;  %v7501_v15 = vpack.c.bf16 %v2562_v9, %v2561_v10 }
 0x28b   :  { %v7485_v38 = vpop.f32.mrb[178].mxu0 }
 0x28c   :  { %v5687_v0 = vpop.f32.mrb[179].mxu0  ;;  %5745 = vmatmul.mubr.msk.bf16.gmra.mrb[184].mxu1 %vm503_vm2, %v1814_v40  ;;  %v7490_v2 = vadd.f32 %v7200_v62, %v963_v23 }
 0x28d   :  { %5748 = vmatprep.mubr.msk.bf16.mxu1 %vm6298_vm0, %v8794_v29 }
 0x28e   :  { %5913 = vmatmul.mubr.msk.bf16.gmra.mrb[28].mxu0 %vm503_vm2, %v2582_v4  ;;  %v2569_v4 = vld [vmem:[#allocation2 + $0x148] sm:$0xff] }
 0x28f   :  { %v967_v14 = vpop.f32.mrb[80].mxu1  ;;  %5916 = vmatprep.mubr.msk.bf16.mxu0 %vm6298_vm0, %v8794_v29 }
 0x290   :  { %v968_v57 = vadd.f32 %v967_v14, %v7218_v54  ;;  %v5522_v6 = vpop.f32.mrb[81].mxu1 }
 0x291   :  { %v970_v0 = vpop.f32.mrb[82].mxu1  ;;  %v7498_v1 = vpop.f32.mrb[180].mxu0  ;;  %v1816_v6 = vpack.c.bf16 %v2564_v33, %v7454_v11 }
 0x292   :  { %v971_v20 = vadd.f32 %v970_v0, %v7222_v58  ;;  %v5523_v7 = vpop.f32.mrb[83].mxu1  ;;  %v5690_v62 = vpop.f32.mrb[181].mxu0  ;;  %v7504_v23 = vadd.f32 %v7224_v21, %v968_v57 }
 0x293   :  { %v7506_v35 = vpop.f32.mrb[182].mxu0 }
 0x294   :  { %v5691_v46 = vpop.f32.mrb[183].mxu0  ;;  %5749 = vmatmul.mubr.msk.bf16.gmra.mrb[188].mxu1 %vm503_vm2, %v7501_v15  ;;  %v7511_v54 = vadd.f32 %v7226_v16, %v971_v20 }
 0x295   :  { %5752 = vmatprep.mubr.msk.bf16.mxu1 %vm6298_vm0, %v8794_v29 }
 0x296   :  { %5917 = vmatmul.mubr.msk.bf16.gmra.mrb[32].mxu0 %vm503_vm2, %v7080_v42 }
 0x297   :  { %v975_v58 = vpop.f32.mrb[84].mxu1  ;;  %5920 = vmatprep.mubr.msk.bf16.mxu0 %vm6298_vm0, %v8794_v29 }
 0x298   :  { %v976_v21 = vadd.f32 %v975_v58, %v7236_v51  ;;  %v5526_v10 = vpop.f32.mrb[85].mxu1  ;;  %v2584_v51 = vpack.c.bf16 %v2569_v4, %v6997_v5 }
 0x299   :  { %v978_v9 = vpop.f32.mrb[86].mxu1  ;;  %v7520_v40 = vpop.f32.mrb[184].mxu0 }
 0x29a   :  { %v979_v16 = vadd.f32 %v978_v9, %v7240_v18  ;;  %v5527_v14 = vpop.f32.mrb[87].mxu1  ;;  %v5694_v57 = vpop.f32.mrb[185].mxu0  ;;  %v7525_v0 = vadd.f32 %v7242_v30, %v976_v21 }
 0x29b   :  { %v7527_v42 = vpop.f32.mrb[186].mxu0 }
 0x29c   :  { %v5695_v20 = vpop.f32.mrb[187].mxu0  ;;  %5753 = vmatmul.mubr.msk.bf16.gmra.mrb[192].mxu1 %vm503_vm2, %v1816_v6  ;;  %v7532_v7 = vadd.f32 %v7244_v56, %v979_v16  ;;  %v7560_v6 = vld [vmem:[#allocation2 + $0x178] sm:$0xff] }
 0x29d   :  { %5756 = vmatprep.mubr.msk.bf16.mxu1 %vm6298_vm0, %v8794_v29  ;;  %8799 = vst [vmem:[#allocation25_spill] sm:$0xff] %v7560_v6 }
 0x29e   :  { %5921 = vmatmul.mubr.msk.bf16.gmra.mrb[36].mxu0 %vm503_vm2, %v2584_v51 }
 0x29f   :  { %v983_v18 = vpop.f32.mrb[88].mxu1  ;;  %5924 = vmatprep.mubr.msk.bf16.mxu0 %vm6298_vm0, %v8794_v29 }
 0x2a0   :  { %v984_v30 = vadd.f32 %v983_v18, %v7252_v55  ;;  %v5530_v33 = vpop.f32.mrb[89].mxu1 }
 0x2a1   :  { %v986_v62 = vpop.f32.mrb[90].mxu1  ;;  %v7540_v46 = vpop.f32.mrb[188].mxu0 }
 0x2a2   :  { %v987_v58 = vadd.f32 %v986_v62, %v7256_v39  ;;  %v5531_v21 = vpop.f32.mrb[91].mxu1  ;;  %v5698_v56 = vpop.f32.mrb[189].mxu0  ;;  %v7544_v10 = vadd.f32 %v7258_v13, %v984_v30  ;;  %v8800_v30 = vld [vmem:[#allocation5_spill] sm:$0xff] }
 0x2a3   :  { %v7546_v9 = vpop.f32.mrb[190].mxu0  ;;  %v8801_v33 = vpack.c.bf16 %v6997_v5, %v8800_v30  ;;  %v8803_v21 = vld [vmem:[#allocation10_spill] sm:$0xff] }
 0x2a4   :  { %v5699_v16 = vpop.f32.mrb[191].mxu0  ;;  %5757 = vmatmul.mubr.msk.bf16.gmra.mrb[196].mxu1 %vm503_vm2, %v6987_v63  ;;  %v7551_v14 = vadd.f32 %v7260_v17, %v987_v58 }
 0x2a5   :  { %5760 = vmatprep.mubr.msk.bf16.mxu1 %vm6298_vm0, %v8794_v29 }
 0x2a6   :  { %5925 = vmatmul.mubr.msk.bf16.gmra.mrb[40].mxu0 %vm503_vm2, %v7286_v12 }
 0x2a7   :  { %v991_v55 = vpop.f32.mrb[92].mxu1  ;;  %5928 = vmatprep.mubr.msk.bf16.mxu0 %vm6298_vm0, %v8794_v29 }
 0x2a8   :  { %v992_v39 = vadd.f32 %v991_v55, %v7276_v41  ;;  %v5534_v13 = vpop.f32.mrb[93].mxu1  ;;  %v8802_v41 = vld [vmem:[#allocation9_spill] sm:$0xff] }
 0x2a9   :  { %v994_v57 = vpop.f32.mrb[94].mxu1  ;;  %v7562_v63 = vpop.f32.mrb[192].mxu0  ;;  %v2586_v62 = vpack.c.bf16 %v7560_v6, %v8802_v41 }
 0x2aa   :  { %v995_v17 = vadd.f32 %v994_v57, %v7280_v22  ;;  %v5535_v20 = vpop.f32.mrb[95].mxu1  ;;  %v5702_v51 = vpop.f32.mrb[193].mxu0  ;;  %v7566_v18 = vadd.f32 %v7282_v37, %v992_v39  ;;  %v8804_v37 = vld [vmem:[#allocation11_spill] sm:$0xff]  ;;  %v2574_v39 = vld [vmem:[#allocation2 + $0x180] sm:$0xff]  ;;  %v8805_v57 = vld [vmem:[#allocation12_spill] sm:$0xff] }
 0x2ab   :  { %v7568_v12 = vpop.f32.mrb[194].mxu0  ;;  %v1819_v51 = vpack.c.bf16 %v2569_v4, %v2569_v4  ;;  %v8808_v4 = vld [vmem:[#allocation15_spill] sm:$0xff] }
 0x2ac   :  { %5761 = vmatmul.mubr.msk.bf16.gmra.mrb[200].mxu1 %vm503_vm2, %v8801_v33  ;;  %v5703_v58 = vpop.f32.mrb[195].mxu0  ;;  %v7577_v56 = vadd.f32 %v8803_v21, %v995_v17  ;;  %v8806_v33 = vld [vmem:[#allocation13_spill] sm:$0xff]  ;;  %v2587_v21 = vpack.c.bf16 %v2574_v39, %v2574_v39 }
 0x2ad   :  { %5764 = vmatprep.mubr.msk.bf16.mxu1 %vm6298_vm0, %v8794_v29 }
 0x2ae   :  { %5929 = vmatmul.mubr.msk.bf16.gmra.mrb[44].mxu0 %vm503_vm2, %v2586_v62 }
 0x2af   :  { %v999_v22 = vpop.f32.mrb[96].mxu1  ;;  %5932 = vmatprep.mubr.msk.bf16.mxu0 %vm6298_vm0, %v8794_v29 }
 0x2b0   :  { %v1000_v5 = vadd.f32 %v999_v22, %v8804_v37  ;;  %v5538_v16 = vpop.f32.mrb[97].mxu1  ;;  %v8807_v22 = vld [vmem:[#allocation14_spill] sm:$0xff] }
 0x2b1   :  { %v1002_v55 = vpop.f32.mrb[98].mxu1  ;;  %v7585_v13 = vpop.f32.mrb[196].mxu0 }
 0x2b2   :  { %v1003_v20 = vadd.f32 %v1002_v55, %v8805_v57  ;;  %v5539_v17 = vpop.f32.mrb[99].mxu1  ;;  %v5706_v30 = vpop.f32.mrb[197].mxu0  ;;  %v7589_v58 = vadd.f32 %v8806_v33, %v1000_v5 }
 0x2b3   :  { %v7591_v62 = vpop.f32.mrb[198].mxu0  ;;  %v2294_v17 = vld [vmem:[#allocation2 + $0x78] sm:$0xff]  ;;  %v8810_v30 = vld [vmem:[#allocation16_spill] sm:$0xff] }
 0x2b4   :  { %5765 = vmatmul.mubr.msk.bf16.gmra.mrb[204].mxu1 %vm503_vm2, %v1819_v51  ;;  %v5707_v6 = vpop.f32.mrb[199].mxu0  ;;  %v7595_v37 = vadd.f32 %v8807_v22, %v1003_v20  ;;  %v2319_v39 = vpack.c.bf16 %v7354_v24, %v2294_v17 }
 0x2b5   :  { %5828 = vmatprep.mubr.msk.bf16.mxu1 %vm6298_vm0, %v8794_v29 }
 0x2b6   :  { %5933 = vmatmul.mubr.msk.bf16.gmra.mrb[48].mxu0 %vm503_vm2, %v2587_v21 }
 0x2b7   :  { %v1007_v16 = vpop.f32.mrb[100].mxu1  ;;  %6028 = vmatprep.mubr.msk.bf16.mxu0 %vm6298_vm0, %v8794_v29 }
 0x2b8   :  { %v1008_v5 = vadd.f32 %v1007_v16, %v8808_v4  ;;  %v5542_v55 = vpop.f32.mrb[101].mxu1 }
 0x2b9   :  { %v1010_v57 = vpop.f32.mrb[102].mxu1  ;;  %v7603_v51 = vpop.f32.mrb[200].mxu0 }
 0x2ba   :  { %8809 = vst [vmem:[#allocation5_spill] sm:$0xff] %v7603_v51  ;;  %v5543_v6 = vpop.f32.mrb[103].mxu1  ;;  %v5710_v20 = vpop.f32.mrb[201].mxu0  ;;  %v7607_v33 = vadd.f32 %v8810_v30, %v1008_v5  ;;  %v8813_v30 = vld [vmem:[#allocation17_spill] sm:$0xff] }
 0x2bb   :  { %v1753_v22 = vpop.f32.mrb[202].mxu0 }
 0x2bc   :  { %5829 = vmatmul.mubr.msk.bf16.vlgmr.msra.gmra.mrb[208].mxu1 %vm503_vm2, %v2319_v39  ;;  %v5711_v21 = vpop.f32.mrb[203].mxu0 }
 0x2bd   :  { %5832 = vmatprep.mubr.msk.bf16.mxu1 %vm6298_vm0, %v8794_v29  ;;  %v2299_v21 = vld [vmem:[#allocation2 + $0xb0] sm:$0xff] }
 0x2bf   :  { %v1398_v16 = vpop.f32.mrb[104].mxu1 }
 0x2c0   :  { %v1500_v4 = vadd.f32 %v1398_v16, %v7341_v50  ;;  %v5606_v55 = vpop.f32.mrb[105].mxu1 }
 0x2c1   :  { %v1401_v57 = vpop.f32.mrb[106].mxu1  ;;  %v7613_v51 = vpop.f32.mrb[204].mxu0 }
 0x2c2   :  { %8811 = vst [vmem:[#allocation9_spill] sm:$0xff] %v7613_v51  ;;  %v1501_v24 = vadd.f32 %v1401_v57, %v7349_v8  ;;  %v5607_v17 = vpop.f32.mrb[107].mxu1  ;;  %v5774_v6 = vpop.f32.mrb[205].mxu0  ;;  %v7617_v5 = vadd.f32 %v7335_v52, %v1500_v4  ;;  %v8814_v4 = vld [vmem:[#allocation20_spill] sm:$0xff]  ;;  %v8816_v51 = vld [vmem:[#allocation19_spill] sm:$0xff] }
 0x2c3   :  { %v7619_v20 = vpop.f32.mrb[206].mxu0 }
 0x2c4   :  { %8812 = vst [vmem:[#allocation10_spill] sm:$0xff] %v7619_v20  ;;  %v5775_v39 = vpop.f32.mrb[207].mxu0  ;;  %5833 = vmatmul.mubr.msk.bf16.gmra.mrb[212].mxu1 %vm503_vm2, %v7386_v48  ;;  %v7624_v22 = vadd.f32 %v8813_v30, %v1501_v24  ;;  %v2321_v48 = vpack.c.bf16 %v2299_v21, %v7337_v34 }
 0x2c5   :  { %5836 = vmatprep.mubr.msk.bf16.mxu1 %vm6298_vm0, %v8794_v29  ;;  %v8815_v39 = vld [vmem:[#allocation18_spill] sm:$0xff] }
 0x2c7   :  { %v1406_v50 = vpop.f32.mrb[108].mxu1 }
 0x2c8   :  { %v1502_v8 = vadd.f32 %v1406_v50, %v7366_v36  ;;  %v5610_v16 = vpop.f32.mrb[109].mxu1 }
 0x2c9   :  { %v1409_v55 = vpop.f32.mrb[110].mxu1  ;;  %v7629_v52 = vpop.f32.mrb[208].mxu0 }
 0x2ca   :  { %v1503_v57 = vadd.f32 %v1409_v55, %v8814_v4  ;;  %v5611_v17 = vpop.f32.mrb[111].mxu1  ;;  %v5778_v6 = vpop.f32.mrb[209].mxu0  ;;  %v7634_v24 = vadd.f32 %v8815_v39, %v1502_v8 }
 0x2cb   :  { %v7636_v30 = vpop.f32.mrb[210].mxu0 }
 0x2cc   :  { %v5779_v20 = vpop.f32.mrb[211].mxu0  ;;  %5837 = vmatmul.mubr.msk.bf16.gmra.mrb[216].mxu1 %vm503_vm2, %v2321_v48  ;;  %v7640_v36 = vadd.f32 %v8816_v51, %v1503_v57  ;;  %v6225_v51 = vld [vmem:[%s8762_s5 + $0x20] sm:$0xff]  }
 0x2cd   :  { %5840 = vmatprep.mubr.msk.bf16.mxu1 %vm6298_vm0, %v8794_v29  ;;  %v8817_v20 = vld [vmem:[#allocation21_spill] sm:$0xff]  ;;  %5937 = vmatpush3.bf16.msra.mxu1 %v6225_v51 }
 0x2ce   :  { %5938 = vmatprep.subr.bf16.mxu1 %v8794_v29 }
 0x2cf   :  { %v1414_v50 = vpop.f32.mrb[112].mxu1 }
 0x2d0   :  { %v1504_v16 = vadd.f32 %v1414_v50, %v7389_v59  ;;  %v5614_v55 = vpop.f32.mrb[113].mxu1  ;;  %v8818_v59 = vld [vmem:[#allocation22_spill] sm:$0xff] }
 0x2d1   :  { %v1417_v4 = vpop.f32.mrb[114].mxu1  ;;  %v7645_v34 = vpop.f32.mrb[212].mxu0 }
 0x2d2   :  { %v1505_v21 = vadd.f32 %v1417_v4, %v7397_v25  ;;  %v5615_v8 = vpop.f32.mrb[115].mxu1  ;;  %v5782_v17 = vpop.f32.mrb[213].mxu0  ;;  %v7649_v6 = vadd.f32 %v8817_v20, %v1504_v16 }
 0x2d3   :  { %v7651_v48 = vpop.f32.mrb[214].mxu0 }
 0x2d4   :  { %v5783_v57 = vpop.f32.mrb[215].mxu0  ;;  %5841 = vmatmul.mubr.msk.bf16.gmra.mrb[220].mxu1 %vm503_vm2, %v7431_v27  ;;  %v7659_v39 = vadd.f32 %v8818_v59, %v1505_v21 }
 0x2d5   :  { %5844 = vmatprep.mubr.msk.bf16.mxu1 %vm6298_vm0, %v8794_v29 }
 0x2d7   :  { %v1422_v25 = vpop.f32.mrb[116].mxu1 }
 0x2d8   :  { %v1506_v50 = vadd.f32 %v1422_v25, %v7412_v49  ;;  %v5618_v16 = vpop.f32.mrb[117].mxu1  ;;  %v2304_v25 = vld [vmem:[#allocation2 + $0xe8] sm:$0xff] }
 0x2d9   :  { %v1425_v55 = vpop.f32.mrb[118].mxu1  ;;  %v7665_v4 = vpop.f32.mrb[216].mxu0 }
 0x2da   :  { %v1507_v8 = vadd.f32 %v1425_v55, %v7419_v53  ;;  %v5619_v17 = vpop.f32.mrb[119].mxu1  ;;  %v5786_v27 = vpop.f32.mrb[217].mxu0  ;;  %v7669_v21 = vadd.f32 %v7405_v19, %v1506_v50 }
 0x2db   :  { %v7671_v20 = vpop.f32.mrb[218].mxu0 }
 0x2dc   :  { %v5787_v57 = vpop.f32.mrb[219].mxu0  ;;  %5845 = vmatmul.mubr.msk.bf16.gmra.mrb[224].mxu1 %vm503_vm2, %v7458_v26  ;;  %v7676_v51 = vadd.f32 %v7414_v3, %v1507_v8  ;;  %v2324_v26 = vpack.c.bf16 %v7438_v44, %v2304_v25 }
 0x2dd   :  { %5848 = vmatprep.mubr.msk.bf16.mxu1 %vm6298_vm0, %v8794_v29 }
 0x2df   :  { %v1430_v49 = vpop.f32.mrb[120].mxu1 }
 0x2e0   :  { %v1508_v53 = vadd.f32 %v1430_v49, %v7434_v28  ;;  %v5622_v59 = vpop.f32.mrb[121].mxu1  ;;  %v8819_v28 = vld [vmem:[#allocation23_spill] sm:$0xff] }
 0x2e1   :  { %v1433_v16 = vpop.f32.mrb[122].mxu1  ;;  %v7681_v19 = vpop.f32.mrb[220].mxu0 }
 0x2e2   :  { %v1509_v50 = vadd.f32 %v1433_v16, %v7444_v61  ;;  %v5623_v55 = vpop.f32.mrb[123].mxu1  ;;  %v5790_v17 = vpop.f32.mrb[221].mxu0  ;;  %v7686_v3 = vadd.f32 %v7427_v60, %v1508_v53 }
 0x2e3   :  { %v7688_v8 = vpop.f32.mrb[222].mxu0 }
 0x2e4   :  { %v5791_v27 = vpop.f32.mrb[223].mxu0  ;;  %5849 = vmatmul.mubr.msk.bf16.gmra.mrb[228].mxu1 %vm503_vm2, %v2324_v26  ;;  %v7692_v57 = vadd.f32 %v8819_v28, %v1509_v50  ;;  %v8820_v26 = vld [vmem:[#allocation24_spill] sm:$0xff] }
 0x2e5   :  { %5852 = vmatprep.mubr.msk.bf16.mxu1 %vm6298_vm0, %v8794_v29 }
 0x2e7   :  { %v1438_v49 = vpop.f32.mrb[124].mxu1 }
 0x2e8   :  { %v1510_v61 = vadd.f32 %v1438_v49, %v7461_v32  ;;  %v5626_v59 = vpop.f32.mrb[125].mxu1  ;;  %v6226_v32 = vld [vmem:[%s8762_s5 + $0x28] sm:$0xff]  }
 0x2e9   :  { %v1441_v16 = vpop.f32.mrb[126].mxu1  ;;  %v7697_v44 = vpop.f32.mrb[224].mxu0  ;;  %5939 = vmatpush3.bf16.msra.mxu1 %v6226_v32 }
 0x2ea   :  { %v1511_v60 = vadd.f32 %v1441_v16, %v7469_v43  ;;  %v5627_v53 = vpop.f32.mrb[127].mxu1  ;;  %v5794_v25 = vpop.f32.mrb[225].mxu0  ;;  %v7701_v55 = vadd.f32 %v7452_v45, %v1510_v61  ;;  %v2309_v45 = vld [vmem:[#allocation2 + $0x120] sm:$0xff]  ;;  %5940 = vmatprep.subr.bf16.mxu1 %v8794_v29 }
 0x2eb   :  { %v7703_v17 = vpop.f32.mrb[226].mxu0  ;;  %v2326_v53 = vpack.c.bf16 %v2309_v45, %v7454_v11 }
 0x2ec   :  { %v5795_v50 = vpop.f32.mrb[227].mxu0  ;;  %5853 = vmatmul.mubr.msk.bf16.gmra.mrb[232].mxu1 %vm503_vm2, %v7501_v15  ;;  %v7708_v27 = vadd.f32 %v8820_v26, %v1511_v60 }
 0x2ed   :  { %5856 = vmatprep.mubr.msk.bf16.mxu1 %vm6298_vm0, %v8794_v29 }
 0x2ef   :  { %v1446_v43 = vpop.f32.mrb[128].mxu1 }
 0x2f0   :  { %v1512_v28 = vadd.f32 %v1446_v43, %v7483_v47  ;;  %v5630_v49 = vpop.f32.mrb[129].mxu1  ;;  %v2311_v43 = vld [vmem:[#allocation2 + $0x130] sm:$0xff] }
 0x2f1   :  { %v1449_v61 = vpop.f32.mrb[130].mxu1  ;;  %v7717_v15 = vpop.f32.mrb[228].mxu0 }
 0x2f2   :  { %v1513_v59 = vadd.f32 %v1449_v61, %v7490_v2  ;;  %v5631_v16 = vpop.f32.mrb[131].mxu1  ;;  %v5798_v60 = vpop.f32.mrb[229].mxu0  ;;  %v7722_v25 = vadd.f32 %v7477_v31, %v1512_v28  ;;  %v2310_v2 = vld [vmem:[#allocation2 + $0x128] sm:$0xff] }
 0x2f3   :  { %v7724_v50 = vpop.f32.mrb[230].mxu0  ;;  %v2327_v60 = vpack.c.bf16 %v2311_v43, %v2310_v2 }
 0x2f4   :  { %v5799_v26 = vpop.f32.mrb[231].mxu0  ;;  %5857 = vmatmul.mubr.msk.bf16.gmra.mrb[236].mxu1 %vm503_vm2, %v2326_v53  ;;  %v7728_v47 = vadd.f32 %v7485_v38, %v1513_v59 }
 0x2f5   :  { %5860 = vmatprep.mubr.msk.bf16.mxu1 %vm6298_vm0, %v8794_v29 }
 0x2f7   :  { %v1454_v32 = vpop.f32.mrb[132].mxu1 }
 0x2f8   :  { %v1514_v49 = vadd.f32 %v1454_v32, %v7504_v23  ;;  %v5634_v11 = vpop.f32.mrb[133].mxu1  ;;  %v2312_v32 = vld [vmem:[#allocation2 + $0x138] sm:$0xff] }
 0x2f9   :  { %v1457_v45 = vpop.f32.mrb[134].mxu1  ;;  %v7733_v31 = vpop.f32.mrb[232].mxu0 }
 0x2fa   :  { %v1515_v28 = vadd.f32 %v1457_v45, %v7511_v54  ;;  %v5635_v61 = vpop.f32.mrb[135].mxu1  ;;  %v5802_v16 = vpop.f32.mrb[233].mxu0  ;;  %v7737_v38 = vadd.f32 %v7498_v1, %v1514_v49  ;;  %v2313_v54 = vld [vmem:[#allocation2 + $0x140] sm:$0xff] }
 0x2fb   :  { %v7739_v59 = vpop.f32.mrb[234].mxu0  ;;  %v2328_v16 = vpack.c.bf16 %v2313_v54, %v2312_v32 }
 0x2fc   :  { %v5803_v53 = vpop.f32.mrb[235].mxu0  ;;  %5861 = vmatmul.mubr.msk.bf16.gmra.mrb[240].mxu1 %vm503_vm2, %v2327_v60  ;;  %v7743_v26 = vadd.f32 %v7506_v35, %v1515_v28 }
 0x2fd   :  { %5864 = vmatprep.mubr.msk.bf16.mxu1 %vm6298_vm0, %v8794_v29 }
 0x2ff   :  { %v1462_v23 = vpop.f32.mrb[136].mxu1 }
 0x300   :  { %v1516_v11 = vadd.f32 %v1462_v23, %v7525_v0  ;;  %v5638_v2 = vpop.f32.mrb[137].mxu1  ;;  %v6227_v0 = vld [vmem:[%s8762_s5 + $0x30] sm:$0xff]  }
 0x301   :  { %v1465_v43 = vpop.f32.mrb[138].mxu1  ;;  %v7748_v1 = vpop.f32.mrb[236].mxu0  ;;  %5941 = vmatpush3.bf16.msra.mxu1 %v6227_v0 }
 0x302   :  { %v1517_v49 = vadd.f32 %v1465_v43, %v7532_v7  ;;  %v5639_v45 = vpop.f32.mrb[139].mxu1  ;;  %v5806_v61 = vpop.f32.mrb[237].mxu0  ;;  %v7752_v35 = vadd.f32 %v7520_v40, %v1516_v11  ;;  %5942 = vmatprep.subr.bf16.mxu1 %v8794_v29 }
 0x303   :  { %v7754_v28 = vpop.f32.mrb[238].mxu0  ;;  %v8821_v61 = vld [vmem:[#allocation7_spill] sm:$0xff] }
 0x304   :  { %v5807_v60 = vpop.f32.mrb[239].mxu0  ;;  %5865 = vmatmul.mubr.msk.bf16.gmra.mrb[244].mxu1 %vm503_vm2, %v2328_v16  ;;  %v7758_v53 = vadd.f32 %v7527_v42, %v1517_v49  ;;  %v8822_v16 = vld [vmem:[#allocation6_spill] sm:$0xff] }
 0x305   :  { %5868 = vmatprep.mubr.msk.bf16.mxu1 %vm6298_vm0, %v8794_v29  ;;  %v8823_v60 = vpack.c.bf16 %v8821_v61, %v8822_v16 }
 0x307   :  { %v1470_v7 = vpop.f32.mrb[140].mxu1 }
 0x308   :  { %v1518_v40 = vadd.f32 %v1470_v7, %v7544_v10  ;;  %v5642_v23 = vpop.f32.mrb[141].mxu1 }
 0x309   :  { %v1473_v32 = vpop.f32.mrb[142].mxu1  ;;  %v7767_v54 = vpop.f32.mrb[240].mxu0 }
 0x30a   :  { %v1519_v42 = vadd.f32 %v1473_v32, %v7551_v14  ;;  %v5643_v11 = vpop.f32.mrb[143].mxu1  ;;  %v5810_v2 = vpop.f32.mrb[241].mxu0  ;;  %v7771_v43 = vadd.f32 %v7540_v46, %v1518_v40 }
 0x30b   :  { %v7773_v49 = vpop.f32.mrb[242].mxu0 }
 0x30c   :  { %v5811_v45 = vpop.f32.mrb[243].mxu0  ;;  %5869 = vmatmul.mubr.msk.bf16.gmra.mrb[248].mxu1 %vm503_vm2, %v8823_v60  ;;  %v7780_v10 = vadd.f32 %v7546_v9, %v1519_v42  ;;  %v8824_v9 = vld [vmem:[#allocation8_spill] sm:$0xff] }
 0x30d   :  { %5872 = vmatprep.mubr.msk.bf16.mxu1 %vm6298_vm0, %v8794_v29  ;;  %v8825_v42 = vpack.c.bf16 %v8802_v41, %v8824_v9  ;;  %v8826_v41 = vld [vmem:[#allocation25_spill] sm:$0xff] }
 0x30f   :  { %v1478_v14 = vpop.f32.mrb[144].mxu1 }
 0x310   :  { %v1520_v0 = vadd.f32 %v1478_v14, %v7566_v18  ;;  %v5646_v7 = vpop.f32.mrb[145].mxu1 }
 0x311   :  { %v1481_v46 = vpop.f32.mrb[146].mxu1  ;;  %v7785_v40 = vpop.f32.mrb[244].mxu0 }
 0x312   :  { %v1521_v23 = vadd.f32 %v1481_v46, %v7577_v56  ;;  %v5647_v32 = vpop.f32.mrb[147].mxu1  ;;  %v5814_v11 = vpop.f32.mrb[245].mxu0  ;;  %v7789_v2 = vadd.f32 %v7562_v63, %v1520_v0  ;;  %v2331_v46 = vpack.c.bf16 %v8826_v41, %v8826_v41 }
 0x313   :  { %v7791_v45 = vpop.f32.mrb[246].mxu0 }
 0x314   :  { %5873 = vmatmul.mubr.msk.bf16.gmra.mrb[252].mxu1 %vm503_vm2, %v8825_v42  ;;  %v5815_v61 = vpop.f32.mrb[247].mxu0  ;;  %v7798_v18 = vadd.f32 %v7568_v12, %v1521_v23 }
 0x315   :  { %5876 = vmatprep.mubr.msk.bf16.mxu1 %vm6298_vm0, %v8794_v29 }
 0x317   :  { %v1486_v56 = vpop.f32.mrb[148].mxu1 }
 0x318   :  { %v1522_v16 = vadd.f32 %v1486_v56, %v7589_v58  ;;  %v5650_v60 = vpop.f32.mrb[149].mxu1 }
 0x319   :  { %v1489_v63 = vpop.f32.mrb[150].mxu1  ;;  %v7803_v14 = vpop.f32.mrb[248].mxu0  ;;  %v8827_v60 = vld [vmem:[#allocation5_spill] sm:$0xff] }
 0x31a   :  { %v1523_v0 = vadd.f32 %v1489_v63, %v7595_v37  ;;  %v5651_v7 = vpop.f32.mrb[151].mxu1  ;;  %v5818_v32 = vpop.f32.mrb[249].mxu0  ;;  %v7809_v12 = vadd.f32 %v7585_v13, %v1522_v16 }
 0x31b   :  { %v7811_v23 = vpop.f32.mrb[250].mxu0 }
 0x31c   :  { %5877 = vmatmul.mubr.msk.bf16.gmra.mrb[0].mxu1 %vm503_vm2, %v2331_v46  ;;  %v5819_v11 = vpop.f32.mrb[251].mxu0  ;;  %v7815_v58 = vadd.f32 %v7591_v62, %v1523_v0  ;;  %v6228_v62 = vld [vmem:[%s8762_s5 + $0x38] sm:$0xff]  }
 0x31d   :  { %5944 = vmatprep.mubr.msk.bf16.mxu1 %vm6298_vm0, %v8794_v29  ;;  %5943 = vmatpush3.bf16.msra.mxu1 %v6228_v62  ;;  %v6230_v62 = vld [vmem:[%s8762_s5 + $0x68] sm:$0xff]  }
 0x31e   :  { %5964 = vmatprep.subr.bf16.mxu1 %v8794_v29 }
 0x31f   :  { %v1494_v37 = vpop.f32.mrb[152].mxu1 }
 0x320   :  { %v1524_v9 = vadd.f32 %v1494_v37, %v7607_v33  ;;  %v5654_v42 = vpop.f32.mrb[153].mxu1  ;;  %v6229_v37 = vld [vmem:[%s8762_s5 + $0x60] sm:$0xff]  }
 0x321   :  { %v1497_v61 = vpop.f32.mrb[154].mxu1  ;;  %v7820_v56 = vpop.f32.mrb[252].mxu0  ;;  %6021 = vmatpush3.bf16.msra.mxu0 %v6229_v37  ;;  %v6231_v37 = vld [vmem:[%s8762_s5 + $0x70] sm:$0xff]  }
 0x322   :  { %v5655_v13 = vpop.f32.mrb[155].mxu1  ;;  %v5822_v16 = vpop.f32.mrb[253].mxu0  ;;  %v7823_v63 = vadd.f32 %v8827_v60, %v1524_v9  ;;  %6022 = vmatprep.subr.bf16.mxu0 %v8794_v29 }
 0x323   :  { %v2265_v7 = vpop.f32.mrb[254].mxu0  ;;  %v8828_v13 = vld [vmem:[#allocation9_spill] sm:$0xff] }
 0x324   :  { %v5823_v41 = vpop.f32.mrb[255].mxu0  ;;  %v8829_v7 = vld [vmem:[#allocation10_spill] sm:$0xff] }
 0x325   :  { %6023 = vmatpush3.bf16.msra.mxu0 %v6230_v62  ;;  %v6232_v62 = vld [vmem:[%s8762_s5 + $0x78] sm:$0xff]  }
 0x326   :  { %6024 = vmatprep.subr.bf16.mxu0 %v8794_v29 }
 0x327   :  { %v1910_v0 = vpop.f32.mrb[156].mxu1 }
 0x328   :  { %v2012_v46 = vadd.f32 %v1910_v0, %v7617_v5  ;;  %v5718_v33 = vpop.f32.mrb[157].mxu1 }
 0x329   :  { %v1913_v32 = vpop.f32.mrb[158].mxu1  ;;  %v7830_v11 = vpop.f32.mrb[0].mxu0  ;;  %6025 = vmatpush3.bf16.msra.mxu0 %v6231_v37 }
 0x32a   :  { %v2013_v9 = vadd.f32 %v1913_v32, %v7624_v22  ;;  %v5719_v42 = vpop.f32.mrb[159].mxu1  ;;  %v5886_v61 = vpop.f32.mrb[1].mxu0  ;;  %v7837_v16 = vadd.f32 %v8828_v13, %v2012_v46  ;;  %6026 = vmatprep.subr.bf16.mxu0 %v8794_v29 }
 0x32b   :  { %v7839_v60 = vpop.f32.mrb[2].mxu0 }
 0x32c   :  { %v5887_v5 = vpop.f32.mrb[3].mxu0  ;;  %v7842_v41 = vadd.f32 %v8829_v7, %v2013_v9 }
 0x32d   :  { %6027 = vmatpush3.bf16.msra.mxu0 %v6232_v62 }
 0x32e   :  { %6076 = vmatprep.subr.bf16.mxu0 %v8794_v29 }
 0x32f   :  { %v1918_v0 = vpop.f32.mrb[160].mxu1 }
 0x330   :  { %v2014_v22 = vadd.f32 %v1918_v0, %v7634_v24  ;;  %v5722_v33 = vpop.f32.mrb[161].mxu1 }
 0x331   :  { %v1921_v46 = vpop.f32.mrb[162].mxu1  ;;  %v7850_v32 = vpop.f32.mrb[4].mxu0 }
 0x332   :  { %v2015_v9 = vadd.f32 %v1921_v46, %v7640_v36  ;;  %v5723_v42 = vpop.f32.mrb[163].mxu1  ;;  %v5890_v61 = vpop.f32.mrb[5].mxu0  ;;  %v7857_v13 = vadd.f32 %v7629_v52, %v2014_v22 }
 0x333   :  { %v7859_v5 = vpop.f32.mrb[6].mxu0 }
 0x334   :  { %v5891_v24 = vpop.f32.mrb[7].mxu0  ;;  %v7862_v7 = vadd.f32 %v7636_v30, %v2015_v9 }
 0x337   :  { %v1926_v0 = vpop.f32.mrb[164].mxu1 }
 0x338   :  { %v2016_v36 = vadd.f32 %v1926_v0, %v7649_v6  ;;  %v5726_v33 = vpop.f32.mrb[165].mxu1 }
 0x339   :  { %v1929_v52 = vpop.f32.mrb[166].mxu1  ;;  %v7870_v22 = vpop.f32.mrb[8].mxu0 }
 0x33a   :  { %v2017_v46 = vadd.f32 %v1929_v52, %v7659_v39  ;;  %v5727_v30 = vpop.f32.mrb[167].mxu1  ;;  %v5894_v37 = vpop.f32.mrb[9].mxu0  ;;  %v7874_v9 = vadd.f32 %v7645_v34, %v2016_v36 }
 0x33b   :  { %v7876_v42 = vpop.f32.mrb[10].mxu0 }
 0x33c   :  { %v5895_v61 = vpop.f32.mrb[11].mxu0  ;;  %v7879_v24 = vadd.f32 %v7651_v48, %v2017_v46 }
 0x33f   :  { %v1934_v6 = vpop.f32.mrb[168].mxu1 }
 0x340   :  { %v2018_v62 = vadd.f32 %v1934_v6, %v7669_v21  ;;  %v5730_v0 = vpop.f32.mrb[169].mxu1 }
 0x341   :  { %v1937_v33 = vpop.f32.mrb[170].mxu1  ;;  %v7882_v29 = vpop.f32.mrb[12].mxu0 }
 0x342   :  { %v2019_v39 = vadd.f32 %v1937_v33, %v7676_v51  ;;  %v5731_v52 = vpop.f32.mrb[171].mxu1  ;;  %v5898_v30 = vpop.f32.mrb[13].mxu0  ;;  %v7886_v34 = vadd.f32 %v7665_v4, %v2018_v62 }
 0x343   :  { %v7888_v36 = vpop.f32.mrb[14].mxu0 }
 0x344   :  { %v5899_v37 = vpop.f32.mrb[15].mxu0  ;;  %v7891_v48 = vadd.f32 %v7671_v20, %v2019_v39 }
 0x347   :  { %v1942_v46 = vpop.f32.mrb[172].mxu1 }
 0x348   :  { %v2020_v21 = vadd.f32 %v1942_v46, %v7686_v3  ;;  %v5734_v61 = vpop.f32.mrb[173].mxu1 }
 0x349   :  { %v1945_v6 = vpop.f32.mrb[174].mxu1  ;;  %v7894_v0 = vpop.f32.mrb[16].mxu0 }
 0x34a   :  { %v2021_v51 = vadd.f32 %v1945_v6, %v7692_v57  ;;  %v5735_v33 = vpop.f32.mrb[175].mxu1  ;;  %v5902_v52 = vpop.f32.mrb[17].mxu0  ;;  %v7898_v4 = vadd.f32 %v7681_v19, %v2020_v21 }
 0x34b   :  { %v7900_v62 = vpop.f32.mrb[18].mxu0 }
 0x34c   :  { %v5903_v30 = vpop.f32.mrb[19].mxu0  ;;  %v7903_v20 = vadd.f32 %v7688_v8, %v2021_v51 }
 0x34f   :  { %v1950_v39 = vpop.f32.mrb[176].mxu1 }
 0x350   :  { %v2022_v3 = vadd.f32 %v1950_v39, %v7701_v55  ;;  %v5738_v37 = vpop.f32.mrb[177].mxu1 }
 0x351   :  { %v1953_v46 = vpop.f32.mrb[178].mxu1  ;;  %v7906_v61 = vpop.f32.mrb[20].mxu0 }
 0x352   :  { %v2023_v57 = vadd.f32 %v1953_v46, %v7708_v27  ;;  %v5739_v6 = vpop.f32.mrb[179].mxu1  ;;  %v5906_v33 = vpop.f32.mrb[21].mxu0  ;;  %v7910_v19 = vadd.f32 %v7697_v44, %v2022_v3 }
 0x353   :  { %v7912_v21 = vpop.f32.mrb[22].mxu0 }
 0x354   :  { %v5907_v52 = vpop.f32.mrb[23].mxu0  ;;  %v7915_v8 = vadd.f32 %v7703_v17, %v2023_v57 }
 0x357   :  { %v1958_v51 = vpop.f32.mrb[180].mxu1 }
 0x358   :  { %v2024_v55 = vadd.f32 %v1958_v51, %v7722_v25  ;;  %v5742_v30 = vpop.f32.mrb[181].mxu1 }
 0x359   :  { %v1961_v39 = vpop.f32.mrb[182].mxu1  ;;  %v7918_v37 = vpop.f32.mrb[24].mxu0 }
 0x35a   :  { %v2025_v27 = vadd.f32 %v1961_v39, %v7728_v47  ;;  %v5743_v46 = vpop.f32.mrb[183].mxu1  ;;  %v5910_v6 = vpop.f32.mrb[25].mxu0  ;;  %v7922_v44 = vadd.f32 %v7717_v15, %v2024_v55 }
 0x35b   :  { %v7924_v3 = vpop.f32.mrb[26].mxu0 }
 0x35c   :  { %v5911_v33 = vpop.f32.mrb[27].mxu0  ;;  %v7927_v17 = vadd.f32 %v7724_v50, %v2025_v27 }
 0x35f   :  { %v1966_v57 = vpop.f32.mrb[184].mxu1 }
 0x360   :  { %v2026_v25 = vadd.f32 %v1966_v57, %v7737_v38  ;;  %v5746_v52 = vpop.f32.mrb[185].mxu1 }
 0x361   :  { %v1969_v51 = vpop.f32.mrb[186].mxu1  ;;  %v7930_v30 = vpop.f32.mrb[28].mxu0 }
 0x362   :  { %v2027_v47 = vadd.f32 %v1969_v51, %v7743_v26  ;;  %v5747_v39 = vpop.f32.mrb[187].mxu1  ;;  %v5914_v46 = vpop.f32.mrb[29].mxu0  ;;  %v7934_v15 = vadd.f32 %v7733_v31, %v2026_v25 }
 0x363   :  { %v7936_v55 = vpop.f32.mrb[30].mxu0 }
 0x364   :  { %v5915_v6 = vpop.f32.mrb[31].mxu0  ;;  %v7939_v50 = vadd.f32 %v7739_v59, %v2027_v47 }
 0x367   :  { %v1974_v27 = vpop.f32.mrb[188].mxu1 }
 0x368   :  { %v2028_v38 = vadd.f32 %v1974_v27, %v7752_v35  ;;  %v5750_v33 = vpop.f32.mrb[189].mxu1 }
 0x369   :  { %v1977_v57 = vpop.f32.mrb[190].mxu1  ;;  %v7942_v52 = vpop.f32.mrb[32].mxu0 }
 0x36a   :  { %v2029_v26 = vadd.f32 %v1977_v57, %v7758_v53  ;;  %v5751_v51 = vpop.f32.mrb[191].mxu1  ;;  %v5918_v39 = vpop.f32.mrb[33].mxu0  ;;  %v7946_v31 = vadd.f32 %v7748_v1, %v2028_v38 }
 0x36b   :  { %v7948_v25 = vpop.f32.mrb[34].mxu0 }
 0x36c   :  { %v5919_v46 = vpop.f32.mrb[35].mxu0  ;;  %v7951_v59 = vadd.f32 %v7754_v28, %v2029_v26 }
 0x36f   :  { %v1982_v47 = vpop.f32.mrb[192].mxu1 }
 0x370   :  { %v2030_v35 = vadd.f32 %v1982_v47, %v7771_v43  ;;  %v5754_v6 = vpop.f32.mrb[193].mxu1 }
 0x371   :  { %v1985_v27 = vpop.f32.mrb[194].mxu1  ;;  %v7954_v33 = vpop.f32.mrb[36].mxu0 }
 0x372   :  { %v2031_v53 = vadd.f32 %v1985_v27, %v7780_v10  ;;  %v5755_v57 = vpop.f32.mrb[195].mxu1  ;;  %v5922_v51 = vpop.f32.mrb[37].mxu0  ;;  %v7958_v1 = vadd.f32 %v7767_v54, %v2030_v35 }
 0x373   :  { %v7960_v38 = vpop.f32.mrb[38].mxu0 }
 0x374   :  { %v5923_v39 = vpop.f32.mrb[39].mxu0  ;;  %v7963_v28 = vadd.f32 %v7773_v49, %v2031_v53 }
 0x377   :  { %v1990_v26 = vpop.f32.mrb[196].mxu1 }
 0x378   :  { %v2032_v43 = vadd.f32 %v1990_v26, %v7789_v2  ;;  %v5758_v46 = vpop.f32.mrb[197].mxu1 }
 0x379   :  { %v1993_v47 = vpop.f32.mrb[198].mxu1  ;;  %v7966_v6 = vpop.f32.mrb[40].mxu0 }
 0x37a   :  { %v2033_v10 = vadd.f32 %v1993_v47, %v7798_v18  ;;  %v5759_v27 = vpop.f32.mrb[199].mxu1  ;;  %v5926_v57 = vpop.f32.mrb[41].mxu0  ;;  %v7970_v54 = vadd.f32 %v7785_v40, %v2032_v43 }
 0x37b   :  { %v7972_v35 = vpop.f32.mrb[42].mxu0 }
 0x37c   :  { %v5927_v51 = vpop.f32.mrb[43].mxu0  ;;  %v7975_v49 = vadd.f32 %v7791_v45, %v2033_v10 }
 0x37f   :  { %v1998_v53 = vpop.f32.mrb[200].mxu1 }
 0x380   :  { %v2034_v2 = vadd.f32 %v1998_v53, %v7809_v12  ;;  %v5762_v39 = vpop.f32.mrb[201].mxu1 }
 0x381   :  { %v2001_v26 = vpop.f32.mrb[202].mxu1  ;;  %v7978_v46 = vpop.f32.mrb[44].mxu0 }
 0x382   :  { %8830 = vst [vmem:[#allocation11_spill] sm:$0xff] %v7978_v46  ;;  %v2035_v18 = vadd.f32 %v2001_v26, %v7815_v58  ;;  %v5763_v47 = vpop.f32.mrb[203].mxu1  ;;  %v5930_v27 = vpop.f32.mrb[45].mxu0  ;;  %v7982_v40 = vadd.f32 %v7803_v14, %v2034_v2 }
 0x383   :  { %v7984_v43 = vpop.f32.mrb[46].mxu0 }
 0x384   :  { %v5931_v57 = vpop.f32.mrb[47].mxu0  ;;  %v7987_v45 = vadd.f32 %v7811_v23, %v2035_v18  ;;  %v7999_v23 = vld [vmem:[%s8763_s4] ss:$0 sm:$0xff] }
 0x387   :  { %v2006_v10 = vpop.f32.mrb[204].mxu1 }
 0x388   :  { %v2036_v12 = vadd.f32 %v2006_v10, %v7823_v63  ;;  %v5766_v51 = vpop.f32.mrb[205].mxu1 }
 0x389   :  { %v2009_v53 = vpop.f32.mrb[206].mxu1  ;;  %v7990_v39 = vpop.f32.mrb[48].mxu0 }
 0x38a   :  { %v5767_v46 = vpop.f32.mrb[207].mxu1  ;;  %v5934_v58 = vpop.f32.mrb[49].mxu0  ;;  %v7993_v26 = vadd.f32 %v7820_v56, %v2036_v12 }
 0x38b   :  { %v2777_v14 = vpop.f32.mrb[50].mxu0 }
 0x38c   :  { %v5935_v2 = vpop.f32.mrb[51].mxu0 }
 0x38f   :  { %v2422_v47 = vpop.f32.mrb[208].mxu1 }
 0x390   :  { %v2524_v27 = vadd.f32 %v2422_v47, %v7837_v16  ;;  %v5830_v57 = vpop.f32.mrb[209].mxu1 }
 0x391   :  { %v2425_v63 = vpop.f32.mrb[210].mxu1 }
 0x392   :  { %v2780_v18 = vadd.f32 %v7830_v11, %v2524_v27  ;;  %v2525_v46 = vadd.f32 %v2425_v63, %v7842_v41  ;;  %v5831_v10 = vpop.f32.mrb[211].mxu1 }
 0x394   :  { %v2812_v56 = vadd.f32 %v7999_v23, %v2780_v18  ;;  %v2781_v12 = vadd.f32 %v7839_v60, %v2525_v46 }
 0x396   :  { %v2837_v51 = vmax.f32 %v2812_v56, 0.0  ;;  %v2813_v53 = vadd.f32 %v7999_v23, %v2781_v12 }
 0x397   :  { %v2430_v16 = vpop.f32.mrb[212].mxu1 }
 0x398   :  { %2862 = vst.msk [vmem:[#allocation3] sm:$0xff] %vm146_vm1, %v2837_v51  ;;  %v2838_v58 = vmax.f32 %v2813_v53, 0.0  ;;  %v2526_v14 = vadd.f32 %v2430_v16, %v7857_v13  ;;  %v5834_v2 = vpop.f32.mrb[213].mxu1 }
 0x399   :  { %v2433_v47 = vpop.f32.mrb[214].mxu1 }
 0x39a   :  { %2863 = vst.msk [vmem:[#allocation3 + $0x8] sm:$0xff] %vm146_vm1, %v2838_v58  ;;  %v2782_v11 = vadd.f32 %v7850_v32, %v2526_v14  ;;  %v2527_v41 = vadd.f32 %v2433_v47, %v7862_v7  ;;  %v5835_v27 = vpop.f32.mrb[215].mxu1  ;;  %v6233_v47 = vld [vmem:[%s8762_s5] sm:$0xff]  }
 0x39c   :  { %v2814_v60 = vadd.f32 %v7999_v23, %v2782_v11  ;;  %v2783_v57 = vadd.f32 %v7859_v5, %v2527_v41 }
 0x39e   :  { %v2839_v63 = vmax.f32 %v2814_v60, 0.0  ;;  %v2815_v18 = vadd.f32 %v7999_v23, %v2783_v57 }
 0x39f   :  { %v2438_v46 = vpop.f32.mrb[216].mxu1 }
 0x3a0   :  { %2864 = vst.msk [vmem:[#allocation3 + $0x10] sm:$0xff] %vm146_vm1, %v2839_v63  ;;  %v2840_v13 = vmax.f32 %v2815_v18, 0.0  ;;  %v2528_v10 = vadd.f32 %v2438_v46, %v7874_v9  ;;  %v5838_v56 = vpop.f32.mrb[217].mxu1  ;;  %v8831_v46 = vmov 0.0  }
 0x3a1   :  { %v2441_v12 = vpop.f32.mrb[218].mxu1  ;;  %v8022_v14 = vld [vmem:[#allocation3 + $0x8] sm:$0xff] }
 0x3a2   :  { %2865 = vst.msk [vmem:[#allocation3 + $0x18] sm:$0xff] %vm146_vm1, %v2840_v13  ;;  %v2784_v32 = vadd.f32 %v7870_v22, %v2528_v10  ;;  %v2529_v7 = vadd.f32 %v2441_v12, %v7879_v24  ;;  %v5839_v51 = vpop.f32.mrb[219].mxu1  ;;  %v6235_v12 = vld [vmem:[%s8762_s5 + $0x10] sm:$0xff]  }
 0x3a4   :  { %v2816_v5 = vadd.f32 %v7999_v23, %v2784_v32  ;;  %v2785_v53 = vadd.f32 %v7876_v42, %v2529_v7 }
 0x3a6   :  { %v2841_v16 = vmax.f32 %v2816_v5, 0.0  ;;  %v2817_v58 = vadd.f32 %v7999_v23, %v2785_v53 }
 0x3a7   :  { %v8024_v2 = vld [vmem:[#allocation3 + $0x10] sm:$0xff]  ;;  %v2446_v9 = vpop.f32.mrb[220].mxu1 }
 0x3a8   :  { %v2919_v22 = vpack.c.bf16 %v8024_v2, %v8022_v14  ;;  %2866 = vst.msk [vmem:[#allocation3 + $0x20] sm:$0xff] %vm146_vm1, %v2841_v16  ;;  %v2842_v24 = vmax.f32 %v2817_v58, 0.0  ;;  %v2530_v42 = vadd.f32 %v2446_v9, %v7886_v34  ;;  %v5842_v11 = vpop.f32.mrb[221].mxu1  ;;  %v6234_v34 = vld [vmem:[%s8762_s5 + $0x8] sm:$0xff]   ;;  %v6236_v58 = vld [vmem:[%s8762_s5 + $0x18] sm:$0xff]  }
 0x3a9   :  { %v8033_v41 = vld [vmem:[#allocation3 + $0x18] sm:$0xff]  ;;  %v2449_v27 = vpop.f32.mrb[222].mxu1 }
 0x3aa   :  { %v3165_v60 = vpack.c.bf16 %v8033_v41, %v8024_v2  ;;  %2867 = vst.msk [vmem:[#allocation3 + $0x28] sm:$0xff] %vm146_vm1, %v2842_v24  ;;  %v2786_v57 = vadd.f32 %v7882_v29, %v2530_v42  ;;  %v2531_v63 = vadd.f32 %v2449_v27, %v7891_v48  ;;  %v5843_v18 = vpop.f32.mrb[223].mxu1  ;;  %5945 = vmatmul.mubr.msk.bf16.vlgmr.msra.gmra.mrb[4].mxu1 %vm146_vm1, %v2919_v22 }
 0x3ab   :  { %5948 = vmatprep.mubr.msk.bf16.mxu1 %vm6298_vm0, %v8831_v46  ;;  %5965 = vmatpush3.bf16.msra.mxu1 %v6233_v47 }
 0x3ac   :  { %v2818_v13 = vadd.f32 %v7999_v23, %v2786_v57  ;;  %v2787_v10 = vadd.f32 %v7888_v36, %v2531_v63  ;;  %5966 = vmatprep.subr.bf16.mxu1 %v8831_v46  ;;  %v6238_v63 = vld [vmem:[%s8762_s5 + $0xa0] sm:$0xff]  }
 0x3ae   :  { %v2843_v29 = vmax.f32 %v2818_v13, 0.0  ;;  %v2819_v48 = vadd.f32 %v7999_v23, %v2787_v10 }
 0x3af   :  { %v2454_v56 = vpop.f32.mrb[224].mxu1  ;;  %5967 = vmatpush3.bf16.msra.mxu1 %v6234_v34 }
 0x3b0   :  { %2868 = vst.msk [vmem:[#allocation3 + $0x30] sm:$0xff] %vm146_vm1, %v2843_v29  ;;  %v2844_v32 = vmax.f32 %v2819_v48, 0.0  ;;  %v2532_v7 = vadd.f32 %v2454_v56, %v7898_v4  ;;  %v5846_v51 = vpop.f32.mrb[225].mxu1  ;;  %5968 = vmatprep.subr.bf16.mxu1 %v8831_v46 }
 0x3b1   :  { %v2457_v36 = vpop.f32.mrb[226].mxu1  ;;  %v8066_v24 = vld [vmem:[#allocation3 + $0x28] sm:$0xff] }
 0x3b2   :  { %2869 = vst.msk [vmem:[#allocation3 + $0x38] sm:$0xff] %vm146_vm1, %v2844_v32  ;;  %v2788_v5 = vadd.f32 %v7894_v0, %v2532_v7  ;;  %v2533_v53 = vadd.f32 %v2457_v36, %v7903_v20  ;;  %v5847_v16 = vpop.f32.mrb[227].mxu1 }
 0x3b3   :  { %5969 = vmatpush3.bf16.msra.mxu1 %v6235_v12 }
 0x3b4   :  { %v2820_v9 = vadd.f32 %v7999_v23, %v2788_v5  ;;  %v2789_v4 = vadd.f32 %v7900_v62, %v2533_v53  ;;  %5970 = vmatprep.subr.bf16.mxu1 %v8831_v46  ;;  %v6240_v5 = vld [vmem:[%s8762_s5 + $0xb0] sm:$0xff]  }
 0x3b6   :  { %v2845_v47 = vmax.f32 %v2820_v9, 0.0  ;;  %v2821_v22 = vadd.f32 %v7999_v23, %v2789_v4 }
 0x3b7   :  { %v8068_v0 = vld [vmem:[#allocation3 + $0x30] sm:$0xff]  ;;  %v2462_v20 = vpop.f32.mrb[228].mxu1  ;;  %5971 = vmatpush3.bf16.msra.mxu1 %v6236_v58 }
 0x3b8   :  { %v3309_v42 = vpack.c.bf16 %v8068_v0, %v8066_v24  ;;  %2870 = vst.msk [vmem:[#allocation3 + $0x40] sm:$0xff] %vm146_vm1, %v2845_v47  ;;  %v2846_v11 = vmax.f32 %v2821_v22, 0.0  ;;  %v2534_v27 = vadd.f32 %v2462_v20, %v7910_v19  ;;  %v5850_v62 = vpop.f32.mrb[229].mxu1  ;;  %v2920_v57 = vpack.c.bf16 %v8068_v0, %v8033_v41  ;;  %5992 = vmatprep.subr.bf16.mxu1 %v8831_v46  ;;  %v6242_v47 = vld [vmem:[%s8762_s5 + $0xb8] sm:$0xff]  }
 0x3b9   :  { %v2465_v18 = vpop.f32.mrb[230].mxu1  ;;  %v8096_v56 = vld [vmem:[#allocation3 + $0x38] sm:$0xff] }
 0x3ba   :  { %2871 = vst.msk [vmem:[#allocation3 + $0x48] sm:$0xff] %vm146_vm1, %v2846_v11  ;;  %v2790_v34 = vadd.f32 %v7906_v61, %v2534_v27  ;;  %v2535_v13 = vadd.f32 %v2465_v18, %v7915_v8  ;;  %v5851_v10 = vpop.f32.mrb[231].mxu1  ;;  %5949 = vmatmul.mubr.msk.bf16.gmra.mrb[8].mxu1 %vm146_vm1, %v2920_v57  ;;  %6029 = vmatmul.mubr.msk.bf16.vlgmr.msra.gmra.mrb[52].mxu0 %vm146_vm1, %v3309_v42  ;;  %v6239_v61 = vld [vmem:[%s8762_s5 + $0xa8] sm:$0xff]  }
 0x3bb   :  { %5952 = vmatprep.mubr.msk.bf16.mxu1 %vm6298_vm0, %v8831_v46  ;;  %6032 = vmatprep.mubr.msk.bf16.mxu0 %vm6298_vm0, %v8831_v46 }
 0x3bc   :  { %v2822_v19 = vadd.f32 %v7999_v23, %v2790_v34  ;;  %v2791_v29 = vadd.f32 %v7912_v21, %v2535_v13  ;;  %6077 = vmatpush3.bf16.msra.mxu0 %v6238_v63 }
 0x3bd   :  { %6078 = vmatprep.subr.bf16.mxu0 %v8831_v46 }
 0x3be   :  { %v2847_v8 = vmax.f32 %v2822_v19, 0.0  ;;  %v2823_v48 = vadd.f32 %v7999_v23, %v2791_v29 }
 0x3bf   :  { %v8098_v12 = vld [vmem:[#allocation3 + $0x40] sm:$0xff]  ;;  %v2470_v32 = vpop.f32.mrb[232].mxu1 }
 0x3c0   :  { %v8102_v7 = vpack.c.bf16 %v8098_v12, %v8096_v56  ;;  %2872 = vst.msk [vmem:[#allocation3 + $0x50] sm:$0xff] %vm146_vm1, %v2847_v8  ;;  %v2848_v21 = vmax.f32 %v2823_v48, 0.0  ;;  %v2536_v51 = vadd.f32 %v2470_v32, %v7922_v44  ;;  %v5854_v36 = vpop.f32.mrb[233].mxu1  ;;  %6079 = vmatpush3.bf16.msra.mxu0 %v6239_v61 }
 0x3c1   :  { %v2473_v53 = vpop.f32.mrb[234].mxu1  ;;  %6080 = vmatprep.subr.bf16.mxu0 %v8831_v46 }
 0x3c2   :  { %2873 = vst.msk [vmem:[#allocation3 + $0x58] sm:$0xff] %vm146_vm1, %v2848_v21  ;;  %v2792_v16 = vadd.f32 %v7918_v37, %v2536_v51  ;;  %v2537_v58 = vadd.f32 %v2473_v53, %v7927_v17  ;;  %v5855_v9 = vpop.f32.mrb[235].mxu1  ;;  %5953 = vmatmul.mubr.msk.bf16.gmra.mrb[12].mxu1 %vm146_vm1, %v8102_v7 }
 0x3c3   :  { %5956 = vmatprep.mubr.msk.bf16.mxu1 %vm6298_vm0, %v8831_v46 }
 0x3c4   :  { %v2824_v44 = vadd.f32 %v7999_v23, %v2792_v16  ;;  %v2793_v4 = vadd.f32 %v7924_v3, %v2537_v58  ;;  %6081 = vmatpush3.bf16.msra.mxu0 %v6240_v5 }
 0x3c5   :  { %6082 = vmatprep.subr.bf16.mxu0 %v8831_v46 }
 0x3c6   :  { %v2849_v37 = vmax.f32 %v2824_v44, 0.0  ;;  %v2825_v17 = vadd.f32 %v7999_v23, %v2793_v4 }
 0x3c7   :  { %v8124_v22 = vld [vmem:[#allocation3 + $0x50] sm:$0xff]  ;;  %v2478_v20 = vpop.f32.mrb[236].mxu1 }
 0x3c8   :  { %2874 = vst.msk [vmem:[#allocation3 + $0x60] sm:$0xff] %vm146_vm1, %v2849_v37  ;;  %v2850_v42 = vmax.f32 %v2825_v17, 0.0  ;;  %v2538_v11 = vadd.f32 %v2478_v20, %v7934_v15  ;;  %v5858_v27 = vpop.f32.mrb[237].mxu1  ;;  %v3310_v3 = vpack.c.bf16 %v8124_v22, %v8096_v56  ;;  %6083 = vmatpush3.bf16.msra.mxu0 %v6242_v47 }
 0x3c9   :  { %v8130_v62 = vld [vmem:[#allocation3 + $0x58] sm:$0xff]  ;;  %v2481_v57 = vpop.f32.mrb[238].mxu1  ;;  %6132 = vmatprep.subr.bf16.mxu0 %v8831_v46 }
 0x3ca   :  { %2875 = vst.msk [vmem:[#allocation3 + $0x68] sm:$0xff] %vm146_vm1, %v2850_v42  ;;  %v2794_v63 = vadd.f32 %v7930_v30, %v2538_v11  ;;  %v2539_v18 = vadd.f32 %v2481_v57, %v7939_v50  ;;  %v5859_v34 = vpop.f32.mrb[239].mxu1  ;;  %6033 = vmatmul.mubr.msk.bf16.gmra.mrb[56].mxu0 %vm146_vm1, %v3310_v3  ;;  %v3454_v15 = vpack.c.bf16 %v8130_v62, %v8098_v12  ;;  %v2887_v3 = vld [vmem:[#allocation3] sm:$0xff] }
 0x3cb   :  { %6036 = vmatprep.mubr.msk.bf16.mxu0 %vm6298_vm0, %v8831_v46 }
 0x3cc   :  { %v2826_v13 = vadd.f32 %v7999_v23, %v2794_v63  ;;  %v2795_v10 = vadd.f32 %v7936_v55, %v2539_v18  ;;  %v6237_v18 = vld [vmem:[%s8762_s5 + $0x40] sm:$0xff]  }
 0x3ce   :  { %v2851_v19 = vmax.f32 %v2826_v13, 0.0  ;;  %v2827_v29 = vadd.f32 %v7999_v23, %v2795_v10 }
 0x3cf   :  { %v8144_v61 = vld [vmem:[#allocation3 + $0x60] sm:$0xff]  ;;  %v2486_v30 = vpop.f32.mrb[240].mxu1 }
 0x3d0   :  { %v8148_v50 = vpack.c.bf16 %v8144_v61, %v8130_v62  ;;  %2876 = vst.msk [vmem:[#allocation3 + $0x70] sm:$0xff] %vm146_vm1, %v2851_v19  ;;  %v2852_v8 = vmax.f32 %v2827_v29, 0.0  ;;  %v2540_v48 = vadd.f32 %v2486_v30, %v7946_v31  ;;  %v5862_v32 = vpop.f32.mrb[241].mxu1 }
 0x3d1   :  { %v8152_v21 = vld [vmem:[#allocation3 + $0x68] sm:$0xff]  ;;  %v2489_v51 = vpop.f32.mrb[242].mxu1 }
 0x3d2   :  { %v8156_v55 = vpack.c.bf16 %v8152_v21, %v8144_v61  ;;  %2877 = vst.msk [vmem:[#allocation3 + $0x78] sm:$0xff] %vm146_vm1, %v2852_v8  ;;  %v2796_v36 = vadd.f32 %v7942_v52, %v2540_v48  ;;  %v2541_v5 = vadd.f32 %v2489_v51, %v7951_v59  ;;  %v5863_v53 = vpop.f32.mrb[243].mxu1  ;;  %5957 = vmatmul.mubr.msk.bf16.gmra.mrb[16].mxu1 %vm146_vm1, %v8148_v50  ;;  %v6241_v51 = vld [vmem:[%s8762_s5 + $0x48] sm:$0xff]  }
 0x3d3   :  { %6037 = vmatmul.mubr.msk.bf16.gmra.mrb[60].mxu0 %vm146_vm1, %v8148_v50  ;;  %5960 = vmatprep.mubr.msk.bf16.mxu1 %vm6298_vm0, %v8831_v46  ;;  %v2923_v47 = vpack.c.bf16 %v8152_v21, %v8152_v21 }
 0x3d4   :  { %6040 = vmatprep.mubr.msk.bf16.mxu0 %vm6298_vm0, %v8831_v46  ;;  %v2828_v31 = vadd.f32 %v7999_v23, %v2796_v36  ;;  %v2797_v16 = vadd.f32 %v7948_v25, %v2541_v5 }
 0x3d6   :  { %v2853_v52 = vmax.f32 %v2828_v31, 0.0  ;;  %v2829_v59 = vadd.f32 %v7999_v23, %v2797_v16 }
 0x3d7   :  { %v2494_v58 = vpop.f32.mrb[244].mxu1 }
 0x3d8   :  { %2878 = vst.msk [vmem:[#allocation3 + $0x80] sm:$0xff] %vm146_vm1, %v2853_v52  ;;  %v2854_v9 = vmax.f32 %v2829_v59, 0.0  ;;  %v2542_v44 = vadd.f32 %v2494_v58, %v7958_v1  ;;  %v5866_v4 = vpop.f32.mrb[245].mxu1 }
 0x3d9   :  { %v2497_v37 = vpop.f32.mrb[246].mxu1  ;;  %v8176_v17 = vld [vmem:[#allocation3 + $0x78] sm:$0xff] }
 0x3da   :  { %2879 = vst.msk [vmem:[#allocation3 + $0x88] sm:$0xff] %vm146_vm1, %v2854_v9  ;;  %v2798_v25 = vadd.f32 %v7954_v33, %v2542_v44  ;;  %v2543_v20 = vadd.f32 %v2497_v37, %v7963_v28  ;;  %v5867_v42 = vpop.f32.mrb[247].mxu1  ;;  %5961 = vmatmul.mubr.msk.bf16.gmra.mrb[20].mxu1 %vm146_vm1, %v2923_v47  ;;  %v3742_v11 = vpack.c.bf16 %v8176_v17, %v8144_v61  ;;  %v6243_v44 = vld [vmem:[%s8762_s5 + $0x50] sm:$0xff]   ;;  %v8832_v37 = vld [vmem:[#allocation11_spill] sm:$0xff] }
 0x3db   :  { %5972 = vmatprep.mubr.msk.bf16.mxu1 %vm6298_vm0, %v8831_v46  ;;  %v2896_v33 = vpack.c.bf16 %v8022_v14, %v2887_v3  ;;  %v2897_v9 = vpack.c.bf16 %v8066_v24, %v8024_v2 }
 0x3dc   :  { %v2830_v1 = vadd.f32 %v7999_v23, %v2798_v25  ;;  %v2799_v27 = vadd.f32 %v7960_v38, %v2543_v20 }
 0x3de   :  { %v2855_v57 = vmax.f32 %v2830_v1, 0.0  ;;  %v2831_v63 = vadd.f32 %v7999_v23, %v2799_v27  ;;  %v6244_v27 = vld [vmem:[%s8762_s5 + $0x58] sm:$0xff]  }
 0x3df   :  { %v2502_v28 = vpop.f32.mrb[248].mxu1  ;;  %v8193_v34 = vld [vmem:[#allocation3 + $0x80] sm:$0xff] }
 0x3e0   :  { %2880 = vst.msk [vmem:[#allocation3 + $0x90] sm:$0xff] %vm146_vm1, %v2855_v57  ;;  %v2856_v13 = vmax.f32 %v2831_v63, 0.0  ;;  %v2544_v10 = vadd.f32 %v2502_v28, %v7970_v54  ;;  %v5870_v19 = vpop.f32.mrb[249].mxu1  ;;  %v3312_v38 = vpack.c.bf16 %v8193_v34, %v8176_v17  ;;  %v3886_v29 = vpack.c.bf16 %v8193_v34, %v8152_v21  ;;  %v8208_v54 = vld [vmem:[#allocation3 + $0x70] sm:$0xff] }
 0x3e1   :  { %v2505_v14 = vpop.f32.mrb[250].mxu1  ;;  %v8201_v30 = vld [vmem:[#allocation3 + $0x88] sm:$0xff] }
 0x3e2   :  { %2881 = vst.msk [vmem:[#allocation3 + $0x98] sm:$0xff] %vm146_vm1, %v2856_v13  ;;  %v2800_v8 = vadd.f32 %v7966_v6, %v2544_v10  ;;  %v2545_v48 = vadd.f32 %v2505_v14, %v7975_v49  ;;  %v5871_v32 = vpop.f32.mrb[251].mxu1  ;;  %5973 = vmatmul.mubr.msk.bf16.vlgmr.msra.gmra.mrb[24].mxu1 %vm146_vm1, %v2896_v33  ;;  %6041 = vmatmul.mubr.msk.bf16.gmra.mrb[64].mxu0 %vm146_vm1, %v3312_v38  ;;  %v6246_v13 = vld [vmem:[%s8762_s5 + $0xe0] sm:$0xff]   ;;  %v3590_v14 = vld [vmem:[#allocation3 + $0x48] sm:$0xff] }
 0x3e3   :  { %5993 = vmatpush3.bf16.msra.mxu1 %v6237_v18  ;;  %5976 = vmatprep.mubr.msk.bf16.mxu1 %vm6298_vm0, %v8831_v46  ;;  %v8217_v6 = vpack.c.bf16 %v8201_v30, %v8193_v34  ;;  %v4030_v49 = vpack.c.bf16 %v8201_v30, %v8208_v54  ;;  %v8261_v33 = vpack.c.bf16 %v8096_v56, %v8068_v0 }
 0x3e4   :  { %v2832_v36 = vadd.f32 %v7999_v23, %v2800_v8  ;;  %v2801_v5 = vadd.f32 %v7972_v35, %v2545_v48  ;;  %6044 = vmatprep.mubr.msk.bf16.mxu0 %vm6298_vm0, %v8831_v46  ;;  %5994 = vmatprep.subr.bf16.mxu1 %v8831_v46  ;;  %v3313_v35 = vpack.c.bf16 %v8201_v30, %v8201_v30 }
 0x3e5   :  { %v3598_v8 = vpack.c.bf16 %v8144_v61, %v3590_v14 }
 0x3e6   :  { %v2857_v53 = vmax.f32 %v2832_v36, 0.0  ;;  %v2833_v31 = vadd.f32 %v7999_v23, %v2801_v5  ;;  %v2900_v36 = vpack.c.bf16 %v8144_v61, %v8144_v61  ;;  %v3599_v5 = vpack.c.bf16 %v8208_v54, %v8152_v21  ;;  %v6253_v21 = vld [vmem:[%s8762_s5 + $0xc0] sm:$0xff]  }
 0x3e7   :  { %v2510_v16 = vpop.f32.mrb[252].mxu1  ;;  %5995 = vmatpush3.bf16.msra.mxu1 %v6241_v51  ;;  %v8244_v24 = vld [vmem:[#allocation3 + $0x90] sm:$0xff] }
 0x3e8   :  { %2882 = vst.msk [vmem:[#allocation3 + $0xa0] sm:$0xff] %vm146_vm1, %v2857_v53  ;;  %v2858_v52 = vmax.f32 %v2833_v31, 0.0  ;;  %v2546_v59 = vadd.f32 %v2510_v16, %v7982_v40  ;;  %v5874_v58 = vpop.f32.mrb[253].mxu1  ;;  %5996 = vmatprep.subr.bf16.mxu1 %v8831_v46  ;;  %v6250_v51 = vld [vmem:[%s8762_s5 + $0xf8] sm:$0xff]   ;;  %v6245_v53 = vld [vmem:[%s8762_s5 + $0x80] sm:$0xff]   ;;  %v3600_v31 = vpack.c.bf16 %v8244_v24, %v8201_v30  ;;  %v6249_v16 = vld [vmem:[%s8762_s5 + $0x88] sm:$0xff]  }
 0x3e9   :  { %v2513_v4 = vpop.f32.mrb[254].mxu1  ;;  %v8237_v47 = vld [vmem:[#allocation3 + $0x98] sm:$0xff]  ;;  %v6254_v58 = vld [vmem:[%s8762_s5 + $0xc8] sm:$0xff]  }
 0x3ea   :  { %2883 = vst.msk [vmem:[#allocation3 + $0xa8] sm:$0xff] %vm146_vm1, %v2858_v52  ;;  %v2802_v40 = vadd.f32 %v8832_v37, %v2546_v59  ;;  %v2547_v25 = vadd.f32 %v2513_v4, %v7987_v45  ;;  %v5875_v20 = vpop.f32.mrb[255].mxu1  ;;  %5977 = vmatmul.mubr.msk.bf16.gmra.mrb[28].mxu1 %vm146_vm1, %v2897_v9  ;;  %6045 = vmatmul.mubr.msk.bf16.gmra.mrb[68].mxu0 %vm146_vm1, %v3313_v35  ;;  %v3158_v52 = vld [vmem:[#allocation3 + $0x20] sm:$0xff]  ;;  %v6255_v9 = vld [vmem:[%s8762_s5 + $0xd0] sm:$0xff]   ;;  %v6260_v37 = vld [vmem:[%s8762_s5 + $0x118] sm:$0xff]  }
 0x3eb   :  { %5980 = vmatprep.mubr.msk.bf16.mxu1 %vm6298_vm0, %v8831_v46  ;;  %6084 = vmatprep.mubr.msk.bf16.mxu0 %vm6298_vm0, %v8831_v46  ;;  %v4031_v42 = vpack.c.bf16 %v8237_v47, %v8244_v24  ;;  %v3166_v2 = vpack.c.bf16 %v8096_v56, %v3158_v52  ;;  %v3601_v41 = vpack.c.bf16 %v8237_v47, %v8237_v47  ;;  %v6252_v56 = vld [vmem:[%s8762_s5 + $0x98] sm:$0xff]   ;;  %v6259_v4 = vld [vmem:[%s8762_s5 + $0x110] sm:$0xff]  }
 0x3ec   :  { %v2834_v1 = vadd.f32 %v7999_v23, %v2802_v40  ;;  %v2803_v45 = vadd.f32 %v7984_v43, %v2547_v25  ;;  %5997 = vmatpush3.bf16.msra.mxu1 %v6243_v44  ;;  %v3167_v59 = vpack.c.bf16 %v3590_v14, %v8098_v12  ;;  %v6256_v44 = vld [vmem:[%s8762_s5 + $0xd8] sm:$0xff]   ;;  %v3457_v12 = vpack.c.bf16 %v8244_v24, %v8244_v24 }
 0x3ed   :  { %5998 = vmatprep.subr.bf16.mxu1 %v8831_v46 }
 0x3ee   :  { %v2859_v3 = vmax.f32 %v2834_v1, 0.0  ;;  %v2835_v57 = vadd.f32 %v7999_v23, %v2803_v45 }
 0x3ef   :  { %v2518_v63 = vpop.f32.mrb[0].mxu1  ;;  %v3738_v61 = vld [vmem:[#allocation3 + $0xa0] sm:$0xff] }
 0x3f0   :  { %2884 = vst.msk [vmem:[#allocation3 + $0xb0] sm:$0xff] %vm146_vm1, %v2859_v3  ;;  %v2860_v28 = vmax.f32 %v2835_v57, 0.0  ;;  %v2548_v43 = vadd.f32 %v2518_v63, %v7993_v26  ;;  %v5878_v18 = vpop.f32.mrb[1].mxu1  ;;  %5999 = vmatpush3.bf16.msra.mxu1 %v6244_v27 }
 0x3f1   :  { %v2521_v10 = vpop.f32.mrb[2].mxu1  ;;  %6048 = vmatprep.subr.bf16.mxu1 %v8831_v46  ;;  %v3882_v34 = vld [vmem:[#allocation3 + $0xa8] sm:$0xff] }
 0x3f2   :  { %2885 = vst.msk [vmem:[#allocation3 + $0xb8] sm:$0xff] %vm146_vm1, %v2860_v28  ;;  %v2804_v19 = vadd.f32 %v7990_v39, %v2548_v43  ;;  %v5879_v0 = vpop.f32.mrb[3].mxu1  ;;  %5981 = vmatmul.mubr.msk.bf16.gmra.mrb[32].mxu1 %vm146_vm1, %v8261_v33  ;;  %6085 = vmatmul.mubr.msk.bf16.vlgmr.msra.gmra.mrb[72].mxu0 %vm146_vm1, %v8102_v7  ;;  %v6247_v39 = vld [vmem:[%s8762_s5 + $0xe8] sm:$0xff]   ;;  %v8286_v7 = vpack.c.bf16 %v8130_v62, %v8124_v22  ;;  %v6257_v62 = vld [vmem:[%s8762_s5 + $0x100] sm:$0xff]  }
 0x3f3   :  { %5984 = vmatprep.mubr.msk.bf16.mxu1 %vm6298_vm0, %v8831_v46  ;;  %6088 = vmatprep.mubr.msk.bf16.mxu0 %vm6298_vm0, %v8831_v46  ;;  %v3744_v17 = vpack.c.bf16 %v3882_v34, %v3738_v61 }
 0x3f4   :  { %v2836_v26 = vadd.f32 %v7999_v23, %v2804_v19  ;;  %6133 = vmatpush3.bf16.msra.mxu0 %v6246_v13  ;;  %v6248_v23 = vld [vmem:[%s8762_s5 + $0xf0] sm:$0xff]  }
 0x3f5   :  { %6134 = vmatprep.subr.bf16.mxu0 %v8831_v46 }
 0x3f6   :  { %v2861_v38 = vmax.f32 %v2836_v26, 0.0 }
 0x3f7   :  { %v8294_v48 = vld [vmem:[#allocation3 + $0xb0] sm:$0xff] }
 0x3f8   :  { %2886 = vst.msk [vmem:[#allocation3 + $0xc0] sm:$0xff] %vm146_vm1, %v2861_v38  ;;  %6135 = vmatpush3.bf16.msra.mxu0 %v6247_v39 }
 0x3f9   :  { %6136 = vmatprep.subr.bf16.mxu0 %v8831_v46  ;;  %v8296_v32 = vld [vmem:[#allocation3 + $0xb8] sm:$0xff] }
 0x3fa   :  { %5985 = vmatmul.mubr.msk.bf16.gmra.mrb[36].mxu1 %vm146_vm1, %v8286_v7  ;;  %6089 = vmatmul.mubr.msk.bf16.gmra.mrb[76].mxu0 %vm146_vm1, %v3598_v8  ;;  %v4032_v22 = vpack.c.bf16 %v8296_v32, %v8294_v48  ;;  %v3889_v35 = vpack.c.bf16 %v8296_v32, %v8296_v32 }
 0x3fb   :  { %5988 = vmatprep.mubr.msk.bf16.mxu1 %vm6298_vm0, %v8831_v46  ;;  %6092 = vmatprep.mubr.msk.bf16.mxu0 %vm6298_vm0, %v8831_v46 }
 0x3fc   :  { %6137 = vmatpush3.bf16.msra.mxu0 %v6248_v23 }
 0x3fd   :  { %6138 = vmatprep.subr.bf16.mxu0 %v8831_v46 }
 0x3ff   :  { %v4028_v47 = vld [vmem:[#allocation3 + $0xc0] sm:$0xff] }
 0x400   :  { %6139 = vmatpush3.bf16.msra.mxu0 %v6250_v51  ;;  %v4033_v13 = vpack.c.bf16 %v4028_v47, %v4028_v47 }
 0x402   :  { %5989 = vmatmul.mubr.msk.bf16.gmra.mrb[40].mxu1 %vm146_vm1, %v2900_v36  ;;  %6093 = vmatmul.mubr.msk.bf16.gmra.mrb[80].mxu0 %vm146_vm1, %v3599_v5 }
 0x403   :  { %6000 = vmatprep.mubr.msk.bf16.mxu1 %vm6298_vm0, %v8831_v46  ;;  %6096 = vmatprep.mubr.msk.bf16.mxu0 %vm6298_vm0, %v8831_v46 }
 0x40a   :  { %6001 = vmatmul.mubr.msk.bf16.vlgmr.msra.gmra.mrb[44].mxu1 %vm146_vm1, %v3165_v60  ;;  %6097 = vmatmul.mubr.msk.bf16.gmra.mrb[84].mxu0 %vm146_vm1, %v3600_v31  ;;  %v6251_v60 = vld [vmem:[%s8762_s5 + $0x90] sm:$0xff]  }
 0x40b   :  { %6049 = vmatpush3.bf16.msra.mxu1 %v6245_v53  ;;  %6004 = vmatprep.mubr.msk.bf16.mxu1 %vm6298_vm0, %v8831_v46 }
 0x40c   :  { %6100 = vmatprep.mubr.msk.bf16.mxu0 %vm6298_vm0, %v8831_v46  ;;  %6050 = vmatprep.subr.bf16.mxu1 %v8831_v46 }
 0x40f   :  { %6051 = vmatpush3.bf16.msra.mxu1 %v6249_v16 }
 0x410   :  { %6052 = vmatprep.subr.bf16.mxu1 %v8831_v46 }
 0x412   :  { %6005 = vmatmul.mubr.msk.bf16.gmra.mrb[48].mxu1 %vm146_vm1, %v3166_v2  ;;  %6101 = vmatmul.mubr.msk.bf16.gmra.mrb[88].mxu0 %vm146_vm1, %v3601_v41 }
 0x413   :  { %6008 = vmatprep.mubr.msk.bf16.mxu1 %vm6298_vm0, %v8831_v46  ;;  %6140 = vmatprep.mubr.msk.bf16.mxu0 %vm6298_vm0, %v8831_v46 }
 0x414   :  { %6053 = vmatpush3.bf16.msra.mxu1 %v6251_v60 }
 0x415   :  { %6054 = vmatprep.subr.bf16.mxu1 %v8831_v46 }
 0x418   :  { %6055 = vmatpush3.bf16.msra.mxu1 %v6252_v56 }
 0x419   :  { %6104 = vmatprep.subr.bf16.mxu1 %v8831_v46 }
 0x41a   :  { %6009 = vmatmul.mubr.msk.bf16.gmra.mrb[52].mxu1 %vm146_vm1, %v3167_v59  ;;  %6141 = vmatmul.mubr.msk.bf16.vlgmr.msra.gmra.mrb[92].mxu0 %vm146_vm1, %v8148_v50  ;;  %v3169_v50 = vpack.c.bf16 %v8208_v54, %v8208_v54 }
 0x41b   :  { %6012 = vmatprep.mubr.msk.bf16.mxu1 %vm6298_vm0, %v8831_v46  ;;  %6144 = vmatprep.mubr.msk.bf16.mxu0 %vm6298_vm0, %v8831_v46 }
 0x422   :  { %6013 = vmatmul.mubr.msk.bf16.gmra.mrb[56].mxu1 %vm146_vm1, %v8156_v55  ;;  %6145 = vmatmul.mubr.msk.bf16.gmra.mrb[96].mxu0 %vm146_vm1, %v3886_v29  ;;  %v3888_v29 = vpack.c.bf16 %v8294_v48, %v3882_v34 }
 0x423   :  { %6016 = vmatprep.mubr.msk.bf16.mxu1 %vm6298_vm0, %v8831_v46  ;;  %6148 = vmatprep.mubr.msk.bf16.mxu0 %vm6298_vm0, %v8831_v46 }
 0x42a   :  { %6017 = vmatmul.mubr.msk.bf16.gmra.mrb[60].mxu1 %vm146_vm1, %v3169_v50  ;;  %6149 = vmatmul.mubr.msk.bf16.gmra.mrb[100].mxu0 %vm146_vm1, %v3600_v31 }
 0x42b   :  { %6056 = vmatprep.mubr.msk.bf16.mxu1 %vm6298_vm0, %v8831_v46  ;;  %6152 = vmatprep.mubr.msk.bf16.mxu0 %vm6298_vm0, %v8831_v46 }
 0x432   :  { %6057 = vmatmul.mubr.msk.bf16.vlgmr.msra.gmra.mrb[64].mxu1 %vm146_vm1, %v8261_v33  ;;  %6153 = vmatmul.mubr.msk.bf16.gmra.mrb[104].mxu0 %vm146_vm1, %v3888_v29 }
 0x433   :  { %6105 = vmatpush3.bf16.msra.mxu1 %v6253_v21  ;;  %6060 = vmatprep.mubr.msk.bf16.mxu1 %vm6298_vm0, %v8831_v46 }
 0x434   :  { %6156 = vmatprep.mubr.msk.bf16.mxu0 %vm6298_vm0, %v8831_v46  ;;  %6106 = vmatprep.subr.bf16.mxu1 %v8831_v46 }
 0x437   :  { %6107 = vmatpush3.bf16.msra.mxu1 %v6254_v58 }
 0x438   :  { %6108 = vmatprep.subr.bf16.mxu1 %v8831_v46 }
 0x43a   :  { %6061 = vmatmul.mubr.msk.bf16.gmra.mrb[68].mxu1 %vm146_vm1, %v3454_v15  ;;  %6157 = vmatmul.mubr.msk.bf16.gmra.mrb[108].mxu0 %vm146_vm1, %v3889_v35  ;;  %v6258_v15 = vld [vmem:[%s8762_s5 + $0x108] sm:$0xff]  }
 0x43b   :  { %6064 = vmatprep.mubr.msk.bf16.mxu1 %vm6298_vm0, %v8831_v46  ;;  %6109 = vmatpush3.bf16.msra.mxu1 %v6255_v9 }
 0x43c   :  { %6110 = vmatprep.subr.bf16.mxu1 %v8831_v46 }
 0x43f   :  { %6111 = vmatpush3.bf16.msra.mxu1 %v6256_v44 }
 0x440   :  { %6160 = vmatprep.subr.bf16.mxu1 %v8831_v46 }
 0x442   :  { %6065 = vmatmul.mubr.msk.bf16.gmra.mrb[72].mxu1 %vm146_vm1, %v8156_v55 }
 0x443   :  { %6068 = vmatprep.mubr.msk.bf16.mxu1 %vm6298_vm0, %v8831_v46 }
 0x44a   :  { %6069 = vmatmul.mubr.msk.bf16.gmra.mrb[76].mxu1 %vm146_vm1, %v8217_v6 }
 0x44b   :  { %6072 = vmatprep.mubr.msk.bf16.mxu1 %vm6298_vm0, %v8831_v46 }
 0x452   :  { %6073 = vmatmul.mubr.msk.bf16.gmra.mrb[80].mxu1 %vm146_vm1, %v3457_v12 }
 0x453   :  { %6112 = vmatprep.mubr.msk.bf16.mxu1 %vm6298_vm0, %v8831_v46 }
 0x45a   :  { %6113 = vmatmul.mubr.msk.bf16.vlgmr.msra.gmra.mrb[84].mxu1 %vm146_vm1, %v8286_v7 }
 0x45b   :  { %6161 = vmatpush3.bf16.msra.mxu1 %v6257_v62  ;;  %6116 = vmatprep.mubr.msk.bf16.mxu1 %vm6298_vm0, %v8831_v46 }
 0x45c   :  { %6162 = vmatprep.subr.bf16.mxu1 %v8831_v46 }
 0x45f   :  { %6163 = vmatpush3.bf16.msra.mxu1 %v6258_v15 }
 0x460   :  { %6164 = vmatprep.subr.bf16.mxu1 %v8831_v46 }
 0x462   :  { %6117 = vmatmul.mubr.msk.bf16.gmra.mrb[88].mxu1 %vm146_vm1, %v3742_v11  ;;  %v3745_v11 = vpack.c.bf16 %v8294_v48, %v8294_v48 }
 0x463   :  { %6120 = vmatprep.mubr.msk.bf16.mxu1 %vm6298_vm0, %v8831_v46  ;;  %6165 = vmatpush3.bf16.msra.mxu1 %v6259_v4 }
 0x464   :  { %6166 = vmatprep.subr.bf16.mxu1 %v8831_v46 }
 0x467   :  { %6167 = vmatpush3.bf16.msra.mxu1 %v6260_v37 }
 0x46a   :  { %6121 = vmatmul.mubr.msk.bf16.gmra.mrb[92].mxu1 %vm146_vm1, %v8217_v6 }
 0x46b   :  { %6124 = vmatprep.mubr.msk.bf16.mxu1 %vm6298_vm0, %v8831_v46 }
 0x472   :  { %6125 = vmatmul.mubr.msk.bf16.gmra.mrb[96].mxu1 %vm146_vm1, %v3744_v17 }
 0x473   :  { %6128 = vmatprep.mubr.msk.bf16.mxu1 %vm6298_vm0, %v8831_v46 }
 0x47a   :  { %6129 = vmatmul.mubr.msk.bf16.gmra.mrb[100].mxu1 %vm146_vm1, %v3745_v11 }
 0x47b   :  { %6168 = vmatprep.mubr.msk.bf16.mxu1 %vm6298_vm0, %v8831_v46 }
 0x47d   :  { %v3006_v40 = vpop.f32.mrb[4].mxu1 }
 0x47e   :  { %v5946_v6 = vpop.f32.mrb[5].mxu1 }
 0x47f   :  { %v3009_v25 = vpop.f32.mrb[6].mxu1 }
 0x480   :  { %v5947_v20 = vpop.f32.mrb[7].mxu1 }
 0x482   :  { %6169 = vmatmul.mubr.msk.bf16.vlgmr.msra.gmra.mrb[104].mxu1 %vm146_vm1, %v8156_v55 }
 0x483   :  { %6172 = vmatprep.mubr.msk.bf16.mxu1 %vm6298_vm0, %v8831_v46 }
 0x48a   :  { %6173 = vmatmul.mubr.msk.bf16.gmra.mrb[108].mxu1 %vm146_vm1, %v4030_v49 }
 0x48b   :  { %6176 = vmatprep.mubr.msk.bf16.mxu1 %vm6298_vm0, %v8831_v46 }
 0x48d   :  { %v3014_v1 = vpop.f32.mrb[8].mxu1  ;;  %v8476_v45 = vpop.f32.mrb[52].mxu0 }
 0x48e   :  { %v5950_v27 = vpop.f32.mrb[9].mxu1  ;;  %v6030_v3 = vpop.f32.mrb[53].mxu0 }
 0x48f   :  { %v3017_v57 = vpop.f32.mrb[10].mxu1  ;;  %v8478_v63 = vpop.f32.mrb[54].mxu0 }
 0x490   :  { %v5951_v55 = vpop.f32.mrb[11].mxu1  ;;  %v6031_v33 = vpop.f32.mrb[55].mxu0 }
 0x492   :  { %6177 = vmatmul.mubr.msk.bf16.gmra.mrb[112].mxu1 %vm146_vm1, %v4031_v42 }
 0x493   :  { %6180 = vmatprep.mubr.msk.bf16.mxu1 %vm6298_vm0, %v8831_v46 }
 0x495   :  { %v3022_v30 = vpop.f32.mrb[12].mxu1 }
 0x496   :  { %v5954_v54 = vpop.f32.mrb[13].mxu1 }
 0x497   :  { %v3025_v49 = vpop.f32.mrb[14].mxu1 }
 0x498   :  { %v5955_v28 = vpop.f32.mrb[15].mxu1 }
 0x49a   :  { %6181 = vmatmul.mubr.msk.bf16.gmra.mrb[116].mxu1 %vm146_vm1, %v4032_v22 }
 0x49b   :  { %6184 = vmatprep.mubr.msk.bf16.mxu1 %vm6298_vm0, %v8831_v46 }
 0x49d   :  { %v8492_v43 = vpop.f32.mrb[56].mxu0 }
 0x49e   :  { %v6034_v24 = vpop.f32.mrb[57].mxu0 }
 0x49f   :  { %v8494_v42 = vpop.f32.mrb[58].mxu0 }
 0x4a0   :  { %v6035_v18 = vpop.f32.mrb[59].mxu0 }
 0x4a2   :  { %6185 = vmatmul.mubr.msk.bf16.gmra.mrb[120].mxu1 %vm146_vm1, %v4033_v13 }
 0x4a5   :  { %v3030_v10 = vpop.f32.mrb[16].mxu1 }
 0x4a6   :  { %v8497_v19 = vpop.f32.mrb[60].mxu0  ;;  %v5958_v0 = vpop.f32.mrb[17].mxu1 }
 0x4a7   :  { %v6038_v26 = vpop.f32.mrb[61].mxu0  ;;  %v3033_v39 = vpop.f32.mrb[18].mxu1 }
 0x4a8   :  { %v8499_v38 = vpop.f32.mrb[62].mxu0  ;;  %v5959_v14 = vpop.f32.mrb[19].mxu1 }
 0x4a9   :  { %v6039_v7 = vpop.f32.mrb[63].mxu0 }
 0x4ad   :  { %v3038_v8 = vpop.f32.mrb[20].mxu1 }
 0x4ae   :  { %v5962_v23 = vpop.f32.mrb[21].mxu1 }
 0x4af   :  { %v3041_v48 = vpop.f32.mrb[22].mxu1 }
 0x4b0   :  { %v5963_v32 = vpop.f32.mrb[23].mxu1 }
 0x4b5   :  { %v3117_v22 = vpop.f32.mrb[24].mxu1  ;;  %v8501_v51 = vpop.f32.mrb[64].mxu0 }
 0x4b6   :  { %v3118_v36 = vadd.f32 %v3117_v22, %v3006_v40  ;;  %v5974_v5 = vpop.f32.mrb[25].mxu1  ;;  %v6042_v53 = vpop.f32.mrb[65].mxu0 }
 0x4b7   :  { %v3120_v31 = vpop.f32.mrb[26].mxu1  ;;  %v8503_v16 = vpop.f32.mrb[66].mxu0 }
 0x4b8   :  { %v3121_v52 = vadd.f32 %v3120_v31, %v3009_v25  ;;  %v5975_v2 = vpop.f32.mrb[27].mxu1  ;;  %v6043_v41 = vpop.f32.mrb[67].mxu0 }
 0x4bd   :  { %v3125_v60 = vpop.f32.mrb[28].mxu1  ;;  %v8505_v56 = vpop.f32.mrb[68].mxu0 }
 0x4be   :  { %v3126_v59 = vadd.f32 %v3125_v60, %v3014_v1  ;;  %v5978_v50 = vpop.f32.mrb[29].mxu1  ;;  %v6046_v21 = vpop.f32.mrb[69].mxu0 }
 0x4bf   :  { %v3128_v34 = vpop.f32.mrb[30].mxu1  ;;  %v3431_v29 = vpop.f32.mrb[70].mxu0 }
 0x4c0   :  { %v3129_v58 = vadd.f32 %v3128_v34, %v3017_v57  ;;  %v5979_v9 = vpop.f32.mrb[31].mxu1  ;;  %v6047_v35 = vpop.f32.mrb[71].mxu0 }
 0x4c5   :  { %v3133_v44 = vpop.f32.mrb[32].mxu1  ;;  %v8507_v12 = vpop.f32.mrb[72].mxu0 }
 0x4c6   :  { %v3134_v62 = vadd.f32 %v3133_v44, %v3022_v30  ;;  %v5982_v15 = vpop.f32.mrb[33].mxu1  ;;  %v6086_v4 = vpop.f32.mrb[73].mxu0 }
 0x4c7   :  { %v3136_v37 = vpop.f32.mrb[34].mxu1  ;;  %v8509_v61 = vpop.f32.mrb[74].mxu0 }
 0x4c8   :  { %v3137_v17 = vadd.f32 %v3136_v37, %v3025_v49  ;;  %v5983_v11 = vpop.f32.mrb[35].mxu1  ;;  %v6087_v40 = vpop.f32.mrb[75].mxu0 }
 0x4cd   :  { %v3141_v6 = vpop.f32.mrb[36].mxu1  ;;  %v8511_v25 = vpop.f32.mrb[76].mxu0 }
 0x4ce   :  { %v3142_v20 = vadd.f32 %v3141_v6, %v3030_v10  ;;  %v5986_v1 = vpop.f32.mrb[37].mxu1  ;;  %v6090_v27 = vpop.f32.mrb[77].mxu0 }
 0x4cf   :  { %v3144_v3 = vpop.f32.mrb[38].mxu1  ;;  %v8513_v57 = vpop.f32.mrb[78].mxu0 }
 0x4d0   :  { %v3145_v55 = vadd.f32 %v3144_v3, %v3033_v39  ;;  %v5987_v33 = vpop.f32.mrb[39].mxu1  ;;  %v6091_v30 = vpop.f32.mrb[79].mxu0 }
 0x4d5   :  { %v3149_v54 = vpop.f32.mrb[40].mxu1  ;;  %v8515_v28 = vpop.f32.mrb[80].mxu0 }
 0x4d6   :  { %v3150_v47 = vadd.f32 %v3149_v54, %v3038_v8  ;;  %v5990_v24 = vpop.f32.mrb[41].mxu1  ;;  %v6094_v49 = vpop.f32.mrb[81].mxu0 }
 0x4d7   :  { %v3152_v18 = vpop.f32.mrb[42].mxu1  ;;  %v8517_v13 = vpop.f32.mrb[82].mxu0 }
 0x4d8   :  { %v5991_v0 = vpop.f32.mrb[43].mxu1  ;;  %v6095_v26 = vpop.f32.mrb[83].mxu0 }
 0x4dd   :  { %v3252_v10 = vpop.f32.mrb[44].mxu1  ;;  %v8519_v14 = vpop.f32.mrb[84].mxu0 }
 0x4de   :  { %v3290_v7 = vadd.f32 %v3252_v10, %v3118_v36  ;;  %v6002_v23 = vpop.f32.mrb[45].mxu1  ;;  %v6098_v48 = vpop.f32.mrb[85].mxu0 }
 0x4df   :  { %v3255_v39 = vpop.f32.mrb[46].mxu1  ;;  %v8521_v32 = vpop.f32.mrb[86].mxu0 }
 0x4e0   :  { %v3291_v22 = vadd.f32 %v3255_v39, %v3121_v52  ;;  %v6003_v5 = vpop.f32.mrb[47].mxu1  ;;  %v6099_v53 = vpop.f32.mrb[87].mxu0  ;;  %v3434_v8 = vadd.f32 %v8476_v45, %v3290_v7 }
 0x4e2   :  { %v3435_v31 = vadd.f32 %v8478_v63, %v3291_v22 }
 0x4e5   :  { %v3260_v2 = vpop.f32.mrb[48].mxu1  ;;  %v8525_v41 = vpop.f32.mrb[88].mxu0 }
 0x4e6   :  { %v3292_v60 = vadd.f32 %v3260_v2, %v3126_v59  ;;  %v6006_v50 = vpop.f32.mrb[49].mxu1  ;;  %v6102_v21 = vpop.f32.mrb[89].mxu0  ;;  %v6262_v2 = vld [vmem:[%s8764_s7] sm:$0xff]  }
 0x4e7   :  { %v3263_v34 = vpop.f32.mrb[50].mxu1  ;;  %v3719_v36 = vpop.f32.mrb[90].mxu0 }
 0x4e8   :  { %v3293_v29 = vadd.f32 %v3263_v34, %v3129_v58  ;;  %v6007_v9 = vpop.f32.mrb[51].mxu1  ;;  %v6103_v35 = vpop.f32.mrb[91].mxu0  ;;  %v8528_v44 = vadd.f32 %v8492_v43, %v3292_v60 }
 0x4e9   :  { %v6267_v35 = vld [vmem:[%s8764_s7 + $0x10] sm:$0xff]  }
 0x4ea   :  { %v8531_v52 = vadd.f32 %v8494_v42, %v3293_v29  ;;  %v6264_v29 = vld [vmem:[%s8764_s7 + $0x8] sm:$0xff]  }
 0x4ed   :  { %v3268_v45 = vpop.f32.mrb[52].mxu1  ;;  %v8533_v15 = vpop.f32.mrb[92].mxu0 }
 0x4ee   :  { %v3294_v63 = vadd.f32 %v3268_v45, %v3134_v62  ;;  %v6010_v4 = vpop.f32.mrb[53].mxu1  ;;  %v6142_v37 = vpop.f32.mrb[93].mxu0 }
 0x4ef   :  { %v3271_v59 = vpop.f32.mrb[54].mxu1  ;;  %v8535_v11 = vpop.f32.mrb[94].mxu0  ;;  %v6269_v4 = vld [vmem:[%s8764_s7 + $0x58] sm:$0xff]  }
 0x4f0   :  { %v3295_v40 = vadd.f32 %v3271_v59, %v3137_v17  ;;  %v6011_v6 = vpop.f32.mrb[55].mxu1  ;;  %v6143_v58 = vpop.f32.mrb[95].mxu0  ;;  %v8538_v1 = vadd.f32 %v8497_v19, %v3294_v63 }
 0x4f2   :  { %v8541_v43 = vadd.f32 %v8499_v38, %v3295_v40 }
 0x4f5   :  { %v3276_v42 = vpop.f32.mrb[56].mxu1  ;;  %v8543_v27 = vpop.f32.mrb[96].mxu0 }
 0x4f6   :  { %v3296_v3 = vadd.f32 %v3276_v42, %v3142_v20  ;;  %v6014_v33 = vpop.f32.mrb[57].mxu1  ;;  %v6146_v62 = vpop.f32.mrb[97].mxu0 }
 0x4f7   :  { %v3279_v30 = vpop.f32.mrb[58].mxu1  ;;  %v8545_v54 = vpop.f32.mrb[98].mxu0 }
 0x4f8   :  { %v3297_v24 = vadd.f32 %v3279_v30, %v3145_v55  ;;  %v6015_v49 = vpop.f32.mrb[59].mxu1  ;;  %v6147_v17 = vpop.f32.mrb[99].mxu0  ;;  %v8548_v18 = vadd.f32 %v8501_v51, %v3296_v3  ;;  %v6270_v30 = vld [vmem:[%s8764_s7 + $0x18] sm:$0xff]  }
 0x4f9   :  { %v6274_v49 = vld [vmem:[%s8764_s7 + $0x20] sm:$0xff]  }
 0x4fa   :  { %v8551_v19 = vadd.f32 %v8503_v16, %v3297_v24 }
 0x4fd   :  { %v3284_v38 = vpop.f32.mrb[60].mxu1  ;;  %v8553_v0 = vpop.f32.mrb[100].mxu0 }
 0x4fe   :  { %v3298_v26 = vadd.f32 %v3284_v38, %v3150_v47  ;;  %v6018_v10 = vpop.f32.mrb[61].mxu1  ;;  %v6150_v20 = vpop.f32.mrb[101].mxu0  ;;  %v6261_v47 = vld [vmem:[%s8764_s7 + $0x40] sm:$0xff]  }
 0x4ff   :  { %v3287_v7 = vpop.f32.mrb[62].mxu1  ;;  %v8555_v23 = vpop.f32.mrb[102].mxu0  ;;  %5275 = vmatprep.subr.bf16.mxu0 %v6261_v47 }
 0x500   :  { %v6019_v48 = vpop.f32.mrb[63].mxu1  ;;  %v6151_v39 = vpop.f32.mrb[103].mxu0  ;;  %v8558_v55 = vadd.f32 %v8505_v56, %v3298_v26  ;;  %5276 = vmatpush3.bf16.msra.mxu0 %v6262_v2 }
 0x505   :  { %v3540_v22 = vpop.f32.mrb[64].mxu1  ;;  %v8560_v51 = vpop.f32.mrb[104].mxu0 }
 0x506   :  { %v3578_v5 = vadd.f32 %v3540_v22, %v3434_v8  ;;  %v6058_v16 = vpop.f32.mrb[65].mxu1  ;;  %v6154_v53 = vpop.f32.mrb[105].mxu0  ;;  %v6263_v8 = vld [vmem:[%s8764_s7 + $0x48] sm:$0xff]  }
 0x507   :  { %v3543_v60 = vpop.f32.mrb[66].mxu1  ;;  %v8568_v50 = vpop.f32.mrb[106].mxu0  ;;  %5277 = vmatprep.subr.bf16.mxu0 %v6263_v8 }
 0x508   :  { %v3579_v21 = vadd.f32 %v3543_v60, %v3435_v31  ;;  %v6059_v56 = vpop.f32.mrb[67].mxu1  ;;  %v6155_v34 = vpop.f32.mrb[107].mxu0  ;;  %v8571_v36 = vadd.f32 %v8507_v12, %v3578_v5  ;;  %v6265_v31 = vld [vmem:[%s8764_s7 + $0x50] sm:$0xff]   ;;  %v6266_v12 = vld [vmem:[%s8764_s7 + $0xc0] sm:$0xff]   ;;  %5278 = vmatpush3.bf16.msra.mxu0 %v6264_v29 }
 0x509   :  { %5297 = vmatprep.subr.bf16.mxu1 %v6266_v12  ;;  %5279 = vmatprep.subr.bf16.mxu0 %v6265_v31 }
 0x50a   :  { %v8580_v9 = vadd.f32 %v8509_v61, %v3579_v21  ;;  %v6268_v61 = vld [vmem:[%s8764_s7 + $0x80] sm:$0xff]  }
 0x50b   :  { %5298 = vmatpush3.bf16.msra.mxu1 %v6268_v61 }
 0x50c   :  { %5280 = vmatpush3.bf16.msra.mxu0 %v6267_v35 }
 0x50d   :  { %v3548_v45 = vpop.f32.mrb[68].mxu1  ;;  %v8591_v63 = vpop.f32.mrb[108].mxu0  ;;  %5281 = vmatprep.subr.bf16.mxu0 %v6269_v4 }
 0x50e   :  { %v3580_v37 = vadd.f32 %v3548_v45, %v8528_v44  ;;  %v6062_v59 = vpop.f32.mrb[69].mxu1  ;;  %v6158_v40 = vpop.f32.mrb[109].mxu0  ;;  %v6271_v44 = vld [vmem:[%s8764_s7 + $0xc8] sm:$0xff]  }
 0x50f   :  { %v3551_v6 = vpop.f32.mrb[70].mxu1  ;;  %v4007_v58 = vpop.f32.mrb[110].mxu0  ;;  %5299 = vmatprep.subr.bf16.mxu1 %v6271_v44 }
 0x510   :  { %v3581_v42 = vadd.f32 %v3551_v6, %v8531_v52  ;;  %v6063_v3 = vpop.f32.mrb[71].mxu1  ;;  %v6159_v33 = vpop.f32.mrb[111].mxu0  ;;  %v3724_v62 = vadd.f32 %v8511_v25, %v3580_v37  ;;  %v6272_v52 = vld [vmem:[%s8764_s7 + $0x88] sm:$0xff]   ;;  %v6273_v25 = vld [vmem:[%s8764_s7 + $0x60] sm:$0xff]   ;;  %5282 = vmatpush3.bf16.msra.mxu0 %v6270_v30 }
 0x511   :  { %5300 = vmatpush3.bf16.msra.mxu1 %v6272_v52  ;;  %5283 = vmatprep.subr.bf16.mxu0 %v6273_v25 }
 0x512   :  { %v3725_v24 = vadd.f32 %v8513_v57, %v3581_v42  ;;  %v6275_v57 = vld [vmem:[%s8764_s7 + $0xd0] sm:$0xff]  }
 0x513   :  { %5301 = vmatprep.subr.bf16.mxu1 %v6275_v57 }
 0x514   :  { %5284 = vmatpush3.bf16.msra.mxu0 %v6274_v49 }
 0x515   :  { %v3556_v17 = vpop.f32.mrb[72].mxu1 }
 0x516   :  { %v3582_v38 = vadd.f32 %v3556_v17, %v8538_v1  ;;  %v6066_v26 = vpop.f32.mrb[73].mxu1 }
 0x517   :  { %v3559_v10 = vpop.f32.mrb[74].mxu1 }
 0x518   :  { %v3583_v20 = vadd.f32 %v3559_v10, %v8541_v43  ;;  %v6067_v7 = vpop.f32.mrb[75].mxu1  ;;  %v3726_v48 = vadd.f32 %v8515_v28, %v3582_v38  ;;  %v8653_v38 = vld [vmem:[%s8765_s6] ss:$0 sm:$0xff] }
 0x51a   :  { %v3727_v39 = vadd.f32 %v8517_v13, %v3583_v20 }
 0x51d   :  { %v3564_v22 = vpop.f32.mrb[76].mxu1 }
 0x51e   :  { %v3584_v5 = vadd.f32 %v3564_v22, %v8548_v18  ;;  %v6070_v16 = vpop.f32.mrb[77].mxu1 }
 0x51f   :  { %v3567_v53 = vpop.f32.mrb[78].mxu1  ;;  %v6280_v16 = vld [vmem:[%s8764_s7 + $0x70] sm:$0xff]  }
 0x520   :  { %v3585_v47 = vadd.f32 %v3567_v53, %v8551_v19  ;;  %v6071_v1 = vpop.f32.mrb[79].mxu1  ;;  %v3728_v2 = vadd.f32 %v8519_v14, %v3584_v5 }
 0x521   :  { %v6282_v1 = vld [vmem:[%s8764_s7 + $0x30] sm:$0xff]  }
 0x522   :  { %v3729_v60 = vadd.f32 %v8521_v32, %v3585_v47 }
 0x525   :  { %v3572_v21 = vpop.f32.mrb[80].mxu1 }
 0x526   :  { %v3586_v43 = vadd.f32 %v3572_v21, %v8558_v55  ;;  %v6074_v56 = vpop.f32.mrb[81].mxu1 }
 0x527   :  { %v3575_v28 = vpop.f32.mrb[82].mxu1  ;;  %v6283_v56 = vld [vmem:[%s8764_s7 + $0x78] sm:$0xff]  }
 0x528   :  { %v6075_v34 = vpop.f32.mrb[83].mxu1  ;;  %v3730_v13 = vadd.f32 %v8525_v41, %v3586_v43 }
 0x52d   :  { %v3828_v8 = vpop.f32.mrb[84].mxu1 }
 0x52e   :  { %v3866_v18 = vadd.f32 %v3828_v8, %v8571_v36  ;;  %v6114_v29 = vpop.f32.mrb[85].mxu1  ;;  %v6285_v8 = vld [vmem:[%s8764_s7 + $0x38] sm:$0xff]  }
 0x52f   :  { %v3831_v31 = vpop.f32.mrb[86].mxu1 }
 0x530   :  { %v3867_v19 = vadd.f32 %v3831_v31, %v8580_v9  ;;  %v6115_v12 = vpop.f32.mrb[87].mxu1  ;;  %v4010_v14 = vadd.f32 %v8533_v15, %v3866_v18  ;;  %v6281_v18 = vld [vmem:[%s8764_s7 + $0x98] sm:$0xff]  }
 0x531   :  { %v6284_v12 = vld [vmem:[%s8764_s7 + $0xe0] sm:$0xff]  }
 0x532   :  { %v4011_v32 = vadd.f32 %v8535_v11, %v3867_v19 }
 0x535   :  { %v3836_v35 = vpop.f32.mrb[88].mxu1 }
 0x536   :  { %v3868_v45 = vadd.f32 %v3836_v35, %v3724_v62  ;;  %v6118_v55 = vpop.f32.mrb[89].mxu1 }
 0x537   :  { %v3839_v61 = vpop.f32.mrb[90].mxu1  ;;  %v6287_v55 = vld [vmem:[%s8764_s7 + $0xe8] sm:$0xff]  }
 0x538   :  { %v3869_v4 = vadd.f32 %v3839_v61, %v3725_v24  ;;  %v6119_v37 = vpop.f32.mrb[91].mxu1  ;;  %v4012_v41 = vadd.f32 %v8543_v27, %v3868_v45 }
 0x53a   :  { %v4013_v59 = vadd.f32 %v8545_v54, %v3869_v4 }
 0x53d   :  { %v3844_v36 = vpop.f32.mrb[92].mxu1 }
 0x53e   :  { %v3870_v40 = vadd.f32 %v3844_v36, %v3726_v48  ;;  %v6122_v6 = vpop.f32.mrb[93].mxu1  ;;  %v6276_v48 = vld [vmem:[%s8764_s7 + $0x90] sm:$0xff]  }
 0x53f   :  { %v3847_v58 = vpop.f32.mrb[94].mxu1  ;;  %5302 = vmatpush3.bf16.msra.mxu1 %v6276_v48 }
 0x540   :  { %v3871_v9 = vadd.f32 %v3847_v58, %v3727_v39  ;;  %v6123_v42 = vpop.f32.mrb[95].mxu1  ;;  %v4014_v15 = vadd.f32 %v8553_v0, %v3870_v40  ;;  %v6278_v39 = vld [vmem:[%s8764_s7 + $0x28] sm:$0xff]   ;;  %v6291_v40 = vld [vmem:[%s8764_s7 + $0xf0] sm:$0xff]  }
 0x542   :  { %v8639_v11 = vadd.f32 %v8555_v23, %v3871_v9 }
 0x545   :  { %v3852_v3 = vpop.f32.mrb[96].mxu1 }
 0x546   :  { %v3872_v33 = vadd.f32 %v3852_v3, %v3728_v2  ;;  %v6126_v62 = vpop.f32.mrb[97].mxu1 }
 0x547   :  { %v3855_v30 = vpop.f32.mrb[98].mxu1 }
 0x548   :  { %v3873_v44 = vadd.f32 %v3855_v30, %v3729_v60  ;;  %v6127_v24 = vpop.f32.mrb[99].mxu1  ;;  %v8642_v27 = vadd.f32 %v8560_v51, %v3872_v33 }
 0x549   :  { %v6295_v24 = vld [vmem:[%s8764_s7 + $0xb8] sm:$0xff]  }
 0x54a   :  { %v8645_v54 = vadd.f32 %v8568_v50, %v3873_v44  ;;  %v6294_v44 = vld [vmem:[%s8764_s7 + $0xf8] sm:$0xff]  }
 0x54d   :  { %v3860_v52 = vpop.f32.mrb[100].mxu1 }
 0x54e   :  { %v3874_v25 = vadd.f32 %v3860_v52, %v3730_v13  ;;  %v6130_v49 = vpop.f32.mrb[101].mxu1  ;;  %v6279_v13 = vld [vmem:[%s8764_s7 + $0xd8] sm:$0xff]  }
 0x54f   :  { %v3863_v17 = vpop.f32.mrb[102].mxu1  ;;  %5303 = vmatprep.subr.bf16.mxu1 %v6279_v13 }
 0x550   :  { %v6131_v0 = vpop.f32.mrb[103].mxu1  ;;  %v8648_v23 = vadd.f32 %v8591_v63, %v3874_v25  ;;  %v6277_v63 = vld [vmem:[%s8764_s7 + $0x68] sm:$0xff]   ;;  %5304 = vmatpush3.bf16.msra.mxu1 %v6281_v18 }
 0x551   :  { %5285 = vmatprep.subr.bf16.mxu0 %v6277_v63  ;;  %5305 = vmatprep.subr.bf16.mxu1 %v6284_v12 }
 0x552   :  { %5286 = vmatpush3.bf16.msra.mxu0 %v6278_v39  ;;  %v6290_v39 = vld [vmem:[%s8764_s7 + $0x108] sm:$0xff]  }
 0x553   :  { %5287 = vmatprep.subr.bf16.mxu0 %v6280_v16 }
 0x555   :  { %v4116_v57 = vpop.f32.mrb[104].mxu1 }
 0x556   :  { %v4154_v26 = vadd.f32 %v4116_v57, %v4010_v14  ;;  %v6170_v51 = vpop.f32.mrb[105].mxu1  ;;  %5288 = vmatpush3.bf16.msra.mxu0 %v6282_v1  ;;  %v6286_v14 = vld [vmem:[%s8764_s7 + $0xa0] sm:$0xff]  }
 0x557   :  { %v4119_v10 = vpop.f32.mrb[106].mxu1  ;;  %5289 = vmatprep.subr.bf16.mxu0 %v6283_v56  ;;  %5306 = vmatpush3.bf16.msra.mxu1 %v6286_v14 }
 0x558   :  { %v4170_v50 = vadd.f32 %v8653_v38, %v4154_v26  ;;  %v4155_v20 = vadd.f32 %v4119_v10, %v4011_v32  ;;  %v6171_v7 = vpop.f32.mrb[107].mxu1  ;;  %5307 = vmatprep.subr.bf16.mxu1 %v6287_v55 }
 0x55a   :  { %v4179_v22 = vmax.f32 %v4170_v50, 0.0  ;;  %v4171_v29 = vadd.f32 %v8653_v38, %v4155_v20  ;;  %5290 = vmatpush3.bf16.msra.mxu0 %v6285_v8  ;;  %v4992_v8 = vld [vmem:[%s8766_s8] ss:$0 sm:$0xff] }
 0x55b   :  { %6188 = vmatprep.subr.bf16.mxu0 %v8831_v46 }
 0x55c   :  { %4188 = vst.msk [vmem:[#allocation4] sm:$0xff] %vm146_vm1, %v4179_v22  ;;  %v4180_v61 = vmax.f32 %v4171_v29, 0.0 }
 0x55d   :  { %v4124_v5 = vpop.f32.mrb[108].mxu1 }
 0x55e   :  { %v4156_v53 = vadd.f32 %v4124_v5, %v4012_v41  ;;  %v6174_v47 = vpop.f32.mrb[109].mxu1  ;;  %v6293_v5 = vld [vmem:[%s8764_s7 + $0x110] sm:$0xff]  }
 0x55f   :  { %v4127_v2 = vpop.f32.mrb[110].mxu1 }
 0x560   :  { %v4172_v60 = vadd.f32 %v8653_v38, %v4156_v53  ;;  %v4157_v21 = vadd.f32 %v4127_v2, %v4013_v59  ;;  %v6175_v43 = vpop.f32.mrb[111].mxu1  ;;  %v6289_v59 = vld [vmem:[%s8764_s7 + $0xa8] sm:$0xff]   ;;  %v6296_v53 = vld [vmem:[%s8764_s7 + $0x118] sm:$0xff]  }
 0x561   :  { %5308 = vmatpush3.bf16.msra.mxu1 %v6289_v59 }
 0x562   :  { %v4181_v28 = vmax.f32 %v4172_v60, 0.0  ;;  %v4173_v34 = vadd.f32 %v8653_v38, %v4157_v21  ;;  %5309 = vmatprep.subr.bf16.mxu1 %v6291_v40 }
 0x564   :  { %4195 = vst.msk [vmem:[#allocation4 + $0x8] sm:$0xff] %vm146_vm1, %v4181_v28  ;;  %v4182_v31 = vmax.f32 %v4173_v34, 0.0 }
 0x565   :  { %v4132_v19 = vpop.f32.mrb[112].mxu1 }
 0x566   :  { %v4158_v32 = vadd.f32 %v4132_v19, %v4014_v15  ;;  %v6178_v35 = vpop.f32.mrb[113].mxu1  ;;  %4197 = vrot.lane.b32.xlu0 %v4182_v31, %s6299_s14  ;;  %v6292_v15 = vld [vmem:[%s8764_s7 + $0xb0] sm:$0xff]  }
 0x567   :  { %v4135_v45 = vpop.f32.mrb[114].mxu1  ;;  %5310 = vmatpush3.bf16.msra.mxu1 %v6292_v15 }
 0x568   :  { %v4174_v4 = vadd.f32 %v8653_v38, %v4158_v32  ;;  %v4159_v37 = vadd.f32 %v4135_v45, %v8639_v11  ;;  %v6179_v41 = vpop.f32.mrb[115].mxu1  ;;  %5311 = vmatprep.subr.bf16.mxu1 %v6294_v44 }
 0x56a   :  { %v4183_v36 = vmax.f32 %v4174_v4, 0.0  ;;  %4190 = vrot.lane.b32.xlu0 %v4180_v61, %s6299_s14 }
 0x56b   :  { %5312 = vmatpush3.bf16.msra.mxu1 %v6295_v24 }
 0x56c   :  { %4201 = vst.msk [vmem:[#allocation4 + $0x10] sm:$0xff] %vm146_vm1, %v4183_v36 }
 0x56d   :  { %v4140_v6 = vpop.f32.mrb[116].mxu1 }
 0x56e   :  { %v4160_v58 = vadd.f32 %v4140_v6, %v8642_v27  ;;  %v6182_v9 = vpop.f32.mrb[117].mxu1  ;;  %v4175_v27 = vadd.f32 %v8653_v38, %v4159_v37 }
 0x56f   :  { %v4143_v42 = vpop.f32.mrb[118].mxu1 }
 0x570   :  { %v4176_v11 = vadd.f32 %v8653_v38, %v4160_v58  ;;  %v4161_v3 = vadd.f32 %v4143_v42, %v8645_v54  ;;  %v6183_v33 = vpop.f32.mrb[119].mxu1  ;;  %v4184_v0 = vmax.f32 %v4175_v27, 0.0 }
 0x572   :  { %v4185_v62 = vmax.f32 %v4176_v11, 0.0  ;;  %v4177_v30 = vadd.f32 %v8653_v38, %v4161_v3 }
 0x574   :  { %4207 = vst.msk [vmem:[#allocation4 + $0x18] sm:$0xff] %vm146_vm1, %v4185_v62  ;;  %v4186_v52 = vmax.f32 %v4177_v30, 0.0 }
 0x575   :  { %v4148_v54 = vpop.f32.mrb[120].mxu1 }
 0x576   :  { %v4162_v25 = vadd.f32 %v4148_v54, %v8648_v23  ;;  %v6186_v49 = vpop.f32.mrb[121].mxu1  ;;  %4209 = vrot.lane.b32.xlu1 %v4186_v52, %s6299_s14 }
 0x577   :  { %v4151_v17 = vpop.f32.mrb[122].mxu1 }
 0x578   :  { %v4178_v57 = vadd.f32 %v8653_v38, %v4162_v25  ;;  %v6187_v26 = vpop.f32.mrb[123].mxu1  ;;  %v6288_v38 = vld [vmem:[%s8764_s7 + $0x100] sm:$0xff]  }
 0x57a   :  { %v4187_v51 = vmax.f32 %v4178_v57, 0.0  ;;  %4203 = vrot.lane.b32.xlu1 %v4184_v0, %s6299_s14 }
 0x57c   :  { %4213 = vst.msk [vmem:[#allocation4 + $0x20] sm:$0xff] %vm146_vm1, %v4187_v51 }
 0x583   :  { %v4218_v1 = vld [vmem:[#allocation4 + $0x20] sm:$0xff] }
 0x584   :  { %v4223_v60 = vpack.c.bf16 %v4218_v1, %v4218_v1 }
 0x5d8   :  { %v4198_v10 = vpop.permute.xlu0 %4197 }
 0x5d9   :  { %4200 = vst.msk [vmem:[#allocation4 + $0x8] sm:$0xff] %vm4193_vm3, %v4198_v10 }
 0x5dc   :  { %v4191_v50 = vpop.permute.xlu0 %4190 }
 0x5dd   :  { %4194 = vst.msk [vmem:[#allocation4] sm:$0xff] %vm4193_vm3, %v4191_v50 }
 0x5e0   :  { %v4215_v23 = vld [vmem:[#allocation4 + $0x8] sm:$0xff] }
 0x5e1   :  { %v4220_v20 = vpack.c.bf16 %v4215_v23, %v4215_v23 }
 0x5e3   :  { %4554 = vmatprep.mubr.bf16.mxu0 %v4220_v20 }
 0x5e4   :  { %v4214_v7 = vld [vmem:[#allocation4] sm:$0xff] }
 0x5e5   :  { %v4219_v48 = vpack.c.bf16 %v4214_v7, %v4214_v7 }
 0x5e7   :  { %4555 = vmatmul.mubr.bf16.vlgmr.msra.gmra.mrb[112].mxu0 %v4219_v48 }
 0x5e8   :  { %6189 = vmatpush3.bf16.msra.mxu0 %v6288_v38  ;;  %v4210_v63 = vpop.permute.xlu1 %4209  ;;  %6196 = vmatprep.mubr.msk.bf16.mxu0 %vm6298_vm0, %v8831_v46 }
 0x5e9   :  { %4212 = vst.msk [vmem:[#allocation4 + $0x18] sm:$0xff] %vm4193_vm3, %v4210_v63  ;;  %6190 = vmatprep.subr.bf16.mxu0 %v8831_v46 }
 0x5ec   :  { %6191 = vmatpush3.bf16.msra.mxu0 %v6290_v39  ;;  %v4204_v22 = vpop.permute.xlu1 %4203 }
 0x5ed   :  { %4206 = vst.msk [vmem:[#allocation4 + $0x10] sm:$0xff] %vm4193_vm3, %v4204_v22  ;;  %6192 = vmatprep.subr.bf16.mxu0 %v8831_v46 }
 0x5f0   :  { %6193 = vmatpush3.bf16.msra.mxu0 %v6293_v5  ;;  %v4217_v16 = vld [vmem:[#allocation4 + $0x18] sm:$0xff] }
 0x5f1   :  { %6194 = vmatprep.subr.bf16.mxu0 %v8831_v46  ;;  %v4222_v47 = vpack.c.bf16 %v4217_v16, %v4217_v16 }
 0x5f3   :  { %4594 = vmatprep.mubr.bf16.mxu1 %v4222_v47 }
 0x5f4   :  { %v4216_v2 = vld [vmem:[#allocation4 + $0x10] sm:$0xff]  ;;  %6195 = vmatpush3.bf16.msra.mxu0 %v6296_v53 }
 0x5f5   :  { %v4221_v21 = vpack.c.bf16 %v4216_v2, %v4216_v2 }
 0x5f7   :  { %6197 = vmatmul.mubr.msk.bf16.vlgmr.msra.gmra.mrb[116].mxu0 %vm146_vm1, %v4223_v60  ;;  %4595 = vmatmul.mubr.bf16.vlgmr.msra.gmra.mrb[124].mxu1 %v4221_v21 }
 0x6ba   :  { %v5291_v43 = vpop.f32.mrb[112].mxu0 }
 0x6bb   :  { %v5292_v56 = vpop.f32.mrb[113].mxu0 }
 0x6bc   :  { %v5293_v28 = vadd.f32 %v5292_v56, %v5291_v43  ;;  %v5294_v34 = vpop.f32.mrb[114].mxu0 }
 0x6bd   :  { %v5295_v13 = vpop.f32.mrb[115].mxu0 }
 0x6be   :  { %v4557_v19 = vadd.f32 %v5293_v28, %v4992_v8 }
 0x6ca   :  { %v4636_v46 = vpop.f32.mrb[116].mxu0  ;;  %v5313_v18 = vpop.f32.mrb[124].mxu1 }
 0x6cb   :  { %v6198_v29 = vpop.f32.mrb[117].mxu0  ;;  %v5314_v31 = vpop.f32.mrb[125].mxu1 }
 0x6cc   :  { %v5315_v12 = vadd.f32 %v5314_v31, %v5313_v18  ;;  %v4639_v14 = vpop.f32.mrb[118].mxu0  ;;  %v5316_v32 = vpop.f32.mrb[126].mxu1 }
 0x6cd   :  { %v6199_v35 = vpop.f32.mrb[119].mxu0  ;;  %v5317_v45 = vpop.f32.mrb[127].mxu1 }
 0x6ce   :  { %v4597_v55 = vadd.f32 %v5315_v12, %v4557_v19 }
 0x6d0   :  { %v4637_v61 = vadd.f32 %v4636_v46, %v4597_v55 }
 0x6d2   :  { %v4642_v4 = vmax.f32 %v4637_v61, 0.0 }
 0x6d4   :  { %4643 = vst.msk [vmem:[%s8767_s9] sm:$0xff] %vm503_vm2, %v4642_v4 }

</bundles_post_ra>
